<compile_context>
chip_gen: v7x
topology: tpu7x:2x2x1
jax: 0.10.0
libtpu: 0.0.40
codegen_flags: <defaults>
</compile_context>

<pallas_src>
import jax
import jax.numpy as jnp
from jax import lax
from jax.experimental import pallas as pl
from jax.experimental.pallas import tpu as pltpu

D_IN = 512
D_HID = 2048
D_OUT = 512
NORM_EPS = 1e-12       # F.normalize default eps
TILE_M_MAX = 512       # multiple of 256 -> matches 256x256 MXU on v6e/v7x


def _round_up(x, m):
    return (x + m - 1) // m * m


def _choose_tile_m(B):
    """Pick a sublane-aligned row tile; prefer big tiles, but keep >=2 grid steps
    when possible so both v7x TensorCores get work."""
    if B >= 2 * TILE_M_MAX:
        return TILE_M_MAX
    half = _round_up(max(1, -(-B // 2)), 8)
    return max(8, min(TILE_M_MAX, half))


def _head_kernel(x_ref, w1_ref, b1_ref, w2_ref, b2_ref, o_ref):
    # x_ref:  (tile_m, D_IN)    any float dtype
    # w1_ref: (D_IN, D_HID)  bf16    b1_ref: (1, D_HID)  f32
    # w2_ref: (D_HID, D_OUT) bf16    b2_ref: (1, D_OUT)  f32
    # o_ref:  (tile_m, D_OUT)   x.dtype
    x = x_ref[...].astype(jnp.bfloat16)

    # First linear (bf16 operands, f32 accumulate) + bias + ReLU, all in VMEM.
    h = jnp.dot(x, w1_ref[...], preferred_element_type=jnp.float32) + b1_ref[...]
    h = jnp.maximum(h, 0.0)

    # Second linear (bf16 operands, f32 accumulate) + bias.
    y = jnp.dot(h.astype(jnp.bfloat16), w2_ref[...],
                preferred_element_type=jnp.float32) + b2_ref[...]

    # L2 normalize along features: x / max(||x||, eps)  ==  x * rsqrt(max(||x||^2, eps^2))
    sq = jnp.sum(y * y, axis=1, keepdims=True)                   # (tile_m, 1)
    inv = lax.rsqrt(jnp.maximum(sq, NORM_EPS * NORM_EPS))        # EUP rsqrt
    o_ref[...] = (y * inv).astype(o_ref.dtype)


def supcon_head_pallas(x, w1, b1, w2, b2):
    """SupConHead.forward.

    x:  (bs, length, 512)
    w1: (512, 2048), b1: (2048,), w2: (2048, 512), b2: (512,)
    returns: (bs, length, 512) L2-normalized features, in x.dtype.
    """
    bs, length, d = x.shape
    assert d == D_IN
    B = bs * length
    xf = x.reshape(B, d)                     # free reshape; no pad, no dtype pass

    tile_m = _choose_tile_m(B)
    grid = (pl.cdiv(B, tile_m),)             # ragged last block; OOB rows dropped

    w1b = w1.astype(jnp.bfloat16)            # bf16 MXU operands (f32 accumulate)
    w2b = w2.astype(jnp.bfloat16)
    b1f = b1.reshape(1, D_HID).astype(jnp.float32)
    b2f = b2.reshape(1, D_OUT).astype(jnp.float32)

    out = pl.pallas_call(
        _head_kernel,
        out_shape=jax.ShapeDtypeStruct((B, D_OUT), x.dtype),
        grid=grid,
        in_specs=[
            pl.BlockSpec((tile_m, D_IN), lambda i: (i, 0)),
            pl.BlockSpec((D_IN, D_HID), lambda i: (0, 0)),   # resident across tiles
            pl.BlockSpec((1, D_HID), lambda i: (0, 0)),
            pl.BlockSpec((D_HID, D_OUT), lambda i: (0, 0)),  # resident across tiles
            pl.BlockSpec((1, D_OUT), lambda i: (0, 0)),
        ],
        out_specs=pl.BlockSpec((tile_m, D_OUT), lambda i: (i, 0)),
        compiler_params=pltpu.CompilerParams(
            dimension_semantics=("parallel",),
            vmem_limit_bytes=32 * 1024 * 1024,
        ),
    )(xf, w1b, b1f, w2b, b2f)

    return out.reshape(bs, length, D_OUT)


supcon_head = jax.jit(supcon_head_pallas)


def _reference_jax(x, w1, b1, w2, b2):
    """Pure-JAX f32 reference mirroring the PyTorch module."""
    bs, length, d = x.shape
    xf = x.reshape(-1, d).astype(jnp.float32)
    h = jnp.maximum(
        jnp.dot(xf, w1.astype(jnp.float32), precision=lax.Precision.HIGHEST) + b1, 0.0)
    y = jnp.dot(h, w2.astype(jnp.float32), precision=lax.Precision.HIGHEST) + b2
    n = jnp.sqrt(jnp.sum(y * y, axis=1, keepdims=True))
    feat = y / jnp.maximum(n, NORM_EPS)
    return feat.reshape(bs, length, d)


if __name__ == "__main__":
    key = jax.random.PRNGKey(0)
    kx, k1, k2, k3, k4 = jax.random.split(key, 5)

    bs, length = 2, 8  # the module fixes feature dims at 512 / 2048 / 512
    x = jax.random.normal(kx, (bs, length, D_IN), dtype=jnp.float32)

    # PyTorch nn.Linear-style uniform init (scale only matters for realism).
    bound1 = 1.0 / (D_IN ** 0.5)
    w1 = jax.random.uniform(k1, (D_IN, D_HID), jnp.float32, -bound1, bound1)
    b1 = jax.random.uniform(k2, (D_HID,), jnp.float32, -bound1, bound1)
    bound2 = 1.0 / (D_HID ** 0.5)
    w2 = jax.random.uniform(k3, (D_HID, D_OUT), jnp.float32, -bound2, bound2)
    b2 = jax.random.uniform(k4, (D_OUT,), jnp.float32, -bound2, bound2)

    feat = supcon_head(x, w1, b1, w2, b2)
    jax.block_until_ready(feat)
    assert feat.shape == (bs, length, D_OUT)

    ref = _reference_jax(x, w1, b1, w2, b2)
    max_err = float(jnp.max(jnp.abs(feat.astype(jnp.float32) - ref)))
    # bf16 matmul operands (f32 accumulate) vs. f32 HIGHEST reference: the
    # normalized features agree to ~1e-3; tolerance loosened accordingly.
    assert max_err < 1e-2, max_err

    # Output rows must be unit-norm (F.normalize semantics).
    norms = jnp.linalg.norm(feat.reshape(-1, D_OUT).astype(jnp.float32), axis=1)
    assert jnp.allclose(norms, 1.0, atol=1e-3)

    print("KERNEL_OK")
</pallas_src>

<mosaic_0001>
module attributes {stable_mosaic.version = 11 : i64} {
  func.func @_head_kernel(%arg0: i32, %arg1: memref<8x512xf32, #tpu.memory_space<vmem>>, %arg2: memref<512x2048xbf16, #tpu.memory_space<vmem>>, %arg3: memref<1x2048xf32, #tpu.memory_space<vmem>>, %arg4: memref<2048x512xbf16, #tpu.memory_space<vmem>>, %arg5: memref<1x512xf32, #tpu.memory_space<vmem>>, %arg6: memref<8x512xf32, #tpu.memory_space<vmem>>) attributes {dimension_semantics = [#tpu.dimension_semantics<parallel>], iteration_bounds = array<i64: 2>, scalar_prefetch = 0 : i64, scratch_operands = 0 : i64, tpu.core_type = #tpu.core_type<tc>, window_params = [{transform_indices = @transform_0, window_bounds = array<i64: 8, 512>}, {pipeline_mode = #tpu.pipeline_mode<synchronous>, transform_indices = @transform_1, window_bounds = array<i64: 512, 2048>}, {pipeline_mode = #tpu.pipeline_mode<synchronous>, transform_indices = @transform_2, window_bounds = array<i64: 1, 2048>}, {pipeline_mode = #tpu.pipeline_mode<synchronous>, transform_indices = @transform_3, window_bounds = array<i64: 2048, 512>}, {pipeline_mode = #tpu.pipeline_mode<synchronous>, transform_indices = @transform_4, window_bounds = array<i64: 1, 512>}, {transform_indices = @transform_5, window_bounds = array<i64: 8, 512>}]} {
    %c0 = arith.constant 0 : index
    %c0_0 = arith.constant 0 : index
    %0 = vector.load %arg1[%c0, %c0_0] : memref<8x512xf32, #tpu.memory_space<vmem>>, vector<8x512xf32>
    %1 = arith.truncf %0 : vector<8x512xf32> to vector<8x512xbf16>
    %c0_1 = arith.constant 0 : index
    %c0_2 = arith.constant 0 : index
    %2 = vector.load %arg2[%c0_1, %c0_2] : memref<512x2048xbf16, #tpu.memory_space<vmem>>, vector<512x2048xbf16>
    %cst = arith.constant dense<0.000000e+00> : vector<8x2048xf32>
    %3 = tpu.matmul %1, %2, %cst {dimension_numbers = #tpu.dot_dimension_numbers<[1], [0], [0], [1], [0, 0, 1, 1], [], []>} : vector<8x512xbf16>, vector<512x2048xbf16>, vector<8x2048xf32> -> vector<8x2048xf32>
    %c0_3 = arith.constant 0 : index
    %c0_4 = arith.constant 0 : index
    %4 = vector.load %arg3[%c0_3, %c0_4] : memref<1x2048xf32, #tpu.memory_space<vmem>>, vector<1x2048xf32>
    %5 = vector.broadcast %4 : vector<1x2048xf32> to vector<8x2048xf32>
    %6 = arith.addf %3, %5 : vector<8x2048xf32>
    %cst_5 = arith.constant 0.000000e+00 : f32
    %7 = vector.broadcast %cst_5 : f32 to vector<8x2048xf32>
    %8 = arith.maximumf %6, %7 : vector<8x2048xf32>
    %9 = arith.truncf %8 : vector<8x2048xf32> to vector<8x2048xbf16>
    %c0_6 = arith.constant 0 : index
    %c0_7 = arith.constant 0 : index
    %10 = vector.load %arg4[%c0_6, %c0_7] : memref<2048x512xbf16, #tpu.memory_space<vmem>>, vector<2048x512xbf16>
    %cst_8 = arith.constant dense<0.000000e+00> : vector<8x512xf32>
    %11 = tpu.matmul %9, %10, %cst_8 {dimension_numbers = #tpu.dot_dimension_numbers<[1], [0], [0], [1], [0, 0, 1, 1], [], []>} : vector<8x2048xbf16>, vector<2048x512xbf16>, vector<8x512xf32> -> vector<8x512xf32>
    %c0_9 = arith.constant 0 : index
    %c0_10 = arith.constant 0 : index
    %12 = vector.load %arg5[%c0_9, %c0_10] : memref<1x512xf32, #tpu.memory_space<vmem>>, vector<1x512xf32>
    %13 = vector.broadcast %12 : vector<1x512xf32> to vector<8x512xf32>
    %14 = arith.addf %11, %13 : vector<8x512xf32>
    %15 = arith.mulf %14, %14 : vector<8x512xf32>
    %cst_11 = arith.constant dense<0.000000e+00> : vector<8xf32>
    %16 = vector.multi_reduction <add>, %15, %cst_11 [1] : vector<8x512xf32> to vector<8xf32>
    %17 = vector.shape_cast %16 : vector<8xf32> to vector<8x1xf32>
    %cst_12 = arith.constant 1.000000e-24 : f32
    %18 = vector.broadcast %cst_12 : f32 to vector<8x1xf32>
    %19 = arith.maximumf %17, %18 : vector<8x1xf32>
    %20 = math.rsqrt %19 : vector<8x1xf32>
    %21 = vector.broadcast %20 : vector<8x1xf32> to vector<8x512xf32>
    %22 = arith.mulf %14, %21 : vector<8x512xf32>
    %c0_13 = arith.constant 0 : index
    %c0_14 = arith.constant 0 : index
    %23 = vector.load %arg6[%c0_13, %c0_14] : memref<8x512xf32, #tpu.memory_space<vmem>>, vector<8x512xf32>
    tpu.vector_store %arg6[%c0_13, %c0_14], %22 {strides = array<i32>} : memref<8x512xf32, #tpu.memory_space<vmem>>, vector<8x512xf32>,
    return
  }
  func.func @transform_0(%arg0: i32) -> (i32, i32) {
    %c0_i32 = arith.constant 0 : i32
    %c0_i32_0 = arith.constant 0 : i32
    return %arg0, %c0_i32 : i32, i32
  }
  func.func @transform_1(%arg0: i32) -> (i32, i32) {
    %c0_i32 = arith.constant 0 : i32
    %c0_i32_0 = arith.constant 0 : i32
    %c0_i32_1 = arith.constant 0 : i32
    return %c0_i32, %c0_i32_0 : i32, i32
  }
  func.func @transform_2(%arg0: i32) -> (i32, i32) {
    %c0_i32 = arith.constant 0 : i32
    %c0_i32_0 = arith.constant 0 : i32
    %c0_i32_1 = arith.constant 0 : i32
    return %c0_i32, %c0_i32_0 : i32, i32
  }
  func.func @transform_3(%arg0: i32) -> (i32, i32) {
    %c0_i32 = arith.constant 0 : i32
    %c0_i32_0 = arith.constant 0 : i32
    %c0_i32_1 = arith.constant 0 : i32
    return %c0_i32, %c0_i32_0 : i32, i32
  }
  func.func @transform_4(%arg0: i32) -> (i32, i32) {
    %c0_i32 = arith.constant 0 : i32
    %c0_i32_0 = arith.constant 0 : i32
    %c0_i32_1 = arith.constant 0 : i32
    return %c0_i32, %c0_i32_0 : i32, i32
  }
  func.func @transform_5(%arg0: i32) -> (i32, i32) {
    %c0_i32 = arith.constant 0 : i32
    %c0_i32_0 = arith.constant 0 : i32
    return %arg0, %c0_i32 : i32, i32
  }
}

</mosaic_0001>

<bundles_post_ra>
// kernel: supcon_head_pallas.1
= control target key start
LH: loop header
LB: loop body
LE: loop exit
PB: predicated region body
PF: predicated region fallthrough
CT: control target
= control target key end

     0   :  { %10 = vsyncpa [#allocation3], 0  ;;  %s13315_s0 = inlined_call_operand.vmem [shape: f32[16,512], index: 0, kind: input, shape index: {}]   ;;  %s13316_s1 = inlined_call_operand.vmem [shape: bf16[512,2048], index: 1, kind: input, shape index: {}]   ;;  %s13317_s2 = inlined_call_operand.vmem [shape: f32[1,2048], index: 2, kind: input, shape index: {}]   ;;  %s13318_s3 = inlined_call_operand.vmem [shape: bf16[2048,512], index: 3, kind: input, shape index: {}]   ;;  %s13319_s4 = inlined_call_operand.vmem [shape: f32[1,512], index: 4, kind: input, shape index: {}]   ;;  %s13320_s5 = inlined_call_operand.hbm [shape: f32[16,512], index: 5, kind: output, shape index: {}]  }
   0x1   :  { %12 = vsyncpa [#allocation3 + $0x1], 0  ;;  %s9970_s18 = smov 0   ;;  %s9972_s19 = smov 0  }
   0x2   :  { %s9974_s20 = smov 0   ;;  %s9976_s21 = smov 0  }
   0x3 LB: > { %s9991_s22 = sadd.s32 4294967295, %s9937_s21   ;;  %s7918_s23 = sadd.s32 4294967294, %s9937_s21   ;;  %s9937_s21 = sphi %s9976_s21, %s13326_s21   ;;  %s9933_s20 = sphi %s9974_s20, %s13325_s20   ;;  %s9929_s19 = sphi %s9972_s19, %s13324_s19   ;;  %s9925_s18 = sphi %s9970_s18, %s13323_s18  }
   0x4   : > { %s9995_s24 = sadd.s32 1, %s9937_s21   ;;  %s135_s25 = sadd.s32 1, %s9933_s20 }
   0x5   : > { %s132_s26 = ssub.s32 %s9937_s21, %s9995_s24  ;;  %p145_p0 = scmp.ne.s32.totalorder %s9933_s20, %s9929_s19 }
   0x6   : > { %p133_p1 = scmp.eq.s32.totalorder %s132_s26, 0  ;;  %p146_p2 = scmp.eq.s32.totalorder %s9991_s22, 1 }
   0x7   : > { %p151_p3 = scmp.ne.s32.totalorder %s9929_s19, %s9925_s18  ;;  %p152_p4 = scmp.eq.s32.totalorder %s7918_s23, 1 }
   0x8   : > { %s10006_s27 = scalar_select %p133_p1, %s9933_s20, %s135_s25  }
   0x9   : > { %p10008_p5 = por %p146_p2, %p145_p0  ;;  %p10012_p6 = por %p152_p4, %p151_p3 }
   0xa   : > { %p7921_p7 = scmp.ge.s32.totalorder %s9937_s21, 1  ;;  %p190_p8 = scmp.lt.s32.totalorder %s9937_s21, 3 }
   0xc   : > { %p191_p9 = pnand %p7921_p7, %p190_p8 }
   0xd   : > { %v231_v0 = vld [vmem:[%s13316_s1] sm:$0xff] (!%p191_p9)  ;;  %v232_v2 = vld [vmem:[%s13316_s1 + $0x8] sm:$0xff] (!%p191_p9)  ;;  %p218_p10 = scmp.lt.s32.totalorder (!%p191_p9), %s9991_s22, 1  ;;  %s215_s23 = sand.u32 (!%p191_p9), 1, %s9929_s19  }
   0xe   : > { %194 = sbr.rel (%p191_p9) target bundleno = 1436 (0x59c), region = 40  ;;  %v239_v1 = vld [vmem:[%s13316_s1 + $0x40] sm:$0xff] (!%p191_p9)  ;;  %v240_v4 = vld [vmem:[%s13316_s1 + $0x48] sm:$0xff] (!%p191_p9)  ;;  %s7922_s25 = sshll.u32 (!%p191_p9), %s215_s23, 5 }
   0xf   : > { %v7926_v3 = vcombine.high (!%p191_p9), %v231_v0, %v239_v1  ;;  %v7925_v5 = vcombine.low (!%p191_p9), %v231_v0, %v239_v1  ;;  %v247_v6 = vld [vmem:[%s13316_s1 + $0x80] sm:$0xff] (!%p191_p9)  ;;  %v7928_v8 = vcombine.high (!%p191_p9), %v232_v2, %v240_v4  ;;  %v7927_v9 = vcombine.low (!%p191_p9), %v232_v2, %v240_v4  ;;  %v248_v11 = vld [vmem:[%s13316_s1 + $0x88] sm:$0xff] (!%p191_p9)  ;;  %s8955_s26 = sshll.u32 (!%p191_p9), %s9991_s22, 9  ;;  %s9939_s10 = smov (!%p191_p9), [#allocation2]  }
  0x10   : > { %v255_v7 = vld [vmem:[%s13316_s1 + $0xc0] sm:$0xff] (!%p191_p9)  ;;  %v256_v12 = vld [vmem:[%s13316_s1 + $0xc8] sm:$0xff] (!%p191_p9)  ;;  %s13273_s8 = scalar_lea.hbm (!%p191_p9), %s13320_s5, %s8955_s26  ;;  %s9879_s11 = sshll.u32 (!%p191_p9), %s9939_s10, 4  ;;  %s9880_s11 = int_to_ptr.vmem [resolvable:$false] %s9879_s11 }
  0x11   : > { %v7942_v10 = vcombine.high (!%p191_p9), %v247_v6, %v255_v7  ;;  %v263_v13 = vld [vmem:[%s13316_s1 + $0x100] sm:$0xff] (!%p191_p9)  ;;  %3387 = vmatprep.subr.bf16.mxu0 (!%p191_p9), %v7926_v3  ;;  %v7944_v14 = vcombine.high (!%p191_p9), %v248_v11, %v256_v12  ;;  %v264_v16 = vld [vmem:[%s13316_s1 + $0x108] sm:$0xff] (!%p191_p9)  ;;  %3469 = vmatprep.subr.bf16.mxu1 (!%p191_p9), %v7928_v8  ;;  %v7941_v18 = vcombine.low (!%p191_p9), %v247_v6, %v255_v7  ;;  %s9881_s12 = scalar_lea.vmem (!%p191_p9), %s9880_s11, 1024 }
  0x12   : > { %v271_v15 = vld [vmem:[%s13316_s1 + $0x140] sm:$0xff] (!%p191_p9)  ;;  %v272_v17 = vld [vmem:[%s13316_s1 + $0x148] sm:$0xff] (!%p191_p9)  ;;  %3388 = vmatpush1.bf16.msra.mxu0 (!%p191_p9), %v7925_v5  ;;  %3470 = vmatpush1.bf16.msra.mxu1 (!%p191_p9), %v7927_v9  ;;  %v7943_v19 = vcombine.low (!%p191_p9), %v248_v11, %v256_v12 }
  0x13   : > { %3389 = vmatprep.subr.bf16.mxu0 (!%p191_p9), %v7942_v10  ;;  %v7958_v20 = vcombine.high (!%p191_p9), %v263_v13, %v271_v15  ;;  %3471 = vmatprep.subr.bf16.mxu1 (!%p191_p9), %v7944_v14  ;;  %v7960_v21 = vcombine.high (!%p191_p9), %v264_v16, %v272_v17  ;;  %v279_v22 = vld [vmem:[%s13316_s1 + $0x180] sm:$0xff] (!%p191_p9)  ;;  %v280_v24 = vld [vmem:[%s13316_s1 + $0x188] sm:$0xff] (!%p191_p9)  ;;  %v7957_v26 = vcombine.low (!%p191_p9), %v263_v13, %v271_v15 }
  0x14   : > { %v287_v23 = vld [vmem:[%s13316_s1 + $0x1c0] sm:$0xff] (!%p191_p9)  ;;  %v288_v25 = vld [vmem:[%s13316_s1 + $0x1c8] sm:$0xff] (!%p191_p9)  ;;  %v7959_v27 = vcombine.low (!%p191_p9), %v264_v16, %v272_v17 }
  0x15   : > { %v7974_v28 = vcombine.high %v279_v22, %v287_v23  ;;  %v7976_v29 = vcombine.high %v280_v24, %v288_v25  ;;  %v295_v30 = vld [vmem:[%s13316_s1 + $0x200] sm:$0xff]  ;;  %v296_v32 = vld [vmem:[%s13316_s1 + $0x208] sm:$0xff]  ;;  %s219_s13 = scalar_select %p218_p10, %s9991_s22, 1  ;;  %v7973_v34 = vcombine.low %v279_v22, %v287_v23  ;;  %v7975_v35 = vcombine.low %v280_v24, %v288_v25 }
  0x16   : > { %3390 = vmatpush1.bf16.msra.mxu0 %v7941_v18  ;;  %3472 = vmatpush1.bf16.msra.mxu1 %v7943_v19  ;;  %v303_v31 = vld [vmem:[%s13316_s1 + $0x240] sm:$0xff]  ;;  %v304_v33 = vld [vmem:[%s13316_s1 + $0x248] sm:$0xff]  ;;  %s7845_s22 = scalar_lea.sflag [#allocation3], %s215_s23 }
  0x17   : > { %3391 = vmatprep.subr.bf16.mxu0 %v7958_v20  ;;  %3473 = vmatprep.subr.bf16.mxu1 %v7960_v21  ;;  %v7990_v36 = vcombine.high %v295_v30, %v303_v31  ;;  %v7992_v37 = vcombine.high %v296_v32, %v304_v33  ;;  %v311_v38 = vld [vmem:[%s13316_s1 + $0x280] sm:$0xff]  ;;  %v312_v40 = vld [vmem:[%s13316_s1 + $0x288] sm:$0xff]  ;;  %s8954_s6 = sshll.u32 %s219_s13, 5  ;;  %v7989_v42 = vcombine.low %v295_v30, %v303_v31 }
  0x18   : > { %v319_v39 = vld [vmem:[%s13316_s1 + $0x2c0] sm:$0xff]  ;;  %v320_v41 = vld [vmem:[%s13316_s1 + $0x2c8] sm:$0xff]  ;;  %v7991_v43 = vcombine.low %v296_v32, %v304_v33  ;;  %s10101_s13 = scalar_lea.vmem %s13315_s0, %s8954_s6 }
  0x19   : > { %v8006_v44 = vcombine.high %v311_v38, %v319_v39  ;;  %v8008_v45 = vcombine.high %v312_v40, %v320_v41  ;;  %v327_v46 = vld [vmem:[%s13316_s1 + $0x300] sm:$0xff]  ;;  %v328_v48 = vld [vmem:[%s13316_s1 + $0x308] sm:$0xff]  ;;  %v8005_v50 = vcombine.low %v311_v38, %v319_v39  ;;  %v8007_v51 = vcombine.low %v312_v40, %v320_v41 }
  0x1a   : > { %3392 = vmatpush1.bf16.msra.mxu0 %v7957_v26  ;;  %3474 = vmatpush1.bf16.msra.mxu1 %v7959_v27  ;;  %v335_v47 = vld [vmem:[%s13316_s1 + $0x340] sm:$0xff]  ;;  %v336_v49 = vld [vmem:[%s13316_s1 + $0x348] sm:$0xff] }
  0x1b   : > { %3393 = vmatprep.subr.bf16.mxu0 %v7974_v28  ;;  %3475 = vmatprep.subr.bf16.mxu1 %v7976_v29  ;;  %v8022_v52 = vcombine.high %v327_v46, %v335_v47  ;;  %v224_v53 = vld [vmem:[%s10101_s13 + $0x8] sm:$0xff]  ;;  %v8024_v54 = vcombine.high %v328_v48, %v336_v49  ;;  %v343_v55 = vld [vmem:[%s13316_s1 + $0x380] sm:$0xff]  ;;  %v8021_v60 = vcombine.low %v327_v46, %v335_v47 }
  0x1c   : > { %v351_v56 = vld [vmem:[%s13316_s1 + $0x3c0] sm:$0xff]  ;;  %v10116_v57 = vpack.c.bf16 %v224_v53, %v224_v53  ;;  %v344_v58 = vld [vmem:[%s13316_s1 + $0x388] sm:$0xff]  ;;  %v8023_v61 = vcombine.low %v328_v48, %v336_v49 }
  0x1d   : > { %v352_v59 = vld [vmem:[%s13316_s1 + $0x3c8] sm:$0xff]  ;;  %v8038_v62 = vcombine.high %v343_v55, %v351_v56  ;;  %v359_v0 = vld [vmem:[%s13316_s1 + $0x400] sm:$0xff]  ;;  %v8037_v4 = vcombine.low %v343_v55, %v351_v56 }
  0x1e   : > { %3394 = vmatpush1.bf16.msra.mxu0 %v7973_v34  ;;  %3476 = vmatpush1.bf16.msra.mxu1 %v7975_v35  ;;  %v8040_v63 = vcombine.high %v344_v58, %v352_v59  ;;  %v367_v1 = vld [vmem:[%s13316_s1 + $0x440] sm:$0xff]  ;;  %v360_v2 = vld [vmem:[%s13316_s1 + $0x408] sm:$0xff]  ;;  %v8039_v5 = vcombine.low %v344_v58, %v352_v59 }
  0x1f   : > { %3395 = vmatprep.subr.bf16.mxu0 %v7990_v36  ;;  %3477 = vmatprep.subr.bf16.mxu1 %v7992_v37  ;;  %v368_v3 = vld [vmem:[%s13316_s1 + $0x448] sm:$0xff]  ;;  %v8054_v6 = vcombine.high %v359_v0, %v367_v1  ;;  %v375_v8 = vld [vmem:[%s13316_s1 + $0x480] sm:$0xff]  ;;  %v8053_v12 = vcombine.low %v359_v0, %v367_v1 }
  0x20   : > { %3419 = vmatprep.mubr.bf16.mxu0 %v10116_v57  ;;  %3501 = vmatprep.mubr.bf16.mxu1 %v10116_v57  ;;  %v8056_v7 = vcombine.high %v360_v2, %v368_v3  ;;  %v383_v9 = vld [vmem:[%s13316_s1 + $0x4c0] sm:$0xff]  ;;  %v376_v10 = vld [vmem:[%s13316_s1 + $0x488] sm:$0xff]  ;;  %v8055_v13 = vcombine.low %v360_v2, %v368_v3 }
  0x21   : > { %v384_v11 = vld [vmem:[%s13316_s1 + $0x4c8] sm:$0xff]  ;;  %v8070_v14 = vcombine.high %v375_v8, %v383_v9  ;;  %v391_v16 = vld [vmem:[%s13316_s1 + $0x500] sm:$0xff]  ;;  %v8069_v20 = vcombine.low %v375_v8, %v383_v9 }
  0x22   : > { %3396 = vmatpush1.bf16.msra.mxu0 %v7989_v42  ;;  %3478 = vmatpush1.bf16.msra.mxu1 %v7991_v43  ;;  %v8072_v15 = vcombine.high %v376_v10, %v384_v11  ;;  %v399_v17 = vld [vmem:[%s13316_s1 + $0x540] sm:$0xff]  ;;  %v392_v18 = vld [vmem:[%s13316_s1 + $0x508] sm:$0xff]  ;;  %v8071_v21 = vcombine.low %v376_v10, %v384_v11 }
  0x23   : > { %3397 = vmatprep.subr.bf16.mxu0 %v8006_v44  ;;  %3479 = vmatprep.subr.bf16.mxu1 %v8008_v45  ;;  %v400_v19 = vld [vmem:[%s13316_s1 + $0x548] sm:$0xff]  ;;  %v8086_v22 = vcombine.high %v391_v16, %v399_v17  ;;  %v407_v24 = vld [vmem:[%s13316_s1 + $0x580] sm:$0xff]  ;;  %v8085_v28 = vcombine.low %v391_v16, %v399_v17 }
  0x24   : > { %v8088_v23 = vcombine.high %v392_v18, %v400_v19  ;;  %v415_v25 = vld [vmem:[%s13316_s1 + $0x5c0] sm:$0xff]  ;;  %v408_v26 = vld [vmem:[%s13316_s1 + $0x588] sm:$0xff]  ;;  %v8087_v29 = vcombine.low %v392_v18, %v400_v19 }
  0x25   : > { %v416_v27 = vld [vmem:[%s13316_s1 + $0x5c8] sm:$0xff]  ;;  %v8102_v30 = vcombine.high %v407_v24, %v415_v25  ;;  %v423_v32 = vld [vmem:[%s13316_s1 + $0x600] sm:$0xff]  ;;  %v8101_v36 = vcombine.low %v407_v24, %v415_v25 }
  0x26   : > { %3398 = vmatpush1.bf16.msra.mxu0 %v8005_v50  ;;  %3480 = vmatpush1.bf16.msra.mxu1 %v8007_v51  ;;  %v8104_v31 = vcombine.high %v408_v26, %v416_v27  ;;  %v431_v33 = vld [vmem:[%s13316_s1 + $0x640] sm:$0xff]  ;;  %v424_v34 = vld [vmem:[%s13316_s1 + $0x608] sm:$0xff]  ;;  %v8103_v37 = vcombine.low %v408_v26, %v416_v27 }
  0x27   : > { %3399 = vmatprep.subr.bf16.mxu0 %v8022_v52  ;;  %3481 = vmatprep.subr.bf16.mxu1 %v8024_v54  ;;  %v432_v35 = vld [vmem:[%s13316_s1 + $0x648] sm:$0xff]  ;;  %v8118_v38 = vcombine.high %v423_v32, %v431_v33  ;;  %v439_v40 = vld [vmem:[%s13316_s1 + $0x680] sm:$0xff]  ;;  %v8117_v44 = vcombine.low %v423_v32, %v431_v33 }
  0x28   : > { %v8120_v39 = vcombine.high %v424_v34, %v432_v35  ;;  %v447_v41 = vld [vmem:[%s13316_s1 + $0x6c0] sm:$0xff]  ;;  %v440_v42 = vld [vmem:[%s13316_s1 + $0x688] sm:$0xff]  ;;  %v8119_v45 = vcombine.low %v424_v34, %v432_v35 }
  0x29   : > { %v448_v43 = vld [vmem:[%s13316_s1 + $0x6c8] sm:$0xff]  ;;  %v8134_v46 = vcombine.high %v439_v40, %v447_v41  ;;  %v455_v48 = vld [vmem:[%s13316_s1 + $0x700] sm:$0xff]  ;;  %v8133_v52 = vcombine.low %v439_v40, %v447_v41 }
  0x2a   : > { %3400 = vmatpush1.bf16.msra.mxu0 %v8021_v60  ;;  %3482 = vmatpush1.bf16.msra.mxu1 %v8023_v61  ;;  %v8136_v47 = vcombine.high %v440_v42, %v448_v43  ;;  %v463_v49 = vld [vmem:[%s13316_s1 + $0x740] sm:$0xff]  ;;  %v456_v50 = vld [vmem:[%s13316_s1 + $0x708] sm:$0xff]  ;;  %v8135_v53 = vcombine.low %v440_v42, %v448_v43 }
  0x2b   : > { %3401 = vmatprep.subr.bf16.mxu0 %v8038_v62  ;;  %3483 = vmatprep.subr.bf16.mxu1 %v8040_v63  ;;  %v464_v51 = vld [vmem:[%s13316_s1 + $0x748] sm:$0xff]  ;;  %v8150_v54 = vcombine.high %v455_v48, %v463_v49  ;;  %v471_v56 = vld [vmem:[%s13316_s1 + $0x780] sm:$0xff]  ;;  %v8149_v61 = vcombine.low %v455_v48, %v463_v49 }
  0x2c   : > { %v8152_v55 = vcombine.high %v456_v50, %v464_v51  ;;  %v479_v58 = vld [vmem:[%s13316_s1 + $0x7c0] sm:$0xff]  ;;  %v472_v59 = vld [vmem:[%s13316_s1 + $0x788] sm:$0xff]  ;;  %v8151_v62 = vcombine.low %v456_v50, %v464_v51 }
  0x2d   : > { %v480_v60 = vld [vmem:[%s13316_s1 + $0x7c8] sm:$0xff]  ;;  %v8166_v63 = vcombine.high %v471_v56, %v479_v58  ;;  %v487_v1 = vld [vmem:[%s13316_s1 + $0x800] sm:$0xff] }
  0x2e   : > { %3402 = vmatpush1.bf16.msra.mxu0 %v8037_v4  ;;  %3484 = vmatpush1.bf16.msra.mxu1 %v8039_v5  ;;  %v8168_v0 = vcombine.high %v472_v59, %v480_v60  ;;  %v495_v2 = vld [vmem:[%s13316_s1 + $0x840] sm:$0xff]  ;;  %v488_v3 = vld [vmem:[%s13316_s1 + $0x808] sm:$0xff]  ;;  %v8165_v5 = vcombine.low %v471_v56, %v479_v58 }
  0x2f   : > { %3403 = vmatprep.subr.bf16.mxu0 %v8054_v6  ;;  %3485 = vmatprep.subr.bf16.mxu1 %v8056_v7  ;;  %v496_v4 = vld [vmem:[%s13316_s1 + $0x848] sm:$0xff]  ;;  %v223_v6 = vld [vmem:[%s10101_s13] sm:$0xff]  ;;  %v8167_v7 = vcombine.low %v472_v59, %v480_v60  ;;  %v8182_v8 = vcombine.high %v487_v1, %v495_v2  ;;  %v8181_v16 = vcombine.low %v487_v1, %v495_v2 }
  0x30   : > { %v8184_v9 = vcombine.high %v488_v3, %v496_v4  ;;  %v503_v10 = vld [vmem:[%s13316_s1 + $0x880] sm:$0xff]  ;;  %v8183_v17 = vcombine.low %v488_v3, %v496_v4  ;;  %v544_v32 = vld [vmem:[%s13316_s1 + $0x9c8] sm:$0xff] }
  0x31   : > { %v511_v11 = vld [vmem:[%s13316_s1 + $0x8c0] sm:$0xff]  ;;  %v560_v40 = vld [vmem:[%s13316_s1 + $0xa48] sm:$0xff] }
  0x32   : > { %3404 = vmatpush1.bf16.msra.mxu0 %v8053_v12  ;;  %3486 = vmatpush1.bf16.msra.mxu1 %v8055_v13  ;;  %v10241_v12 = vpack.c.bf16 %v223_v6, %v223_v6  ;;  %v504_v13 = vld [vmem:[%s13316_s1 + $0x888] sm:$0xff]  ;;  %v8198_v18 = vcombine.high %v503_v10, %v511_v11  ;;  %v519_v19 = vld [vmem:[%s13316_s1 + $0x900] sm:$0xff]  ;;  %v8197_v25 = vcombine.low %v503_v10, %v511_v11 }
  0x33   : > { %3405 = vmatprep.subr.bf16.mxu0 %v8070_v14  ;;  %3487 = vmatprep.subr.bf16.mxu1 %v8072_v15  ;;  %v512_v14 = vld [vmem:[%s13316_s1 + $0x8c8] sm:$0xff]  ;;  %v226_v15 = vld [vmem:[%s10101_s13 + $0x18] sm:$0xff]  ;;  %v623_v6 = vld [vmem:[%s13316_s1 + $0xc40] sm:$0xff] }
  0x34   : > { %v10262_v24 = vpack.c.bf16 %v226_v15, %v226_v15  ;;  %v8199_v26 = vcombine.low %v504_v13, %v512_v14  ;;  %v576_v48 = vld [vmem:[%s13316_s1 + $0xac8] sm:$0xff]  ;;  %v639_v15 = vld [vmem:[%s13316_s1 + $0xcc0] sm:$0xff] }
  0x35   : > { %v592_v56 = vld [vmem:[%s13316_s1 + $0xb48] sm:$0xff] }
  0x36   : > { %3406 = vmatpush1.bf16.msra.mxu0 %v8069_v20  ;;  %3488 = vmatpush1.bf16.msra.mxu1 %v8071_v21  ;;  %v527_v20 = vld [vmem:[%s13316_s1 + $0x940] sm:$0xff]  ;;  %v8200_v21 = vcombine.high %v504_v13, %v512_v14  ;;  %v608_v1 = vld [vmem:[%s13316_s1 + $0xbc8] sm:$0xff] }
  0x37   : > { %3407 = vmatprep.subr.bf16.mxu0 %v8086_v22  ;;  %3489 = vmatprep.subr.bf16.mxu1 %v8088_v23  ;;  %v520_v22 = vld [vmem:[%s13316_s1 + $0x908] sm:$0xff]  ;;  %v8214_v27 = vcombine.high %v519_v19, %v527_v20  ;;  %v8213_v33 = vcombine.low %v519_v19, %v527_v20  ;;  %v631_v14 = vld [vmem:[%s13316_s1 + $0xc80] sm:$0xff] }
  0x38   : > { %v528_v23 = vld [vmem:[%s13316_s1 + $0x948] sm:$0xff] }
  0x39   : > { %v8215_v34 = vcombine.low %v520_v22, %v528_v23 }
  0x3a   : > { %3408 = vmatpush1.bf16.msra.mxu0 %v8085_v28  ;;  %3490 = vmatpush1.bf16.msra.mxu1 %v8087_v29  ;;  %v535_v28 = vld [vmem:[%s13316_s1 + $0x980] sm:$0xff] }
  0x3b   : > { %3409 = vmatprep.subr.bf16.mxu0 %v8102_v30  ;;  %3491 = vmatprep.subr.bf16.mxu1 %v8104_v31  ;;  %v543_v29 = vld [vmem:[%s13316_s1 + $0x9c0] sm:$0xff]  ;;  %v536_v30 = vld [vmem:[%s13316_s1 + $0x988] sm:$0xff]  ;;  %v8216_v31 = vcombine.high %v520_v22, %v528_v23 }
  0x3c   : > { %v8230_v35 = vcombine.high %v535_v28, %v543_v29  ;;  %v8229_v41 = vcombine.low %v535_v28, %v543_v29  ;;  %v8231_v42 = vcombine.low %v536_v30, %v544_v32  ;;  %v647_v22 = vld [vmem:[%s13316_s1 + $0xd00] sm:$0xff]  ;;  %v8325_v28 = vcombine.low %v631_v14, %v639_v15 }
  0x3d   : > { %v655_v23 = vld [vmem:[%s13316_s1 + $0xd40] sm:$0xff] }
  0x3e   : > { %3410 = vmatpush1.bf16.msra.mxu0 %v8101_v36  ;;  %3492 = vmatpush1.bf16.msra.mxu1 %v8103_v37  ;;  %v551_v36 = vld [vmem:[%s13316_s1 + $0xa00] sm:$0xff] }
  0x3f   : > { %3411 = vmatprep.subr.bf16.mxu0 %v8118_v38  ;;  %3493 = vmatprep.subr.bf16.mxu1 %v8120_v39  ;;  %v559_v37 = vld [vmem:[%s13316_s1 + $0xa40] sm:$0xff]  ;;  %v552_v38 = vld [vmem:[%s13316_s1 + $0xa08] sm:$0xff]  ;;  %v8232_v39 = vcombine.high %v536_v30, %v544_v32  ;;  %v8342_v30 = vcombine.high %v647_v22, %v655_v23 }
  0x40   : > { %v8246_v43 = vcombine.high %v551_v36, %v559_v37  ;;  %v8245_v49 = vcombine.low %v551_v36, %v559_v37  ;;  %v8247_v50 = vcombine.low %v552_v38, %v560_v40  ;;  %v671_v32 = vld [vmem:[%s13316_s1 + $0xdc0] sm:$0xff]  ;;  %v8341_v36 = vcombine.low %v647_v22, %v655_v23  ;;  %v258_v22 = vld [vmem:[%s13316_s1 + $0xd8] sm:$0xff] }
  0x42   : > { %3412 = vmatpush1.bf16.msra.mxu0 %v8117_v44  ;;  %3494 = vmatpush1.bf16.msra.mxu1 %v8119_v45  ;;  %v567_v44 = vld [vmem:[%s13316_s1 + $0xa80] sm:$0xff] }
  0x43   : > { %3413 = vmatprep.subr.bf16.mxu0 %v8134_v46  ;;  %3495 = vmatprep.subr.bf16.mxu1 %v8136_v47  ;;  %v575_v45 = vld [vmem:[%s13316_s1 + $0xac0] sm:$0xff]  ;;  %v568_v46 = vld [vmem:[%s13316_s1 + $0xa88] sm:$0xff]  ;;  %v8248_v47 = vcombine.high %v552_v38, %v560_v40 }
  0x44   : > { %v8262_v51 = vcombine.high %v567_v44, %v575_v45  ;;  %v8261_v58 = vcombine.low %v567_v44, %v575_v45  ;;  %v8263_v59 = vcombine.low %v568_v46, %v576_v48  ;;  %v687_v40 = vld [vmem:[%s13316_s1 + $0xe40] sm:$0xff] }
  0x46   : > { %3414 = vmatpush1.bf16.msra.mxu0 %v8133_v52  ;;  %3496 = vmatpush1.bf16.msra.mxu1 %v8135_v53  ;;  %v583_v52 = vld [vmem:[%s13316_s1 + $0xb00] sm:$0xff] }
  0x47   : > { %3415 = vmatprep.subr.bf16.mxu0 %v8150_v54  ;;  %3497 = vmatprep.subr.bf16.mxu1 %v8152_v55  ;;  %v591_v53 = vld [vmem:[%s13316_s1 + $0xb40] sm:$0xff]  ;;  %v584_v54 = vld [vmem:[%s13316_s1 + $0xb08] sm:$0xff]  ;;  %v8264_v55 = vcombine.high %v568_v46, %v576_v48 }
  0x48   : > { %v8278_v60 = vcombine.high %v583_v52, %v591_v53  ;;  %v8277_v2 = vcombine.low %v583_v52, %v591_v53  ;;  %v8279_v3 = vcombine.low %v584_v54, %v592_v56  ;;  %v703_v48 = vld [vmem:[%s13316_s1 + $0xec0] sm:$0xff] }
  0x4a   : > { %3416 = vmatpush1.bf16.msra.mxu0 %v8149_v61  ;;  %3498 = vmatpush1.bf16.msra.mxu1 %v8151_v62  ;;  %v599_v61 = vld [vmem:[%s13316_s1 + $0xb80] sm:$0xff] }
  0x4b   : > { %3417 = vmatprep.subr.bf16.mxu0 %v8166_v63  ;;  %3499 = vmatprep.subr.bf16.mxu1 %v8168_v0  ;;  %v607_v62 = vld [vmem:[%s13316_s1 + $0xbc0] sm:$0xff]  ;;  %v600_v63 = vld [vmem:[%s13316_s1 + $0xb88] sm:$0xff]  ;;  %v8280_v0 = vcombine.high %v584_v54, %v592_v56 }
  0x4c   : > { %v8294_v4 = vcombine.high %v599_v61, %v607_v62  ;;  %v8293_v10 = vcombine.low %v599_v61, %v607_v62  ;;  %v8295_v11 = vcombine.low %v600_v63, %v608_v1  ;;  %v719_v56 = vld [vmem:[%s13316_s1 + $0xf40] sm:$0xff] }
  0x4e   : > { %3418 = vmatpush1.bf16.msra.mxu0 %v8165_v5  ;;  %3500 = vmatpush1.bf16.msra.mxu1 %v8167_v7  ;;  %v615_v5 = vld [vmem:[%s13316_s1 + $0xc00] sm:$0xff]  ;;  %v616_v7 = vld [vmem:[%s13316_s1 + $0xc08] sm:$0xff] }
  0x4f   : > { %3428 = vmatprep.subr.bf16.mxu0 %v8182_v8  ;;  %3510 = vmatprep.subr.bf16.mxu1 %v8184_v9  ;;  %v8296_v8 = vcombine.high %v600_v63, %v608_v1  ;;  %v624_v9 = vld [vmem:[%s13316_s1 + $0xc48] sm:$0xff]  ;;  %v8310_v13 = vcombine.high %v615_v5, %v623_v6  ;;  %v8309_v19 = vcombine.low %v615_v5, %v623_v6  ;;  %v735_v1 = vld [vmem:[%s13316_s1 + $0xfc0] sm:$0xff] }
  0x50   : > { %v8311_v20 = vcombine.low %v616_v7, %v624_v9 }
  0x51   : > { %3420 = vmatmul.mubr.bf16.vlgmr.msra.gmra.mrb[0].mxu0 %v10241_v12  ;;  %3502 = vmatmul.mubr.bf16.vlgmr.msra.gmra.mrb[0].mxu1 %v10241_v12 }
  0x52   : > { %3429 = vmatpush1.bf16.msra.mxu0 %v8181_v16  ;;  %3511 = vmatpush1.bf16.msra.mxu1 %v8183_v17  ;;  %v632_v16 = vld [vmem:[%s13316_s1 + $0xc88] sm:$0xff]  ;;  %v8312_v17 = vcombine.high %v616_v7, %v624_v9  ;;  %v241_v9 = vld [vmem:[%s13316_s1 + $0x50] sm:$0xff] }
  0x53   : > { %3430 = vmatprep.subr.bf16.mxu0 %v8198_v18  ;;  %3512 = vmatprep.subr.bf16.mxu1 %v8200_v21  ;;  %v640_v18 = vld [vmem:[%s13316_s1 + $0xcc8] sm:$0xff]  ;;  %v8326_v21 = vcombine.high %v631_v14, %v639_v15  ;;  %v242_v14 = vld [vmem:[%s13316_s1 + $0x58] sm:$0xff] }
  0x54   : > { %3460 = vmatprep.mubr.bf16.mxu0 %v10262_v24  ;;  %3542 = vmatprep.mubr.bf16.mxu1 %v10262_v24  ;;  %v8327_v29 = vcombine.low %v632_v16, %v640_v18 }
  0x56   : > { %3431 = vmatpush1.bf16.msra.mxu0 %v8197_v25  ;;  %3513 = vmatpush1.bf16.msra.mxu1 %v8199_v26  ;;  %v648_v25 = vld [vmem:[%s13316_s1 + $0xd08] sm:$0xff]  ;;  %v8328_v26 = vcombine.high %v632_v16, %v640_v18  ;;  %v249_v18 = vld [vmem:[%s13316_s1 + $0x90] sm:$0xff] }
  0x57   : > { %3432 = vmatprep.subr.bf16.mxu0 %v8214_v27  ;;  %3514 = vmatprep.subr.bf16.mxu1 %v8216_v31  ;;  %v656_v27 = vld [vmem:[%s13316_s1 + $0xd48] sm:$0xff]  ;;  %v663_v31 = vld [vmem:[%s13316_s1 + $0xd80] sm:$0xff] }
  0x58   : > { %v8343_v37 = vcombine.low %v648_v25, %v656_v27  ;;  %v8358_v38 = vcombine.high %v663_v31, %v671_v32  ;;  %v8357_v44 = vcombine.low %v663_v31, %v671_v32  ;;  %v274_v32 = vld [vmem:[%s13316_s1 + $0x158] sm:$0xff] }
  0x5a   : > { %3433 = vmatpush1.bf16.msra.mxu0 %v8213_v33  ;;  %3515 = vmatpush1.bf16.msra.mxu1 %v8215_v34  ;;  %v664_v33 = vld [vmem:[%s13316_s1 + $0xd88] sm:$0xff]  ;;  %v8344_v34 = vcombine.high %v648_v25, %v656_v27 }
  0x5b   : > { %3434 = vmatprep.subr.bf16.mxu0 %v8230_v35  ;;  %3516 = vmatprep.subr.bf16.mxu1 %v8232_v39  ;;  %v672_v35 = vld [vmem:[%s13316_s1 + $0xdc8] sm:$0xff]  ;;  %v679_v39 = vld [vmem:[%s13316_s1 + $0xe00] sm:$0xff] }
  0x5c   : > { %v8359_v45 = vcombine.low %v664_v33, %v672_v35  ;;  %v8374_v46 = vcombine.high %v679_v39, %v687_v40  ;;  %v8373_v52 = vcombine.low %v679_v39, %v687_v40  ;;  %v290_v40 = vld [vmem:[%s13316_s1 + $0x1d8] sm:$0xff] }
  0x5e   : > { %3435 = vmatpush1.bf16.msra.mxu0 %v8229_v41  ;;  %3517 = vmatpush1.bf16.msra.mxu1 %v8231_v42  ;;  %v680_v41 = vld [vmem:[%s13316_s1 + $0xe08] sm:$0xff]  ;;  %v8360_v42 = vcombine.high %v664_v33, %v672_v35 }
  0x5f   : > { %3436 = vmatprep.subr.bf16.mxu0 %v8246_v43  ;;  %3518 = vmatprep.subr.bf16.mxu1 %v8248_v47  ;;  %v688_v43 = vld [vmem:[%s13316_s1 + $0xe48] sm:$0xff]  ;;  %v695_v47 = vld [vmem:[%s13316_s1 + $0xe80] sm:$0xff] }
  0x60   : > { %v8375_v53 = vcombine.low %v680_v41, %v688_v43  ;;  %v8390_v54 = vcombine.high %v695_v47, %v703_v48  ;;  %v8389_v61 = vcombine.low %v695_v47, %v703_v48  ;;  %v306_v48 = vld [vmem:[%s13316_s1 + $0x258] sm:$0xff] }
  0x62   : > { %3437 = vmatpush1.bf16.msra.mxu0 %v8245_v49  ;;  %3519 = vmatpush1.bf16.msra.mxu1 %v8247_v50  ;;  %v696_v49 = vld [vmem:[%s13316_s1 + $0xe88] sm:$0xff]  ;;  %v8376_v50 = vcombine.high %v680_v41, %v688_v43 }
  0x63   : > { %3438 = vmatprep.subr.bf16.mxu0 %v8262_v51  ;;  %3520 = vmatprep.subr.bf16.mxu1 %v8264_v55  ;;  %v704_v51 = vld [vmem:[%s13316_s1 + $0xec8] sm:$0xff]  ;;  %v711_v55 = vld [vmem:[%s13316_s1 + $0xf00] sm:$0xff] }
  0x64   : > { %v8391_v62 = vcombine.low %v696_v49, %v704_v51  ;;  %v8406_v63 = vcombine.high %v711_v55, %v719_v56  ;;  %v8405_v5 = vcombine.low %v711_v55, %v719_v56  ;;  %v322_v56 = vld [vmem:[%s13316_s1 + $0x2d8] sm:$0xff] }
  0x66   : > { %3439 = vmatpush1.bf16.msra.mxu0 %v8261_v58  ;;  %3521 = vmatpush1.bf16.msra.mxu1 %v8263_v59  ;;  %v712_v58 = vld [vmem:[%s13316_s1 + $0xf08] sm:$0xff]  ;;  %v8392_v59 = vcombine.high %v696_v49, %v704_v51 }
  0x67   : > { %3440 = vmatprep.subr.bf16.mxu0 %v8278_v60  ;;  %3522 = vmatprep.subr.bf16.mxu1 %v8280_v0  ;;  %v720_v60 = vld [vmem:[%s13316_s1 + $0xf48] sm:$0xff]  ;;  %v727_v0 = vld [vmem:[%s13316_s1 + $0xf80] sm:$0xff] }
  0x68   : > { %v8407_v6 = vcombine.low %v712_v58, %v720_v60  ;;  %v8422_v7 = vcombine.high %v727_v0, %v735_v1  ;;  %v8421_v15 = vcombine.low %v727_v0, %v735_v1  ;;  %v338_v1 = vld [vmem:[%s13316_s1 + $0x358] sm:$0xff] }
  0x6a   : > { %3441 = vmatpush1.bf16.msra.mxu0 %v8277_v2  ;;  %3523 = vmatpush1.bf16.msra.mxu1 %v8279_v3  ;;  %v728_v2 = vld [vmem:[%s13316_s1 + $0xf88] sm:$0xff]  ;;  %v8408_v3 = vcombine.high %v712_v58, %v720_v60 }
  0x6b   : > { %3442 = vmatprep.subr.bf16.mxu0 %v8294_v4  ;;  %3524 = vmatprep.subr.bf16.mxu1 %v8296_v8  ;;  %v736_v4 = vld [vmem:[%s13316_s1 + $0xfc8] sm:$0xff]  ;;  %v233_v8 = vld [vmem:[%s13316_s1 + $0x10] sm:$0xff] }
  0x6c   : > { %v8423_v16 = vcombine.low %v728_v2, %v736_v4  ;;  %v7929_v25 = vcombine.low %v233_v8, %v241_v9 }
  0x6e   : > { %3443 = vmatpush1.bf16.msra.mxu0 %v8293_v10  ;;  %3525 = vmatpush1.bf16.msra.mxu1 %v8295_v11  ;;  %v234_v10 = vld [vmem:[%s13316_s1 + $0x18] sm:$0xff]  ;;  %v8424_v11 = vcombine.high %v728_v2, %v736_v4 }
  0x6f   : > { %3444 = vmatprep.subr.bf16.mxu0 %v8310_v13  ;;  %3526 = vmatprep.subr.bf16.mxu1 %v8312_v17  ;;  %v225_v13 = vld [vmem:[%s10101_s13 + $0x10] sm:$0xff]  ;;  %v7930_v17 = vcombine.high %v233_v8, %v241_v9  ;;  %v354_v9 = vld [vmem:[%s13316_s1 + $0x3d8] sm:$0xff]  ;;  %s217_s13 = scalar_lea.vmem [#allocation2], %s7922_s25 }
  0x70   : > { %v10449_v23 = vpack.c.bf16 %v225_v13, %v225_v13  ;;  %s7859_s30 = sshll.u32 %s217_s13, 4  ;;  %s13275_s30 = int_to_ptr.vmem [resolvable:$true] %s7859_s30 }
  0x71   : > { %s9875_s9 = scalar_lea.vmem %s13275_s30, 512  ;;  %p9882_p0 = scmp.lt.s32.totalorder %s13275_s30, %s9880_s11 }
  0x72   : > { %3445 = vmatpush1.bf16.msra.mxu0 %v8309_v19  ;;  %3527 = vmatpush1.bf16.msra.mxu1 %v8311_v20  ;;  %v257_v19 = vld [vmem:[%s13316_s1 + $0xd0] sm:$0xff]  ;;  %v250_v20 = vld [vmem:[%s13316_s1 + $0x98] sm:$0xff]  ;;  %p9876_p11 = scmp.ne.s32.totalorder %s13275_s30, %s9875_s9  ;;  %p9883_p1 = scmp.lt.s32.totalorder %s9881_s12, %s9875_s9 }
  0x73   : > { %3446 = vmatprep.subr.bf16.mxu0 %v8326_v21  ;;  %3528 = vmatprep.subr.bf16.mxu1 %v8328_v26  ;;  %v7932_v21 = vcombine.high %v234_v10, %v242_v14  ;;  %v7931_v26 = vcombine.low %v234_v10, %v242_v14  ;;  %v7946_v27 = vcombine.high %v249_v18, %v257_v19  ;;  %v361_v14 = vld [vmem:[%s13316_s1 + $0x410] sm:$0xff] }
  0x74   : > { %v7948_v31 = vcombine.high %v250_v20, %v258_v22  ;;  %v7945_v33 = vcombine.low %v249_v18, %v257_v19  ;;  %v370_v18 = vld [vmem:[%s13316_s1 + $0x458] sm:$0xff]  ;;  %p9877_p12 = pnand %p9876_p11, %p10008_p5  ;;  %p9884_p2 = por %p9883_p1, %p9882_p0 }
  0x76   : > { %3447 = vmatpush1.bf16.msra.mxu0 %v8325_v28  ;;  %3529 = vmatpush1.bf16.msra.mxu1 %v8327_v29  ;;  %v265_v28 = vld [vmem:[%s13316_s1 + $0x110] sm:$0xff]  ;;  %p9878_p13 = pneg %p9877_p12 }
  0x77   : > { %3448 = vmatprep.subr.bf16.mxu0 %v8342_v30  ;;  %3530 = vmatprep.subr.bf16.mxu1 %v8344_v34  ;;  %v273_v29 = vld [vmem:[%s13316_s1 + $0x150] sm:$0xff]  ;;  %v266_v30 = vld [vmem:[%s13316_s1 + $0x118] sm:$0xff]  ;;  %v7947_v34 = vcombine.low %v250_v20, %v258_v22 }
  0x78   : > { %v7962_v35 = vcombine.high %v265_v28, %v273_v29  ;;  %v7964_v39 = vcombine.high %v266_v30, %v274_v32  ;;  %v7961_v41 = vcombine.low %v265_v28, %v273_v29  ;;  %v377_v22 = vld [vmem:[%s13316_s1 + $0x490] sm:$0xff]  ;;  %v386_v28 = vld [vmem:[%s13316_s1 + $0x4d8] sm:$0xff]  ;;  %p9885_p3 = pnand %p9884_p2, %p9878_p13 }
  0x7a   : > { %3449 = vmatpush1.bf16.msra.mxu0 %v8341_v36  ;;  %3531 = vmatpush1.bf16.msra.mxu1 %v8343_v37  ;;  %v281_v36 = vld [vmem:[%s13316_s1 + $0x190] sm:$0xff] }
  0x7b   : > { %3450 = vmatprep.subr.bf16.mxu0 %v8358_v38  ;;  %3532 = vmatprep.subr.bf16.mxu1 %v8360_v42  ;;  %v289_v37 = vld [vmem:[%s13316_s1 + $0x1d0] sm:$0xff]  ;;  %v282_v38 = vld [vmem:[%s13316_s1 + $0x198] sm:$0xff]  ;;  %v7963_v42 = vcombine.low %v266_v30, %v274_v32 }
  0x7c   : > { %v7978_v43 = vcombine.high %v281_v36, %v289_v37  ;;  %v7980_v47 = vcombine.high %v282_v38, %v290_v40  ;;  %v7977_v49 = vcombine.low %v281_v36, %v289_v37  ;;  %v393_v32 = vld [vmem:[%s13316_s1 + $0x510] sm:$0xff]  ;;  %v402_v36 = vld [vmem:[%s13316_s1 + $0x558] sm:$0xff] }
  0x7e   : > { %3451 = vmatpush1.bf16.msra.mxu0 %v8357_v44  ;;  %3533 = vmatpush1.bf16.msra.mxu1 %v8359_v45  ;;  %v297_v44 = vld [vmem:[%s13316_s1 + $0x210] sm:$0xff] }
  0x7f   : > { %3452 = vmatprep.subr.bf16.mxu0 %v8374_v46  ;;  %3534 = vmatprep.subr.bf16.mxu1 %v8376_v50  ;;  %v305_v45 = vld [vmem:[%s13316_s1 + $0x250] sm:$0xff]  ;;  %v298_v46 = vld [vmem:[%s13316_s1 + $0x218] sm:$0xff]  ;;  %v7979_v50 = vcombine.low %v282_v38, %v290_v40 }
  0x80   : > { %v7994_v51 = vcombine.high %v297_v44, %v305_v45  ;;  %v7996_v55 = vcombine.high %v298_v46, %v306_v48  ;;  %v7993_v58 = vcombine.low %v297_v44, %v305_v45  ;;  %v409_v40 = vld [vmem:[%s13316_s1 + $0x590] sm:$0xff]  ;;  %v418_v44 = vld [vmem:[%s13316_s1 + $0x5d8] sm:$0xff] }
  0x82   : > { %3453 = vmatpush1.bf16.msra.mxu0 %v8373_v52  ;;  %3535 = vmatpush1.bf16.msra.mxu1 %v8375_v53  ;;  %v313_v52 = vld [vmem:[%s13316_s1 + $0x290] sm:$0xff] }
  0x83   : > { %3454 = vmatprep.subr.bf16.mxu0 %v8390_v54  ;;  %3536 = vmatprep.subr.bf16.mxu1 %v8392_v59  ;;  %v321_v53 = vld [vmem:[%s13316_s1 + $0x2d0] sm:$0xff]  ;;  %v314_v54 = vld [vmem:[%s13316_s1 + $0x298] sm:$0xff]  ;;  %v7995_v59 = vcombine.low %v298_v46, %v306_v48 }
  0x84   : > { %v8010_v60 = vcombine.high %v313_v52, %v321_v53  ;;  %v8012_v0 = vcombine.high %v314_v54, %v322_v56  ;;  %v8009_v2 = vcombine.low %v313_v52, %v321_v53  ;;  %v425_v48 = vld [vmem:[%s13316_s1 + $0x610] sm:$0xff]  ;;  %v434_v52 = vld [vmem:[%s13316_s1 + $0x658] sm:$0xff] }
  0x86   : > { %3455 = vmatpush1.bf16.msra.mxu0 %v8389_v61  ;;  %3537 = vmatpush1.bf16.msra.mxu1 %v8391_v62  ;;  %v329_v61 = vld [vmem:[%s13316_s1 + $0x310] sm:$0xff] }
  0x87   : > { %3456 = vmatprep.subr.bf16.mxu0 %v8406_v63  ;;  %3538 = vmatprep.subr.bf16.mxu1 %v8408_v3  ;;  %v337_v62 = vld [vmem:[%s13316_s1 + $0x350] sm:$0xff]  ;;  %v330_v63 = vld [vmem:[%s13316_s1 + $0x318] sm:$0xff]  ;;  %v8011_v3 = vcombine.low %v314_v54, %v322_v56 }
  0x88   : > { %v8026_v4 = vcombine.high %v329_v61, %v337_v62  ;;  %v8028_v8 = vcombine.high %v330_v63, %v338_v1  ;;  %v8025_v10 = vcombine.low %v329_v61, %v337_v62  ;;  %v441_v56 = vld [vmem:[%s13316_s1 + $0x690] sm:$0xff]  ;;  %v450_v61 = vld [vmem:[%s13316_s1 + $0x6d8] sm:$0xff] }
  0x8a   : > { %3457 = vmatpush1.bf16.msra.mxu0 %v8405_v5  ;;  %3539 = vmatpush1.bf16.msra.mxu1 %v8407_v6  ;;  %v345_v5 = vld [vmem:[%s13316_s1 + $0x390] sm:$0xff] }
  0x8b   : > { %3458 = vmatprep.subr.bf16.mxu0 %v8422_v7  ;;  %3540 = vmatprep.subr.bf16.mxu1 %v8424_v11  ;;  %v353_v6 = vld [vmem:[%s13316_s1 + $0x3d0] sm:$0xff]  ;;  %v346_v7 = vld [vmem:[%s13316_s1 + $0x398] sm:$0xff]  ;;  %v8027_v11 = vcombine.low %v330_v63, %v338_v1 }
  0x8c   : > { %v8042_v13 = vcombine.high %v345_v5, %v353_v6  ;;  %v8041_v19 = vcombine.low %v345_v5, %v353_v6  ;;  %v8043_v20 = vcombine.low %v346_v7, %v354_v9  ;;  %v457_v1 = vld [vmem:[%s13316_s1 + $0x710] sm:$0xff]  ;;  %v466_v5 = vld [vmem:[%s13316_s1 + $0x758] sm:$0xff] }
  0x8e   : > { %3459 = vmatpush1.bf16.msra.mxu0 %v8421_v15  ;;  %3541 = vmatpush1.bf16.msra.mxu1 %v8423_v16  ;;  %v369_v15 = vld [vmem:[%s13316_s1 + $0x450] sm:$0xff]  ;;  %v362_v16 = vld [vmem:[%s13316_s1 + $0x418] sm:$0xff] }
  0x8f   : > { %3551 = vmatprep.subr.bf16.mxu0 %v7930_v17  ;;  %3633 = vmatprep.subr.bf16.mxu1 %v7932_v21  ;;  %v8044_v17 = vcombine.high %v346_v7, %v354_v9  ;;  %v8058_v21 = vcombine.high %v361_v14, %v369_v15  ;;  %v8057_v29 = vcombine.low %v361_v14, %v369_v15  ;;  %v473_v9 = vld [vmem:[%s13316_s1 + $0x790] sm:$0xff]  ;;  %v482_v14 = vld [vmem:[%s13316_s1 + $0x7d8] sm:$0xff] }
  0x90   : > { %v8059_v30 = vcombine.low %v362_v16, %v370_v18 }
  0x91   : > { %3461 = vmatmul.mubr.bf16.vlgmr.msra.gmra.mrb[0].mxu0 %v10449_v23  ;;  %3543 = vmatmul.mubr.bf16.vlgmr.msra.gmra.mrb[0].mxu1 %v10449_v23 }
  0x92   : > { %3552 = vmatpush1.bf16.msra.mxu0 %v7929_v25  ;;  %3634 = vmatpush1.bf16.msra.mxu1 %v7931_v26  ;;  %v385_v25 = vld [vmem:[%s13316_s1 + $0x4d0] sm:$0xff]  ;;  %v378_v26 = vld [vmem:[%s13316_s1 + $0x498] sm:$0xff] }
  0x93   : > { %3553 = vmatprep.subr.bf16.mxu0 %v7946_v27  ;;  %3635 = vmatprep.subr.bf16.mxu1 %v7948_v31  ;;  %v8060_v27 = vcombine.high %v362_v16, %v370_v18  ;;  %v8074_v31 = vcombine.high %v377_v22, %v385_v25  ;;  %v8073_v37 = vcombine.low %v377_v22, %v385_v25  ;;  %v489_v18 = vld [vmem:[%s13316_s1 + $0x810] sm:$0xff]  ;;  %v498_v22 = vld [vmem:[%s13316_s1 + $0x858] sm:$0xff] }
  0x94   : > { %3583 = vmatprep.mubr.bf16.mxu0 %v10116_v57  ;;  %3665 = vmatprep.mubr.bf16.mxu1 %v10116_v57  ;;  %v8075_v38 = vcombine.low %v378_v26, %v386_v28 }
  0x96   : > { %3554 = vmatpush1.bf16.msra.mxu0 %v7945_v33  ;;  %3636 = vmatpush1.bf16.msra.mxu1 %v7947_v34  ;;  %v401_v33 = vld [vmem:[%s13316_s1 + $0x550] sm:$0xff]  ;;  %v394_v34 = vld [vmem:[%s13316_s1 + $0x518] sm:$0xff] }
  0x97   : > { %3555 = vmatprep.subr.bf16.mxu0 %v7962_v35  ;;  %3637 = vmatprep.subr.bf16.mxu1 %v7964_v39  ;;  %v8076_v35 = vcombine.high %v378_v26, %v386_v28  ;;  %v8090_v39 = vcombine.high %v393_v32, %v401_v33  ;;  %v8089_v45 = vcombine.low %v393_v32, %v401_v33  ;;  %v505_v28 = vld [vmem:[%s13316_s1 + $0x890] sm:$0xff]  ;;  %v514_v32 = vld [vmem:[%s13316_s1 + $0x8d8] sm:$0xff] }
  0x98   : > { %v8091_v46 = vcombine.low %v394_v34, %v402_v36 }
  0x9a   : > { %3556 = vmatpush1.bf16.msra.mxu0 %v7961_v41  ;;  %3638 = vmatpush1.bf16.msra.mxu1 %v7963_v42  ;;  %v417_v41 = vld [vmem:[%s13316_s1 + $0x5d0] sm:$0xff]  ;;  %v410_v42 = vld [vmem:[%s13316_s1 + $0x598] sm:$0xff] }
  0x9b   : > { %3557 = vmatprep.subr.bf16.mxu0 %v7978_v43  ;;  %3639 = vmatprep.subr.bf16.mxu1 %v7980_v47  ;;  %v8092_v43 = vcombine.high %v394_v34, %v402_v36  ;;  %v8106_v47 = vcombine.high %v409_v40, %v417_v41  ;;  %v8105_v53 = vcombine.low %v409_v40, %v417_v41  ;;  %v521_v36 = vld [vmem:[%s13316_s1 + $0x910] sm:$0xff]  ;;  %v530_v40 = vld [vmem:[%s13316_s1 + $0x958] sm:$0xff] }
  0x9c   : > { %v8107_v54 = vcombine.low %v410_v42, %v418_v44 }
  0x9e   : > { %3558 = vmatpush1.bf16.msra.mxu0 %v7977_v49  ;;  %3640 = vmatpush1.bf16.msra.mxu1 %v7979_v50  ;;  %v433_v49 = vld [vmem:[%s13316_s1 + $0x650] sm:$0xff]  ;;  %v426_v50 = vld [vmem:[%s13316_s1 + $0x618] sm:$0xff] }
  0x9f   : > { %3559 = vmatprep.subr.bf16.mxu0 %v7994_v51  ;;  %3641 = vmatprep.subr.bf16.mxu1 %v7996_v55  ;;  %v8108_v51 = vcombine.high %v410_v42, %v418_v44  ;;  %v8122_v55 = vcombine.high %v425_v48, %v433_v49  ;;  %v8121_v62 = vcombine.low %v425_v48, %v433_v49  ;;  %v537_v44 = vld [vmem:[%s13316_s1 + $0x990] sm:$0xff]  ;;  %v546_v48 = vld [vmem:[%s13316_s1 + $0x9d8] sm:$0xff] }
  0xa0   : > { %v8123_v63 = vcombine.low %v426_v50, %v434_v52 }
  0xa2   : > { %3560 = vmatpush1.bf16.msra.mxu0 %v7993_v58  ;;  %3642 = vmatpush1.bf16.msra.mxu1 %v7995_v59  ;;  %v449_v58 = vld [vmem:[%s13316_s1 + $0x6d0] sm:$0xff]  ;;  %v442_v59 = vld [vmem:[%s13316_s1 + $0x698] sm:$0xff] }
  0xa3   : > { %3561 = vmatprep.subr.bf16.mxu0 %v8010_v60  ;;  %3643 = vmatprep.subr.bf16.mxu1 %v8012_v0  ;;  %v8124_v60 = vcombine.high %v426_v50, %v434_v52  ;;  %v8138_v0 = vcombine.high %v441_v56, %v449_v58  ;;  %v8137_v6 = vcombine.low %v441_v56, %v449_v58  ;;  %v553_v52 = vld [vmem:[%s13316_s1 + $0xa10] sm:$0xff]  ;;  %v562_v56 = vld [vmem:[%s13316_s1 + $0xa58] sm:$0xff] }
  0xa4   : > { %v8139_v7 = vcombine.low %v442_v59, %v450_v61 }
  0xa6   : > { %3562 = vmatpush1.bf16.msra.mxu0 %v8009_v2  ;;  %3644 = vmatpush1.bf16.msra.mxu1 %v8011_v3  ;;  %v465_v2 = vld [vmem:[%s13316_s1 + $0x750] sm:$0xff]  ;;  %v458_v3 = vld [vmem:[%s13316_s1 + $0x718] sm:$0xff] }
  0xa7   : > { %3563 = vmatprep.subr.bf16.mxu0 %v8026_v4  ;;  %3645 = vmatprep.subr.bf16.mxu1 %v8028_v8  ;;  %v8140_v4 = vcombine.high %v442_v59, %v450_v61  ;;  %v8154_v8 = vcombine.high %v457_v1, %v465_v2  ;;  %v8153_v15 = vcombine.low %v457_v1, %v465_v2  ;;  %v569_v61 = vld [vmem:[%s13316_s1 + $0xa90] sm:$0xff]  ;;  %v578_v1 = vld [vmem:[%s13316_s1 + $0xad8] sm:$0xff] }
  0xa8   : > { %v8155_v16 = vcombine.low %v458_v3, %v466_v5 }
  0xaa   : > { %3564 = vmatpush1.bf16.msra.mxu0 %v8025_v10  ;;  %3646 = vmatpush1.bf16.msra.mxu1 %v8027_v11  ;;  %v481_v10 = vld [vmem:[%s13316_s1 + $0x7d0] sm:$0xff]  ;;  %v474_v11 = vld [vmem:[%s13316_s1 + $0x798] sm:$0xff] }
  0xab   : > { %3565 = vmatprep.subr.bf16.mxu0 %v8042_v13  ;;  %3647 = vmatprep.subr.bf16.mxu1 %v8044_v17  ;;  %v8156_v13 = vcombine.high %v458_v3, %v466_v5  ;;  %v8170_v17 = vcombine.high %v473_v9, %v481_v10  ;;  %v8169_v25 = vcombine.low %v473_v9, %v481_v10  ;;  %v585_v5 = vld [vmem:[%s13316_s1 + $0xb10] sm:$0xff]  ;;  %v594_v9 = vld [vmem:[%s13316_s1 + $0xb58] sm:$0xff] }
  0xac   : > { %v8171_v26 = vcombine.low %v474_v11, %v482_v14 }
  0xae   : > { %3566 = vmatpush1.bf16.msra.mxu0 %v8041_v19  ;;  %3648 = vmatpush1.bf16.msra.mxu1 %v8043_v20  ;;  %v497_v19 = vld [vmem:[%s13316_s1 + $0x850] sm:$0xff]  ;;  %v490_v20 = vld [vmem:[%s13316_s1 + $0x818] sm:$0xff] }
  0xaf   : > { %3567 = vmatprep.subr.bf16.mxu0 %v8058_v21  ;;  %3649 = vmatprep.subr.bf16.mxu1 %v8060_v27  ;;  %v8172_v21 = vcombine.high %v474_v11, %v482_v14  ;;  %v8186_v27 = vcombine.high %v489_v18, %v497_v19  ;;  %v8185_v33 = vcombine.low %v489_v18, %v497_v19  ;;  %v601_v14 = vld [vmem:[%s13316_s1 + $0xb90] sm:$0xff]  ;;  %v610_v18 = vld [vmem:[%s13316_s1 + $0xbd8] sm:$0xff] }
  0xb0   : > { %v8187_v34 = vcombine.low %v490_v20, %v498_v22 }
  0xb2   : > { %3568 = vmatpush1.bf16.msra.mxu0 %v8057_v29  ;;  %3650 = vmatpush1.bf16.msra.mxu1 %v8059_v30  ;;  %v513_v29 = vld [vmem:[%s13316_s1 + $0x8d0] sm:$0xff]  ;;  %v506_v30 = vld [vmem:[%s13316_s1 + $0x898] sm:$0xff] }
  0xb3   : > { %3569 = vmatprep.subr.bf16.mxu0 %v8074_v31  ;;  %3651 = vmatprep.subr.bf16.mxu1 %v8076_v35  ;;  %v8188_v31 = vcombine.high %v490_v20, %v498_v22  ;;  %v8202_v35 = vcombine.high %v505_v28, %v513_v29  ;;  %v8201_v41 = vcombine.low %v505_v28, %v513_v29  ;;  %v617_v22 = vld [vmem:[%s13316_s1 + $0xc10] sm:$0xff]  ;;  %v626_v28 = vld [vmem:[%s13316_s1 + $0xc58] sm:$0xff] }
  0xb4   : > { %v8203_v42 = vcombine.low %v506_v30, %v514_v32 }
  0xb6   : > { %3570 = vmatpush1.bf16.msra.mxu0 %v8073_v37  ;;  %3652 = vmatpush1.bf16.msra.mxu1 %v8075_v38  ;;  %v529_v37 = vld [vmem:[%s13316_s1 + $0x950] sm:$0xff]  ;;  %v522_v38 = vld [vmem:[%s13316_s1 + $0x918] sm:$0xff] }
  0xb7   : > { %3571 = vmatprep.subr.bf16.mxu0 %v8090_v39  ;;  %3653 = vmatprep.subr.bf16.mxu1 %v8092_v43  ;;  %v8204_v39 = vcombine.high %v506_v30, %v514_v32  ;;  %v8218_v43 = vcombine.high %v521_v36, %v529_v37  ;;  %v8217_v49 = vcombine.low %v521_v36, %v529_v37  ;;  %v633_v32 = vld [vmem:[%s13316_s1 + $0xc90] sm:$0xff]  ;;  %v642_v36 = vld [vmem:[%s13316_s1 + $0xcd8] sm:$0xff] }
  0xb8   : > { %v8219_v50 = vcombine.low %v522_v38, %v530_v40 }
  0xba   : > { %3572 = vmatpush1.bf16.msra.mxu0 %v8089_v45  ;;  %3654 = vmatpush1.bf16.msra.mxu1 %v8091_v46  ;;  %v545_v45 = vld [vmem:[%s13316_s1 + $0x9d0] sm:$0xff]  ;;  %v538_v46 = vld [vmem:[%s13316_s1 + $0x998] sm:$0xff] }
  0xbb   : > { %3573 = vmatprep.subr.bf16.mxu0 %v8106_v47  ;;  %3655 = vmatprep.subr.bf16.mxu1 %v8108_v51  ;;  %v8220_v47 = vcombine.high %v522_v38, %v530_v40  ;;  %v8234_v51 = vcombine.high %v537_v44, %v545_v45  ;;  %v8233_v58 = vcombine.low %v537_v44, %v545_v45  ;;  %v649_v40 = vld [vmem:[%s13316_s1 + $0xd10] sm:$0xff]  ;;  %v658_v44 = vld [vmem:[%s13316_s1 + $0xd58] sm:$0xff] }
  0xbc   : > { %v8235_v59 = vcombine.low %v538_v46, %v546_v48 }
  0xbe   : > { %3574 = vmatpush1.bf16.msra.mxu0 %v8105_v53  ;;  %3656 = vmatpush1.bf16.msra.mxu1 %v8107_v54  ;;  %v561_v53 = vld [vmem:[%s13316_s1 + $0xa50] sm:$0xff]  ;;  %v554_v54 = vld [vmem:[%s13316_s1 + $0xa18] sm:$0xff] }
  0xbf   : > { %3575 = vmatprep.subr.bf16.mxu0 %v8122_v55  ;;  %3657 = vmatprep.subr.bf16.mxu1 %v8124_v60  ;;  %v8236_v55 = vcombine.high %v538_v46, %v546_v48  ;;  %v8250_v60 = vcombine.high %v553_v52, %v561_v53  ;;  %v8249_v2 = vcombine.low %v553_v52, %v561_v53  ;;  %v665_v48 = vld [vmem:[%s13316_s1 + $0xd90] sm:$0xff]  ;;  %v674_v52 = vld [vmem:[%s13316_s1 + $0xdd8] sm:$0xff] }
  0xc0   : > { %v8251_v3 = vcombine.low %v554_v54, %v562_v56 }
  0xc2   : > { %3576 = vmatpush1.bf16.msra.mxu0 %v8121_v62  ;;  %3658 = vmatpush1.bf16.msra.mxu1 %v8123_v63  ;;  %v577_v62 = vld [vmem:[%s13316_s1 + $0xad0] sm:$0xff]  ;;  %v570_v63 = vld [vmem:[%s13316_s1 + $0xa98] sm:$0xff] }
  0xc3   : > { %3577 = vmatprep.subr.bf16.mxu0 %v8138_v0  ;;  %3659 = vmatprep.subr.bf16.mxu1 %v8140_v4  ;;  %v8252_v0 = vcombine.high %v554_v54, %v562_v56  ;;  %v8266_v4 = vcombine.high %v569_v61, %v577_v62  ;;  %v8265_v10 = vcombine.low %v569_v61, %v577_v62  ;;  %v681_v56 = vld [vmem:[%s13316_s1 + $0xe10] sm:$0xff]  ;;  %v690_v61 = vld [vmem:[%s13316_s1 + $0xe58] sm:$0xff] }
  0xc4   : > { %v8267_v11 = vcombine.low %v570_v63, %v578_v1 }
  0xc6   : > { %3578 = vmatpush1.bf16.msra.mxu0 %v8137_v6  ;;  %3660 = vmatpush1.bf16.msra.mxu1 %v8139_v7  ;;  %v593_v6 = vld [vmem:[%s13316_s1 + $0xb50] sm:$0xff]  ;;  %v586_v7 = vld [vmem:[%s13316_s1 + $0xb18] sm:$0xff] }
  0xc7   : > { %3579 = vmatprep.subr.bf16.mxu0 %v8154_v8  ;;  %3661 = vmatprep.subr.bf16.mxu1 %v8156_v13  ;;  %v8268_v8 = vcombine.high %v570_v63, %v578_v1  ;;  %v8282_v13 = vcombine.high %v585_v5, %v593_v6  ;;  %v8281_v19 = vcombine.low %v585_v5, %v593_v6  ;;  %v697_v1 = vld [vmem:[%s13316_s1 + $0xe90] sm:$0xff]  ;;  %v706_v5 = vld [vmem:[%s13316_s1 + $0xed8] sm:$0xff] }
  0xc8   : > { %v8283_v20 = vcombine.low %v586_v7, %v594_v9 }
  0xca   : > { %3580 = vmatpush1.bf16.msra.mxu0 %v8153_v15  ;;  %3662 = vmatpush1.bf16.msra.mxu1 %v8155_v16  ;;  %v609_v15 = vld [vmem:[%s13316_s1 + $0xbd0] sm:$0xff]  ;;  %v8284_v16 = vcombine.high %v586_v7, %v594_v9 }
  0xcb   : > { %3581 = vmatprep.subr.bf16.mxu0 %v8170_v17  ;;  %3663 = vmatprep.subr.bf16.mxu1 %v8172_v21  ;;  %v602_v17 = vld [vmem:[%s13316_s1 + $0xb98] sm:$0xff]  ;;  %v8298_v21 = vcombine.high %v601_v14, %v609_v15  ;;  %v8297_v29 = vcombine.low %v601_v14, %v609_v15  ;;  %v713_v9 = vld [vmem:[%s13316_s1 + $0xf10] sm:$0xff] }
  0xcc   : > { %v8299_v30 = vcombine.low %v602_v17, %v610_v18  ;;  %v722_v14 = vld [vmem:[%s13316_s1 + $0xf58] sm:$0xff] }
  0xce   : > { %3582 = vmatpush1.bf16.msra.mxu0 %v8169_v25  ;;  %3664 = vmatpush1.bf16.msra.mxu1 %v8171_v26  ;;  %v625_v25 = vld [vmem:[%s13316_s1 + $0xc50] sm:$0xff]  ;;  %v618_v26 = vld [vmem:[%s13316_s1 + $0xc18] sm:$0xff] }
  0xcf   : > { %3592 = vmatprep.subr.bf16.mxu0 %v8186_v27  ;;  %3674 = vmatprep.subr.bf16.mxu1 %v8188_v31  ;;  %v8300_v27 = vcombine.high %v602_v17, %v610_v18  ;;  %v8314_v31 = vcombine.high %v617_v22, %v625_v25  ;;  %v8313_v37 = vcombine.low %v617_v22, %v625_v25  ;;  %v729_v18 = vld [vmem:[%s13316_s1 + $0xf90] sm:$0xff]  ;;  %v738_v22 = vld [vmem:[%s13316_s1 + $0xfd8] sm:$0xff] }
  0xd0   : > { %v8315_v38 = vcombine.low %v618_v26, %v626_v28 }
  0xd1   : > { %3584 = vmatmul.mubr.bf16.vlgmr.msra.gmra.mrb[4].mxu0 %v10241_v12  ;;  %3666 = vmatmul.mubr.bf16.vlgmr.msra.gmra.mrb[4].mxu1 %v10241_v12 }
  0xd2   : > { %3593 = vmatpush1.bf16.msra.mxu0 %v8185_v33  ;;  %3675 = vmatpush1.bf16.msra.mxu1 %v8187_v34  ;;  %v641_v33 = vld [vmem:[%s13316_s1 + $0xcd0] sm:$0xff]  ;;  %v634_v34 = vld [vmem:[%s13316_s1 + $0xc98] sm:$0xff] }
  0xd3   : > { %3594 = vmatprep.subr.bf16.mxu0 %v8202_v35  ;;  %3676 = vmatprep.subr.bf16.mxu1 %v8204_v39  ;;  %v8316_v35 = vcombine.high %v618_v26, %v626_v28  ;;  %v8330_v39 = vcombine.high %v633_v32, %v641_v33  ;;  %v8329_v45 = vcombine.low %v633_v32, %v641_v33  ;;  %v235_v28 = vld [vmem:[%s13316_s1 + $0x20] sm:$0xff]  ;;  %v244_v32 = vld [vmem:[%s13316_s1 + $0x68] sm:$0xff] }
  0xd4   : > { %3624 = vmatprep.mubr.bf16.mxu0 %v10262_v24  ;;  %3706 = vmatprep.mubr.bf16.mxu1 %v10262_v24  ;;  %v8331_v46 = vcombine.low %v634_v34, %v642_v36 }
  0xd6   : > { %3595 = vmatpush1.bf16.msra.mxu0 %v8201_v41  ;;  %3677 = vmatpush1.bf16.msra.mxu1 %v8203_v42  ;;  %v657_v41 = vld [vmem:[%s13316_s1 + $0xd50] sm:$0xff]  ;;  %v650_v42 = vld [vmem:[%s13316_s1 + $0xd18] sm:$0xff] }
  0xd7   : > { %3596 = vmatprep.subr.bf16.mxu0 %v8218_v43  ;;  %3678 = vmatprep.subr.bf16.mxu1 %v8220_v47  ;;  %v8332_v43 = vcombine.high %v634_v34, %v642_v36  ;;  %v8346_v47 = vcombine.high %v649_v40, %v657_v41  ;;  %v8345_v53 = vcombine.low %v649_v40, %v657_v41  ;;  %v251_v36 = vld [vmem:[%s13316_s1 + $0xa0] sm:$0xff]  ;;  %v260_v40 = vld [vmem:[%s13316_s1 + $0xe8] sm:$0xff] }
  0xd8   : > { %v8347_v54 = vcombine.low %v650_v42, %v658_v44 }
  0xda   : > { %3597 = vmatpush1.bf16.msra.mxu0 %v8217_v49  ;;  %3679 = vmatpush1.bf16.msra.mxu1 %v8219_v50  ;;  %v673_v49 = vld [vmem:[%s13316_s1 + $0xdd0] sm:$0xff]  ;;  %v666_v50 = vld [vmem:[%s13316_s1 + $0xd98] sm:$0xff] }
  0xdb   : > { %3598 = vmatprep.subr.bf16.mxu0 %v8234_v51  ;;  %3680 = vmatprep.subr.bf16.mxu1 %v8236_v55  ;;  %v8348_v51 = vcombine.high %v650_v42, %v658_v44  ;;  %v8362_v55 = vcombine.high %v665_v48, %v673_v49  ;;  %v8361_v62 = vcombine.low %v665_v48, %v673_v49  ;;  %v267_v44 = vld [vmem:[%s13316_s1 + $0x120] sm:$0xff]  ;;  %v276_v48 = vld [vmem:[%s13316_s1 + $0x168] sm:$0xff] }
  0xdc   : > { %v8363_v63 = vcombine.low %v666_v50, %v674_v52 }
  0xde   : > { %3599 = vmatpush1.bf16.msra.mxu0 %v8233_v58  ;;  %3681 = vmatpush1.bf16.msra.mxu1 %v8235_v59  ;;  %v689_v58 = vld [vmem:[%s13316_s1 + $0xe50] sm:$0xff]  ;;  %v682_v59 = vld [vmem:[%s13316_s1 + $0xe18] sm:$0xff] }
  0xdf   : > { %3600 = vmatprep.subr.bf16.mxu0 %v8250_v60  ;;  %3682 = vmatprep.subr.bf16.mxu1 %v8252_v0  ;;  %v8364_v60 = vcombine.high %v666_v50, %v674_v52  ;;  %v8378_v0 = vcombine.high %v681_v56, %v689_v58  ;;  %v8377_v6 = vcombine.low %v681_v56, %v689_v58  ;;  %v283_v52 = vld [vmem:[%s13316_s1 + $0x1a0] sm:$0xff]  ;;  %v292_v56 = vld [vmem:[%s13316_s1 + $0x1e8] sm:$0xff] }
  0xe0   : > { %v8379_v7 = vcombine.low %v682_v59, %v690_v61 }
  0xe2   : > { %3601 = vmatpush1.bf16.msra.mxu0 %v8249_v2  ;;  %3683 = vmatpush1.bf16.msra.mxu1 %v8251_v3  ;;  %v705_v2 = vld [vmem:[%s13316_s1 + $0xed0] sm:$0xff]  ;;  %v698_v3 = vld [vmem:[%s13316_s1 + $0xe98] sm:$0xff] }
  0xe3   : > { %3602 = vmatprep.subr.bf16.mxu0 %v8266_v4  ;;  %3684 = vmatprep.subr.bf16.mxu1 %v8268_v8  ;;  %v8380_v4 = vcombine.high %v682_v59, %v690_v61  ;;  %v8394_v8 = vcombine.high %v697_v1, %v705_v2  ;;  %v8393_v15 = vcombine.low %v697_v1, %v705_v2  ;;  %v299_v61 = vld [vmem:[%s13316_s1 + $0x220] sm:$0xff]  ;;  %v308_v1 = vld [vmem:[%s13316_s1 + $0x268] sm:$0xff] }
  0xe6   : > { %3603 = vmatpush1.bf16.msra.mxu0 %v8265_v10  ;;  %3685 = vmatpush1.bf16.msra.mxu1 %v8267_v11  ;;  %v721_v10 = vld [vmem:[%s13316_s1 + $0xf50] sm:$0xff]  ;;  %v714_v11 = vld [vmem:[%s13316_s1 + $0xf18] sm:$0xff] }
  0xe7   : > { %3604 = vmatprep.subr.bf16.mxu0 %v8282_v13  ;;  %3686 = vmatprep.subr.bf16.mxu1 %v8284_v16  ;;  %v8396_v13 = vcombine.high %v698_v3, %v706_v5  ;;  %v8395_v16 = vcombine.low %v698_v3, %v706_v5  ;;  %v8410_v17 = vcombine.high %v713_v9, %v721_v10  ;;  %v315_v5 = vld [vmem:[%s13316_s1 + $0x2a0] sm:$0xff] }
  0xe8   : > { %v8409_v25 = vcombine.low %v713_v9, %v721_v10  ;;  %v8411_v26 = vcombine.low %v714_v11, %v722_v14  ;;  %v324_v9 = vld [vmem:[%s13316_s1 + $0x2e8] sm:$0xff] }
  0xea   : > { %3605 = vmatpush1.bf16.msra.mxu0 %v8281_v19  ;;  %3687 = vmatpush1.bf16.msra.mxu1 %v8283_v20  ;;  %v737_v19 = vld [vmem:[%s13316_s1 + $0xfd0] sm:$0xff]  ;;  %v730_v20 = vld [vmem:[%s13316_s1 + $0xf98] sm:$0xff] }
  0xeb   : > { %3606 = vmatprep.subr.bf16.mxu0 %v8298_v21  ;;  %3688 = vmatprep.subr.bf16.mxu1 %v8300_v27  ;;  %v8412_v21 = vcombine.high %v714_v11, %v722_v14  ;;  %v8426_v27 = vcombine.high %v729_v18, %v737_v19  ;;  %v8425_v33 = vcombine.low %v729_v18, %v737_v19  ;;  %v331_v14 = vld [vmem:[%s13316_s1 + $0x320] sm:$0xff]  ;;  %v340_v18 = vld [vmem:[%s13316_s1 + $0x368] sm:$0xff] }
  0xec   : > { %v8427_v34 = vcombine.low %v730_v20, %v738_v22 }
  0xee   : > { %3607 = vmatpush1.bf16.msra.mxu0 %v8297_v29  ;;  %3689 = vmatpush1.bf16.msra.mxu1 %v8299_v30  ;;  %v243_v29 = vld [vmem:[%s13316_s1 + $0x60] sm:$0xff]  ;;  %v236_v30 = vld [vmem:[%s13316_s1 + $0x28] sm:$0xff] }
  0xef   : > { %3608 = vmatprep.subr.bf16.mxu0 %v8314_v31  ;;  %3690 = vmatprep.subr.bf16.mxu1 %v8316_v35  ;;  %v8428_v31 = vcombine.high %v730_v20, %v738_v22  ;;  %v7934_v35 = vcombine.high %v235_v28, %v243_v29  ;;  %v7933_v41 = vcombine.low %v235_v28, %v243_v29  ;;  %v347_v22 = vld [vmem:[%s13316_s1 + $0x3a0] sm:$0xff]  ;;  %v356_v28 = vld [vmem:[%s13316_s1 + $0x3e8] sm:$0xff] }
  0xf0   : > { %v7935_v42 = vcombine.low %v236_v30, %v244_v32 }
  0xf2   : > { %3609 = vmatpush1.bf16.msra.mxu0 %v8313_v37  ;;  %3691 = vmatpush1.bf16.msra.mxu1 %v8315_v38  ;;  %v259_v37 = vld [vmem:[%s13316_s1 + $0xe0] sm:$0xff]  ;;  %v252_v38 = vld [vmem:[%s13316_s1 + $0xa8] sm:$0xff] }
  0xf3   : > { %3610 = vmatprep.subr.bf16.mxu0 %v8330_v39  ;;  %3692 = vmatprep.subr.bf16.mxu1 %v8332_v43  ;;  %v7936_v39 = vcombine.high %v236_v30, %v244_v32  ;;  %v7950_v43 = vcombine.high %v251_v36, %v259_v37  ;;  %v7949_v49 = vcombine.low %v251_v36, %v259_v37  ;;  %v363_v32 = vld [vmem:[%s13316_s1 + $0x420] sm:$0xff]  ;;  %v372_v36 = vld [vmem:[%s13316_s1 + $0x468] sm:$0xff] }
  0xf4   : > { %v7951_v50 = vcombine.low %v252_v38, %v260_v40 }
  0xf6   : > { %3611 = vmatpush1.bf16.msra.mxu0 %v8329_v45  ;;  %3693 = vmatpush1.bf16.msra.mxu1 %v8331_v46  ;;  %v275_v45 = vld [vmem:[%s13316_s1 + $0x160] sm:$0xff]  ;;  %v268_v46 = vld [vmem:[%s13316_s1 + $0x128] sm:$0xff] }
  0xf7   : > { %3612 = vmatprep.subr.bf16.mxu0 %v8346_v47  ;;  %3694 = vmatprep.subr.bf16.mxu1 %v8348_v51  ;;  %v7952_v47 = vcombine.high %v252_v38, %v260_v40  ;;  %v7966_v51 = vcombine.high %v267_v44, %v275_v45  ;;  %v7965_v58 = vcombine.low %v267_v44, %v275_v45  ;;  %v379_v40 = vld [vmem:[%s13316_s1 + $0x4a0] sm:$0xff]  ;;  %v388_v44 = vld [vmem:[%s13316_s1 + $0x4e8] sm:$0xff] }
  0xf8   : > { %v7967_v59 = vcombine.low %v268_v46, %v276_v48 }
  0xfa   : > { %3613 = vmatpush1.bf16.msra.mxu0 %v8345_v53  ;;  %3695 = vmatpush1.bf16.msra.mxu1 %v8347_v54  ;;  %v291_v53 = vld [vmem:[%s13316_s1 + $0x1e0] sm:$0xff]  ;;  %v284_v54 = vld [vmem:[%s13316_s1 + $0x1a8] sm:$0xff] }
  0xfb   : > { %3614 = vmatprep.subr.bf16.mxu0 %v8362_v55  ;;  %3696 = vmatprep.subr.bf16.mxu1 %v8364_v60  ;;  %v7968_v55 = vcombine.high %v268_v46, %v276_v48  ;;  %v7982_v60 = vcombine.high %v283_v52, %v291_v53  ;;  %v7981_v2 = vcombine.low %v283_v52, %v291_v53  ;;  %v395_v48 = vld [vmem:[%s13316_s1 + $0x520] sm:$0xff]  ;;  %v404_v52 = vld [vmem:[%s13316_s1 + $0x568] sm:$0xff] }
  0xfc   : > { %v7983_v3 = vcombine.low %v284_v54, %v292_v56 }
  0xfe   : > { %3615 = vmatpush1.bf16.msra.mxu0 %v8361_v62  ;;  %3697 = vmatpush1.bf16.msra.mxu1 %v8363_v63  ;;  %v307_v62 = vld [vmem:[%s13316_s1 + $0x260] sm:$0xff]  ;;  %v300_v63 = vld [vmem:[%s13316_s1 + $0x228] sm:$0xff] }
  0xff   : > { %3616 = vmatprep.subr.bf16.mxu0 %v8378_v0  ;;  %3698 = vmatprep.subr.bf16.mxu1 %v8380_v4  ;;  %v7984_v0 = vcombine.high %v284_v54, %v292_v56  ;;  %v7998_v4 = vcombine.high %v299_v61, %v307_v62  ;;  %v7997_v10 = vcombine.low %v299_v61, %v307_v62  ;;  %v411_v56 = vld [vmem:[%s13316_s1 + $0x5a0] sm:$0xff]  ;;  %v420_v61 = vld [vmem:[%s13316_s1 + $0x5e8] sm:$0xff] }
 0x100   : > { %v7999_v11 = vcombine.low %v300_v63, %v308_v1 }
 0x102   : > { %3617 = vmatpush1.bf16.msra.mxu0 %v8377_v6  ;;  %3699 = vmatpush1.bf16.msra.mxu1 %v8379_v7  ;;  %v323_v6 = vld [vmem:[%s13316_s1 + $0x2e0] sm:$0xff]  ;;  %v316_v7 = vld [vmem:[%s13316_s1 + $0x2a8] sm:$0xff] }
 0x103   : > { %3618 = vmatprep.subr.bf16.mxu0 %v8394_v8  ;;  %3700 = vmatprep.subr.bf16.mxu1 %v8396_v13  ;;  %v8000_v8 = vcombine.high %v300_v63, %v308_v1  ;;  %v8014_v13 = vcombine.high %v315_v5, %v323_v6  ;;  %v8013_v19 = vcombine.low %v315_v5, %v323_v6  ;;  %v427_v1 = vld [vmem:[%s13316_s1 + $0x620] sm:$0xff]  ;;  %v436_v5 = vld [vmem:[%s13316_s1 + $0x668] sm:$0xff] }
 0x104   : > { %v8015_v20 = vcombine.low %v316_v7, %v324_v9 }
 0x106   : > { %3619 = vmatpush1.bf16.msra.mxu0 %v8393_v15  ;;  %3701 = vmatpush1.bf16.msra.mxu1 %v8395_v16  ;;  %v339_v15 = vld [vmem:[%s13316_s1 + $0x360] sm:$0xff]  ;;  %v332_v16 = vld [vmem:[%s13316_s1 + $0x328] sm:$0xff] }
 0x107   : > { %3620 = vmatprep.subr.bf16.mxu0 %v8410_v17  ;;  %3702 = vmatprep.subr.bf16.mxu1 %v8412_v21  ;;  %v8016_v17 = vcombine.high %v316_v7, %v324_v9  ;;  %v8030_v21 = vcombine.high %v331_v14, %v339_v15  ;;  %v8029_v29 = vcombine.low %v331_v14, %v339_v15  ;;  %v443_v9 = vld [vmem:[%s13316_s1 + $0x6a0] sm:$0xff]  ;;  %v452_v14 = vld [vmem:[%s13316_s1 + $0x6e8] sm:$0xff] }
 0x108   : > { %v8031_v30 = vcombine.low %v332_v16, %v340_v18 }
 0x10a   : > { %3621 = vmatpush1.bf16.msra.mxu0 %v8409_v25  ;;  %3703 = vmatpush1.bf16.msra.mxu1 %v8411_v26  ;;  %v355_v25 = vld [vmem:[%s13316_s1 + $0x3e0] sm:$0xff]  ;;  %v348_v26 = vld [vmem:[%s13316_s1 + $0x3a8] sm:$0xff] }
 0x10b   : > { %3622 = vmatprep.subr.bf16.mxu0 %v8426_v27  ;;  %3704 = vmatprep.subr.bf16.mxu1 %v8428_v31  ;;  %v8032_v27 = vcombine.high %v332_v16, %v340_v18  ;;  %v8046_v31 = vcombine.high %v347_v22, %v355_v25  ;;  %v8045_v37 = vcombine.low %v347_v22, %v355_v25  ;;  %v459_v18 = vld [vmem:[%s13316_s1 + $0x720] sm:$0xff]  ;;  %v468_v22 = vld [vmem:[%s13316_s1 + $0x768] sm:$0xff] }
 0x10c   : > { %v8047_v38 = vcombine.low %v348_v26, %v356_v28 }
 0x10e   : > { %3623 = vmatpush1.bf16.msra.mxu0 %v8425_v33  ;;  %3705 = vmatpush1.bf16.msra.mxu1 %v8427_v34  ;;  %v371_v33 = vld [vmem:[%s13316_s1 + $0x460] sm:$0xff]  ;;  %v364_v34 = vld [vmem:[%s13316_s1 + $0x428] sm:$0xff] }
 0x10f   : > { %3715 = vmatprep.subr.bf16.mxu0 %v7934_v35  ;;  %3797 = vmatprep.subr.bf16.mxu1 %v7936_v39  ;;  %v8048_v35 = vcombine.high %v348_v26, %v356_v28  ;;  %v8062_v39 = vcombine.high %v363_v32, %v371_v33  ;;  %v8061_v45 = vcombine.low %v363_v32, %v371_v33  ;;  %v475_v28 = vld [vmem:[%s13316_s1 + $0x7a0] sm:$0xff]  ;;  %v484_v32 = vld [vmem:[%s13316_s1 + $0x7e8] sm:$0xff] }
 0x110   : > { %v8063_v46 = vcombine.low %v364_v34, %v372_v36 }
 0x111   : > { %3625 = vmatmul.mubr.bf16.vlgmr.msra.gmra.mrb[4].mxu0 %v10449_v23  ;;  %3707 = vmatmul.mubr.bf16.vlgmr.msra.gmra.mrb[4].mxu1 %v10449_v23 }
 0x112   : > { %3716 = vmatpush1.bf16.msra.mxu0 %v7933_v41  ;;  %3798 = vmatpush1.bf16.msra.mxu1 %v7935_v42  ;;  %v387_v41 = vld [vmem:[%s13316_s1 + $0x4e0] sm:$0xff]  ;;  %v380_v42 = vld [vmem:[%s13316_s1 + $0x4a8] sm:$0xff] }
 0x113   : > { %3717 = vmatprep.subr.bf16.mxu0 %v7950_v43  ;;  %3799 = vmatprep.subr.bf16.mxu1 %v7952_v47  ;;  %v8064_v43 = vcombine.high %v364_v34, %v372_v36  ;;  %v8078_v47 = vcombine.high %v379_v40, %v387_v41  ;;  %v8077_v53 = vcombine.low %v379_v40, %v387_v41  ;;  %v491_v36 = vld [vmem:[%s13316_s1 + $0x820] sm:$0xff]  ;;  %v500_v40 = vld [vmem:[%s13316_s1 + $0x868] sm:$0xff] }
 0x114   : > { %3747 = vmatprep.mubr.bf16.mxu0 %v10116_v57  ;;  %3829 = vmatprep.mubr.bf16.mxu1 %v10116_v57  ;;  %v8079_v54 = vcombine.low %v380_v42, %v388_v44 }
 0x116   : > { %3718 = vmatpush1.bf16.msra.mxu0 %v7949_v49  ;;  %3800 = vmatpush1.bf16.msra.mxu1 %v7951_v50  ;;  %v403_v49 = vld [vmem:[%s13316_s1 + $0x560] sm:$0xff]  ;;  %v396_v50 = vld [vmem:[%s13316_s1 + $0x528] sm:$0xff] }
 0x117   : > { %3719 = vmatprep.subr.bf16.mxu0 %v7966_v51  ;;  %3801 = vmatprep.subr.bf16.mxu1 %v7968_v55  ;;  %v8080_v51 = vcombine.high %v380_v42, %v388_v44  ;;  %v8094_v55 = vcombine.high %v395_v48, %v403_v49  ;;  %v8093_v62 = vcombine.low %v395_v48, %v403_v49  ;;  %v507_v44 = vld [vmem:[%s13316_s1 + $0x8a0] sm:$0xff]  ;;  %v516_v48 = vld [vmem:[%s13316_s1 + $0x8e8] sm:$0xff] }
 0x118   : > { %v8095_v63 = vcombine.low %v396_v50, %v404_v52 }
 0x11a   : > { %3720 = vmatpush1.bf16.msra.mxu0 %v7965_v58  ;;  %3802 = vmatpush1.bf16.msra.mxu1 %v7967_v59  ;;  %v419_v58 = vld [vmem:[%s13316_s1 + $0x5e0] sm:$0xff]  ;;  %v412_v59 = vld [vmem:[%s13316_s1 + $0x5a8] sm:$0xff] }
 0x11b   : > { %3721 = vmatprep.subr.bf16.mxu0 %v7982_v60  ;;  %3803 = vmatprep.subr.bf16.mxu1 %v7984_v0  ;;  %v8096_v60 = vcombine.high %v396_v50, %v404_v52  ;;  %v8110_v0 = vcombine.high %v411_v56, %v419_v58  ;;  %v8109_v6 = vcombine.low %v411_v56, %v419_v58  ;;  %v523_v52 = vld [vmem:[%s13316_s1 + $0x920] sm:$0xff]  ;;  %v532_v56 = vld [vmem:[%s13316_s1 + $0x968] sm:$0xff] }
 0x11c   : > { %v8111_v7 = vcombine.low %v412_v59, %v420_v61 }
 0x11e   : > { %3722 = vmatpush1.bf16.msra.mxu0 %v7981_v2  ;;  %3804 = vmatpush1.bf16.msra.mxu1 %v7983_v3  ;;  %v435_v2 = vld [vmem:[%s13316_s1 + $0x660] sm:$0xff]  ;;  %v428_v3 = vld [vmem:[%s13316_s1 + $0x628] sm:$0xff] }
 0x11f   : > { %3723 = vmatprep.subr.bf16.mxu0 %v7998_v4  ;;  %3805 = vmatprep.subr.bf16.mxu1 %v8000_v8  ;;  %v8112_v4 = vcombine.high %v412_v59, %v420_v61  ;;  %v8126_v8 = vcombine.high %v427_v1, %v435_v2  ;;  %v8125_v15 = vcombine.low %v427_v1, %v435_v2  ;;  %v548_v1 = vld [vmem:[%s13316_s1 + $0x9e8] sm:$0xff] }
 0x120   : > { %v8127_v16 = vcombine.low %v428_v3, %v436_v5 }
 0x122   : > { %3724 = vmatpush1.bf16.msra.mxu0 %v7997_v10  ;;  %3806 = vmatpush1.bf16.msra.mxu1 %v7999_v11  ;;  %v451_v10 = vld [vmem:[%s13316_s1 + $0x6e0] sm:$0xff]  ;;  %v444_v11 = vld [vmem:[%s13316_s1 + $0x6a8] sm:$0xff] }
 0x123   : > { %3725 = vmatprep.subr.bf16.mxu0 %v8014_v13  ;;  %3807 = vmatprep.subr.bf16.mxu1 %v8016_v17  ;;  %v8128_v13 = vcombine.high %v428_v3, %v436_v5  ;;  %v8142_v17 = vcombine.high %v443_v9, %v451_v10  ;;  %v8141_v25 = vcombine.low %v443_v9, %v451_v10  ;;  %v564_v9 = vld [vmem:[%s13316_s1 + $0xa68] sm:$0xff] }
 0x124   : > { %v8143_v26 = vcombine.low %v444_v11, %v452_v14 }
 0x126   : > { %3726 = vmatpush1.bf16.msra.mxu0 %v8013_v19  ;;  %3808 = vmatpush1.bf16.msra.mxu1 %v8015_v20  ;;  %v467_v19 = vld [vmem:[%s13316_s1 + $0x760] sm:$0xff]  ;;  %v460_v20 = vld [vmem:[%s13316_s1 + $0x728] sm:$0xff] }
 0x127   : > { %3727 = vmatprep.subr.bf16.mxu0 %v8030_v21  ;;  %3809 = vmatprep.subr.bf16.mxu1 %v8032_v27  ;;  %v8144_v21 = vcombine.high %v444_v11, %v452_v14  ;;  %v8158_v27 = vcombine.high %v459_v18, %v467_v19  ;;  %v8157_v33 = vcombine.low %v459_v18, %v467_v19  ;;  %v580_v18 = vld [vmem:[%s13316_s1 + $0xae8] sm:$0xff] }
 0x128   : > { %v8159_v34 = vcombine.low %v460_v20, %v468_v22 }
 0x12a   : > { %3728 = vmatpush1.bf16.msra.mxu0 %v8029_v29  ;;  %3810 = vmatpush1.bf16.msra.mxu1 %v8031_v30  ;;  %v483_v29 = vld [vmem:[%s13316_s1 + $0x7e0] sm:$0xff]  ;;  %v476_v30 = vld [vmem:[%s13316_s1 + $0x7a8] sm:$0xff] }
 0x12b   : > { %3729 = vmatprep.subr.bf16.mxu0 %v8046_v31  ;;  %3811 = vmatprep.subr.bf16.mxu1 %v8048_v35  ;;  %v8160_v31 = vcombine.high %v460_v20, %v468_v22  ;;  %v8174_v35 = vcombine.high %v475_v28, %v483_v29  ;;  %v8173_v41 = vcombine.low %v475_v28, %v483_v29  ;;  %v596_v28 = vld [vmem:[%s13316_s1 + $0xb68] sm:$0xff] }
 0x12c   : > { %v8175_v42 = vcombine.low %v476_v30, %v484_v32 }
 0x12e   : > { %3730 = vmatpush1.bf16.msra.mxu0 %v8045_v37  ;;  %3812 = vmatpush1.bf16.msra.mxu1 %v8047_v38  ;;  %v499_v37 = vld [vmem:[%s13316_s1 + $0x860] sm:$0xff]  ;;  %v492_v38 = vld [vmem:[%s13316_s1 + $0x828] sm:$0xff] }
 0x12f   : > { %3731 = vmatprep.subr.bf16.mxu0 %v8062_v39  ;;  %3813 = vmatprep.subr.bf16.mxu1 %v8064_v43  ;;  %v8176_v39 = vcombine.high %v476_v30, %v484_v32  ;;  %v8190_v43 = vcombine.high %v491_v36, %v499_v37  ;;  %v8189_v49 = vcombine.low %v491_v36, %v499_v37 }
 0x130   : > { %v8191_v50 = vcombine.low %v492_v38, %v500_v40 }
 0x132   : > { %3732 = vmatpush1.bf16.msra.mxu0 %v8061_v45  ;;  %3814 = vmatpush1.bf16.msra.mxu1 %v8063_v46  ;;  %v515_v45 = vld [vmem:[%s13316_s1 + $0x8e0] sm:$0xff]  ;;  %v508_v46 = vld [vmem:[%s13316_s1 + $0x8a8] sm:$0xff] }
 0x133   : > { %3733 = vmatprep.subr.bf16.mxu0 %v8078_v47  ;;  %3815 = vmatprep.subr.bf16.mxu1 %v8080_v51  ;;  %v8192_v47 = vcombine.high %v492_v38, %v500_v40  ;;  %v8206_v51 = vcombine.high %v507_v44, %v515_v45  ;;  %v8205_v58 = vcombine.low %v507_v44, %v515_v45  ;;  %v604_v38 = vld [vmem:[%s13316_s1 + $0xba8] sm:$0xff] }
 0x134   : > { %v8207_v59 = vcombine.low %v508_v46, %v516_v48 }
 0x136   : > { %3734 = vmatpush1.bf16.msra.mxu0 %v8077_v53  ;;  %3816 = vmatpush1.bf16.msra.mxu1 %v8079_v54  ;;  %v8208_v53 = vcombine.high %v508_v46, %v516_v48  ;;  %v531_v54 = vld [vmem:[%s13316_s1 + $0x960] sm:$0xff] }
 0x137   : > { %3735 = vmatprep.subr.bf16.mxu0 %v8094_v55  ;;  %3817 = vmatprep.subr.bf16.mxu1 %v8096_v60  ;;  %v524_v55 = vld [vmem:[%s13316_s1 + $0x928] sm:$0xff]  ;;  %v8222_v60 = vcombine.high %v523_v52, %v531_v54  ;;  %v8221_v2 = vcombine.low %v523_v52, %v531_v54 }
 0x138   : > { %v8224_v61 = vcombine.high %v524_v55, %v532_v56  ;;  %v8223_v3 = vcombine.low %v524_v55, %v532_v56  ;;  %v628_v52 = vld [vmem:[%s13316_s1 + $0xc68] sm:$0xff] }
 0x13a   : > { %3736 = vmatpush1.bf16.msra.mxu0 %v8093_v62  ;;  %3818 = vmatpush1.bf16.msra.mxu1 %v8095_v63  ;;  %v539_v62 = vld [vmem:[%s13316_s1 + $0x9a0] sm:$0xff] }
 0x13b   : > { %3737 = vmatprep.subr.bf16.mxu0 %v8110_v0  ;;  %3819 = vmatprep.subr.bf16.mxu1 %v8112_v4  ;;  %v547_v63 = vld [vmem:[%s13316_s1 + $0x9e0] sm:$0xff]  ;;  %v540_v0 = vld [vmem:[%s13316_s1 + $0x9a8] sm:$0xff] }
 0x13c   : > { %v8238_v4 = vcombine.high %v539_v62, %v547_v63  ;;  %v8240_v5 = vcombine.high %v540_v0, %v548_v1  ;;  %v8237_v10 = vcombine.low %v539_v62, %v547_v63  ;;  %v8239_v11 = vcombine.low %v540_v0, %v548_v1 }
 0x13e   : > { %3738 = vmatpush1.bf16.msra.mxu0 %v8109_v6  ;;  %3820 = vmatpush1.bf16.msra.mxu1 %v8111_v7  ;;  %v555_v6 = vld [vmem:[%s13316_s1 + $0xa20] sm:$0xff] }
 0x13f   : > { %3739 = vmatprep.subr.bf16.mxu0 %v8126_v8  ;;  %3821 = vmatprep.subr.bf16.mxu1 %v8128_v13  ;;  %v563_v7 = vld [vmem:[%s13316_s1 + $0xa60] sm:$0xff]  ;;  %v556_v8 = vld [vmem:[%s13316_s1 + $0xa28] sm:$0xff] }
 0x140   : > { %v8254_v13 = vcombine.high %v555_v6, %v563_v7  ;;  %v8256_v14 = vcombine.high %v556_v8, %v564_v9  ;;  %v8253_v19 = vcombine.low %v555_v6, %v563_v7  ;;  %v8255_v20 = vcombine.low %v556_v8, %v564_v9 }
 0x142   : > { %3740 = vmatpush1.bf16.msra.mxu0 %v8125_v15  ;;  %3822 = vmatpush1.bf16.msra.mxu1 %v8127_v16  ;;  %v571_v15 = vld [vmem:[%s13316_s1 + $0xaa0] sm:$0xff] }
 0x143   : > { %3741 = vmatprep.subr.bf16.mxu0 %v8142_v17  ;;  %3823 = vmatprep.subr.bf16.mxu1 %v8144_v21  ;;  %v579_v16 = vld [vmem:[%s13316_s1 + $0xae0] sm:$0xff]  ;;  %v572_v17 = vld [vmem:[%s13316_s1 + $0xaa8] sm:$0xff] }
 0x144   : > { %v8270_v21 = vcombine.high %v571_v15, %v579_v16  ;;  %v8272_v22 = vcombine.high %v572_v17, %v580_v18  ;;  %v8269_v29 = vcombine.low %v571_v15, %v579_v16  ;;  %v8271_v30 = vcombine.low %v572_v17, %v580_v18 }
 0x146   : > { %3742 = vmatpush1.bf16.msra.mxu0 %v8141_v25  ;;  %3824 = vmatpush1.bf16.msra.mxu1 %v8143_v26  ;;  %v587_v25 = vld [vmem:[%s13316_s1 + $0xb20] sm:$0xff] }
 0x147   : > { %3743 = vmatprep.subr.bf16.mxu0 %v8158_v27  ;;  %3825 = vmatprep.subr.bf16.mxu1 %v8160_v31  ;;  %v595_v26 = vld [vmem:[%s13316_s1 + $0xb60] sm:$0xff]  ;;  %v588_v27 = vld [vmem:[%s13316_s1 + $0xb28] sm:$0xff] }
 0x148   : > { %v8286_v31 = vcombine.high %v587_v25, %v595_v26  ;;  %v8287_v45 = vcombine.low %v588_v27, %v596_v28 }
 0x14a   : > { %3744 = vmatpush1.bf16.msra.mxu0 %v8157_v33  ;;  %3826 = vmatpush1.bf16.msra.mxu1 %v8159_v34  ;;  %v8288_v33 = vcombine.high %v588_v27, %v596_v28  ;;  %v603_v34 = vld [vmem:[%s13316_s1 + $0xba0] sm:$0xff] }
 0x14b   : > { %3745 = vmatprep.subr.bf16.mxu0 %v8174_v35  ;;  %3827 = vmatprep.subr.bf16.mxu1 %v8176_v39  ;;  %v611_v35 = vld [vmem:[%s13316_s1 + $0xbe0] sm:$0xff]  ;;  %v612_v39 = vld [vmem:[%s13316_s1 + $0xbe8] sm:$0xff] }
 0x14c   : > { %v8302_v46 = vcombine.high %v603_v34, %v611_v35  ;;  %v8304_v48 = vcombine.high %v604_v38, %v612_v39  ;;  %v8303_v54 = vcombine.low %v604_v38, %v612_v39 }
 0x14e   : > { %3746 = vmatpush1.bf16.msra.mxu0 %v8173_v41  ;;  %3828 = vmatpush1.bf16.msra.mxu1 %v8175_v42  ;;  %v8285_v42 = vcombine.low %v587_v25, %v595_v26 }
 0x14f   : > { %3756 = vmatprep.subr.bf16.mxu0 %v8190_v43  ;;  %3838 = vmatprep.subr.bf16.mxu1 %v8192_v47 }
 0x151   : > { %3748 = vmatmul.mubr.bf16.vlgmr.msra.gmra.mrb[8].mxu0 %v10241_v12  ;;  %3830 = vmatmul.mubr.bf16.vlgmr.msra.gmra.mrb[8].mxu1 %v10241_v12 }
 0x152   : > { %3757 = vmatpush1.bf16.msra.mxu0 %v8189_v49  ;;  %3839 = vmatpush1.bf16.msra.mxu1 %v8191_v50  ;;  %v619_v49 = vld [vmem:[%s13316_s1 + $0xc20] sm:$0xff] }
 0x153   : > { %3758 = vmatprep.subr.bf16.mxu0 %v8206_v51  ;;  %3840 = vmatprep.subr.bf16.mxu1 %v8208_v53  ;;  %v627_v50 = vld [vmem:[%s13316_s1 + $0xc60] sm:$0xff]  ;;  %v620_v51 = vld [vmem:[%s13316_s1 + $0xc28] sm:$0xff]  ;;  %v8301_v53 = vcombine.low %v603_v34, %v611_v35 }
 0x154   : > { %3788 = vmatprep.mubr.bf16.mxu0 %v10262_v24  ;;  %3870 = vmatprep.mubr.bf16.mxu1 %v10262_v24  ;;  %v8318_v55 = vcombine.high %v619_v49, %v627_v50  ;;  %v8320_v56 = vcombine.high %v620_v51, %v628_v52  ;;  %v8317_v62 = vcombine.low %v619_v49, %v627_v50  ;;  %v731_v49 = vld [vmem:[%s13316_s1 + $0xfa0] sm:$0xff] }
 0x155   : > { %v8319_v63 = vcombine.low %v620_v51, %v628_v52  ;;  %v739_v50 = vld [vmem:[%s13316_s1 + $0xfe0] sm:$0xff]  ;;  %v732_v51 = vld [vmem:[%s13316_s1 + $0xfa8] sm:$0xff] }
 0x156   : > { %3759 = vmatpush1.bf16.msra.mxu0 %v8205_v58  ;;  %3841 = vmatpush1.bf16.msra.mxu1 %v8207_v59  ;;  %v635_v58 = vld [vmem:[%s13316_s1 + $0xca0] sm:$0xff]  ;;  %v740_v52 = vld [vmem:[%s13316_s1 + $0xfe8] sm:$0xff] }
 0x157   : > { %3760 = vmatprep.subr.bf16.mxu0 %v8222_v60  ;;  %3842 = vmatprep.subr.bf16.mxu1 %v8224_v61  ;;  %v643_v59 = vld [vmem:[%s13316_s1 + $0xce0] sm:$0xff]  ;;  %v636_v60 = vld [vmem:[%s13316_s1 + $0xca8] sm:$0xff] }
 0x158   : > { %v644_v61 = vld [vmem:[%s13316_s1 + $0xce8] sm:$0xff]  ;;  %v8334_v0 = vcombine.high %v635_v58, %v643_v59  ;;  %v8333_v6 = vcombine.low %v635_v58, %v643_v59  ;;  %v237_v58 = vld [vmem:[%s13316_s1 + $0x30] sm:$0xff] }
 0x159   : > { %v8336_v1 = vcombine.high %v636_v60, %v644_v61  ;;  %v8335_v7 = vcombine.low %v636_v60, %v644_v61  ;;  %v245_v59 = vld [vmem:[%s13316_s1 + $0x70] sm:$0xff]  ;;  %v238_v60 = vld [vmem:[%s13316_s1 + $0x38] sm:$0xff] }
 0x15a   : > { %3761 = vmatpush1.bf16.msra.mxu0 %v8221_v2  ;;  %3843 = vmatpush1.bf16.msra.mxu1 %v8223_v3  ;;  %v651_v2 = vld [vmem:[%s13316_s1 + $0xd20] sm:$0xff]  ;;  %v246_v61 = vld [vmem:[%s13316_s1 + $0x78] sm:$0xff] }
 0x15b   : > { %3762 = vmatprep.subr.bf16.mxu0 %v8238_v4  ;;  %3844 = vmatprep.subr.bf16.mxu1 %v8240_v5  ;;  %v659_v3 = vld [vmem:[%s13316_s1 + $0xd60] sm:$0xff]  ;;  %v652_v4 = vld [vmem:[%s13316_s1 + $0xd28] sm:$0xff] }
 0x15c   : > { %v660_v5 = vld [vmem:[%s13316_s1 + $0xd68] sm:$0xff]  ;;  %v8350_v8 = vcombine.high %v651_v2, %v659_v3  ;;  %v8349_v15 = vcombine.low %v651_v2, %v659_v3  ;;  %v253_v2 = vld [vmem:[%s13316_s1 + $0xb0] sm:$0xff] }
 0x15d   : > { %v8352_v9 = vcombine.high %v652_v4, %v660_v5  ;;  %v8351_v16 = vcombine.low %v652_v4, %v660_v5  ;;  %v261_v3 = vld [vmem:[%s13316_s1 + $0xf0] sm:$0xff]  ;;  %v254_v4 = vld [vmem:[%s13316_s1 + $0xb8] sm:$0xff] }
 0x15e   : > { %3763 = vmatpush1.bf16.msra.mxu0 %v8237_v10  ;;  %3845 = vmatpush1.bf16.msra.mxu1 %v8239_v11  ;;  %v667_v10 = vld [vmem:[%s13316_s1 + $0xda0] sm:$0xff]  ;;  %v262_v5 = vld [vmem:[%s13316_s1 + $0xf8] sm:$0xff] }
 0x15f   : > { %3764 = vmatprep.subr.bf16.mxu0 %v8254_v13  ;;  %3846 = vmatprep.subr.bf16.mxu1 %v8256_v14  ;;  %v675_v11 = vld [vmem:[%s13316_s1 + $0xde0] sm:$0xff]  ;;  %v668_v13 = vld [vmem:[%s13316_s1 + $0xda8] sm:$0xff] }
 0x160   : > { %v676_v14 = vld [vmem:[%s13316_s1 + $0xde8] sm:$0xff]  ;;  %v8366_v17 = vcombine.high %v667_v10, %v675_v11  ;;  %v8365_v25 = vcombine.low %v667_v10, %v675_v11  ;;  %v269_v10 = vld [vmem:[%s13316_s1 + $0x130] sm:$0xff] }
 0x161   : > { %v8368_v18 = vcombine.high %v668_v13, %v676_v14  ;;  %v8367_v26 = vcombine.low %v668_v13, %v676_v14  ;;  %v277_v11 = vld [vmem:[%s13316_s1 + $0x170] sm:$0xff]  ;;  %v270_v13 = vld [vmem:[%s13316_s1 + $0x138] sm:$0xff] }
 0x162   : > { %3765 = vmatpush1.bf16.msra.mxu0 %v8253_v19  ;;  %3847 = vmatpush1.bf16.msra.mxu1 %v8255_v20  ;;  %v683_v19 = vld [vmem:[%s13316_s1 + $0xe20] sm:$0xff]  ;;  %v278_v14 = vld [vmem:[%s13316_s1 + $0x178] sm:$0xff] }
 0x163   : > { %3766 = vmatprep.subr.bf16.mxu0 %v8270_v21  ;;  %3848 = vmatprep.subr.bf16.mxu1 %v8272_v22  ;;  %v691_v20 = vld [vmem:[%s13316_s1 + $0xe60] sm:$0xff]  ;;  %v684_v21 = vld [vmem:[%s13316_s1 + $0xe28] sm:$0xff] }
 0x164   : > { %v11103_v32 = vpop.f32.mrb[0].mxu0  ;;  %v11111_v36 = vpop.f32.mrb[0].mxu1  ;;  %v692_v22 = vld [vmem:[%s13316_s1 + $0xe68] sm:$0xff]  ;;  %v8382_v27 = vcombine.high %v683_v19, %v691_v20  ;;  %v8381_v34 = vcombine.low %v683_v19, %v691_v20  ;;  %v285_v19 = vld [vmem:[%s13316_s1 + $0x1b0] sm:$0xff] }
 0x165   : > { %v11113_v37 = vpop.f32.mrb[1].mxu0  ;;  %v11121_v40 = vpop.f32.mrb[1].mxu1  ;;  %v8384_v28 = vcombine.high %v684_v21, %v692_v22  ;;  %v8383_v35 = vcombine.low %v684_v21, %v692_v22  ;;  %v293_v20 = vld [vmem:[%s13316_s1 + $0x1f0] sm:$0xff]  ;;  %v286_v21 = vld [vmem:[%s13316_s1 + $0x1b8] sm:$0xff] }
 0x166   : > { %v3466_v41 = vpop.f32.mrb[2].mxu0  ;;  %3767 = vmatpush1.bf16.msra.mxu0 %v8269_v29  ;;  %v3548_v43 = vpop.f32.mrb[2].mxu1  ;;  %3849 = vmatpush1.bf16.msra.mxu1 %v8271_v30  ;;  %v699_v29 = vld [vmem:[%s13316_s1 + $0xea0] sm:$0xff]  ;;  %v294_v22 = vld [vmem:[%s13316_s1 + $0x1f8] sm:$0xff] }
 0x167   : > { %v3467_v44 = vpop.f32.mrb[3].mxu0  ;;  %3768 = vmatprep.subr.bf16.mxu0 %v8286_v31  ;;  %v3549_v47 = vpop.f32.mrb[3].mxu1  ;;  %3850 = vmatprep.subr.bf16.mxu1 %v8288_v33  ;;  %v707_v30 = vld [vmem:[%s13316_s1 + $0xee0] sm:$0xff]  ;;  %v700_v31 = vld [vmem:[%s13316_s1 + $0xea8] sm:$0xff] }
 0x168   : > { %v708_v33 = vld [vmem:[%s13316_s1 + $0xee8] sm:$0xff]  ;;  %v8398_v38 = vcombine.high %v699_v29, %v707_v30  ;;  %v715_v41 = vld [vmem:[%s13316_s1 + $0xf20] sm:$0xff] }
 0x169   : > { %v8400_v39 = vcombine.high %v700_v31, %v708_v33  ;;  %v716_v43 = vld [vmem:[%s13316_s1 + $0xf28] sm:$0xff] }
 0x16a   : > { %3769 = vmatpush1.bf16.msra.mxu0 %v8285_v42  ;;  %3851 = vmatpush1.bf16.msra.mxu1 %v8287_v45  ;;  %v723_v42 = vld [vmem:[%s13316_s1 + $0xf60] sm:$0xff]  ;;  %v724_v44 = vld [vmem:[%s13316_s1 + $0xf68] sm:$0xff]  ;;  %v8397_v45 = vcombine.low %v699_v29, %v707_v30  ;;  %v301_v29 = vld [vmem:[%s13316_s1 + $0x230] sm:$0xff] }
 0x16b   : > { %3770 = vmatprep.subr.bf16.mxu0 %v8302_v46  ;;  %3852 = vmatprep.subr.bf16.mxu1 %v8304_v48  ;;  %v8399_v46 = vcombine.low %v700_v31, %v708_v33  ;;  %v8414_v47 = vcombine.high %v715_v41, %v723_v42  ;;  %v8416_v48 = vcombine.high %v716_v43, %v724_v44  ;;  %v309_v30 = vld [vmem:[%s13316_s1 + $0x270] sm:$0xff]  ;;  %v310_v31 = vld [vmem:[%s13316_s1 + $0x278] sm:$0xff] }
 0x16c   : > { %v7985_v33 = vcombine.low %v285_v19, %v293_v20 }
 0x16e   : > { %3771 = vmatpush1.bf16.msra.mxu0 %v8301_v53  ;;  %3853 = vmatpush1.bf16.msra.mxu1 %v8303_v54  ;;  %v8413_v53 = vcombine.low %v715_v41, %v723_v42  ;;  %v8415_v54 = vcombine.low %v716_v43, %v724_v44  ;;  %v325_v41 = vld [vmem:[%s13316_s1 + $0x2f0] sm:$0xff]  ;;  %v318_v42 = vld [vmem:[%s13316_s1 + $0x2b8] sm:$0xff]  ;;  %v8001_v44 = vcombine.low %v301_v29, %v309_v30 }
 0x16f   : > { %3772 = vmatprep.subr.bf16.mxu0 %v8318_v55  ;;  %3854 = vmatprep.subr.bf16.mxu1 %v8320_v56  ;;  %v8430_v55 = vcombine.high %v731_v49, %v739_v50  ;;  %v8432_v56 = vcombine.high %v732_v51, %v740_v52  ;;  %v326_v43 = vld [vmem:[%s13316_s1 + $0x2f8] sm:$0xff] }
 0x172   : > { %3773 = vmatpush1.bf16.msra.mxu0 %v8317_v62  ;;  %3855 = vmatpush1.bf16.msra.mxu1 %v8319_v63  ;;  %v8429_v62 = vcombine.low %v731_v49, %v739_v50  ;;  %v8431_v63 = vcombine.low %v732_v51, %v740_v52  ;;  %v341_v49 = vld [vmem:[%s13316_s1 + $0x370] sm:$0xff]  ;;  %v334_v50 = vld [vmem:[%s13316_s1 + $0x338] sm:$0xff] }
 0x173   : > { %3774 = vmatprep.subr.bf16.mxu0 %v8334_v0  ;;  %3856 = vmatprep.subr.bf16.mxu1 %v8336_v1  ;;  %v7938_v0 = vcombine.high %v237_v58, %v245_v59  ;;  %v7940_v1 = vcombine.high %v238_v60, %v246_v61  ;;  %v342_v51 = vld [vmem:[%s13316_s1 + $0x378] sm:$0xff] }
 0x176   : > { %3775 = vmatpush1.bf16.msra.mxu0 %v8333_v6  ;;  %3857 = vmatpush1.bf16.msra.mxu1 %v8335_v7  ;;  %v7937_v6 = vcombine.low %v237_v58, %v245_v59  ;;  %v7939_v7 = vcombine.low %v238_v60, %v246_v61  ;;  %v357_v58 = vld [vmem:[%s13316_s1 + $0x3f0] sm:$0xff]  ;;  %v350_v59 = vld [vmem:[%s13316_s1 + $0x3b8] sm:$0xff] }
 0x177   : > { %3776 = vmatprep.subr.bf16.mxu0 %v8350_v8  ;;  %3858 = vmatprep.subr.bf16.mxu1 %v8352_v9  ;;  %v7954_v8 = vcombine.high %v253_v2, %v261_v3  ;;  %v7956_v9 = vcombine.high %v254_v4, %v262_v5  ;;  %v358_v60 = vld [vmem:[%s13316_s1 + $0x3f8] sm:$0xff] }
 0x17a   : > { %3777 = vmatpush1.bf16.msra.mxu0 %v8349_v15  ;;  %3859 = vmatpush1.bf16.msra.mxu1 %v8351_v16  ;;  %v7953_v15 = vcombine.low %v253_v2, %v261_v3  ;;  %v7955_v16 = vcombine.low %v254_v4, %v262_v5  ;;  %v373_v2 = vld [vmem:[%s13316_s1 + $0x470] sm:$0xff]  ;;  %v366_v3 = vld [vmem:[%s13316_s1 + $0x438] sm:$0xff] }
 0x17b   : > { %3778 = vmatprep.subr.bf16.mxu0 %v8366_v17  ;;  %3860 = vmatprep.subr.bf16.mxu1 %v8368_v18  ;;  %v7970_v17 = vcombine.high %v269_v10, %v277_v11  ;;  %v7972_v18 = vcombine.high %v270_v13, %v278_v14  ;;  %v374_v4 = vld [vmem:[%s13316_s1 + $0x478] sm:$0xff] }
 0x17e   : > { %3779 = vmatpush1.bf16.msra.mxu0 %v8365_v25  ;;  %3861 = vmatpush1.bf16.msra.mxu1 %v8367_v26  ;;  %v7969_v25 = vcombine.low %v269_v10, %v277_v11  ;;  %v7971_v26 = vcombine.low %v270_v13, %v278_v14  ;;  %v389_v10 = vld [vmem:[%s13316_s1 + $0x4f0] sm:$0xff]  ;;  %v382_v11 = vld [vmem:[%s13316_s1 + $0x4b8] sm:$0xff] }
 0x17f   : > { %3780 = vmatprep.subr.bf16.mxu0 %v8382_v27  ;;  %3862 = vmatprep.subr.bf16.mxu1 %v8384_v28  ;;  %v7986_v27 = vcombine.high %v285_v19, %v293_v20  ;;  %v7988_v28 = vcombine.high %v286_v21, %v294_v22  ;;  %v390_v13 = vld [vmem:[%s13316_s1 + $0x4f8] sm:$0xff]  ;;  %v405_v19 = vld [vmem:[%s13316_s1 + $0x570] sm:$0xff] }
 0x180   : > { %v398_v20 = vld [vmem:[%s13316_s1 + $0x538] sm:$0xff] }
 0x182   : > { %3781 = vmatpush1.bf16.msra.mxu0 %v8381_v34  ;;  %3863 = vmatpush1.bf16.msra.mxu1 %v8383_v35  ;;  %v7987_v34 = vcombine.low %v286_v21, %v294_v22  ;;  %v8002_v35 = vcombine.high %v301_v29, %v309_v30  ;;  %v406_v21 = vld [vmem:[%s13316_s1 + $0x578] sm:$0xff]  ;;  %v421_v29 = vld [vmem:[%s13316_s1 + $0x5f0] sm:$0xff] }
 0x183   : > { %3782 = vmatprep.subr.bf16.mxu0 %v8398_v38  ;;  %3864 = vmatprep.subr.bf16.mxu1 %v8400_v39  ;;  %v317_v39 = vld [vmem:[%s13316_s1 + $0x2b0] sm:$0xff]  ;;  %v414_v30 = vld [vmem:[%s13316_s1 + $0x5b8] sm:$0xff] }
 0x184   : > { %v8017_v52 = vcombine.low %v317_v39, %v325_v41 }
 0x186   : > { %3783 = vmatpush1.bf16.msra.mxu0 %v8397_v45  ;;  %3865 = vmatpush1.bf16.msra.mxu1 %v8399_v46  ;;  %v8018_v46 = vcombine.high %v317_v39, %v325_v41  ;;  %v437_v39 = vld [vmem:[%s13316_s1 + $0x670] sm:$0xff]  ;;  %v430_v41 = vld [vmem:[%s13316_s1 + $0x638] sm:$0xff] }
 0x187   : > { %3784 = vmatprep.subr.bf16.mxu0 %v8414_v47  ;;  %3866 = vmatprep.subr.bf16.mxu1 %v8416_v48  ;;  %v8020_v47 = vcombine.high %v318_v42, %v326_v43  ;;  %v333_v48 = vld [vmem:[%s13316_s1 + $0x330] sm:$0xff] }
 0x188   : > { %v8033_v61 = vcombine.low %v333_v48, %v341_v49 }
 0x18a   : > { %3785 = vmatpush1.bf16.msra.mxu0 %v8413_v53  ;;  %3867 = vmatpush1.bf16.msra.mxu1 %v8415_v54  ;;  %v8019_v53 = vcombine.low %v318_v42, %v326_v43  ;;  %v8034_v54 = vcombine.high %v333_v48, %v341_v49  ;;  %v438_v42 = vld [vmem:[%s13316_s1 + $0x678] sm:$0xff]  ;;  %v453_v48 = vld [vmem:[%s13316_s1 + $0x6f0] sm:$0xff] }
 0x18b   : > { %3786 = vmatprep.subr.bf16.mxu0 %v8430_v55  ;;  %3868 = vmatprep.subr.bf16.mxu1 %v8432_v56  ;;  %v8036_v55 = vcombine.high %v334_v50, %v342_v51  ;;  %v349_v56 = vld [vmem:[%s13316_s1 + $0x3b0] sm:$0xff]  ;;  %v446_v49 = vld [vmem:[%s13316_s1 + $0x6b8] sm:$0xff] }
 0x18c   : > { %v8049_v5 = vcombine.low %v349_v56, %v357_v58 }
 0x18e   : > { %3787 = vmatpush1.bf16.msra.mxu0 %v8429_v62  ;;  %3869 = vmatpush1.bf16.msra.mxu1 %v8431_v63  ;;  %v8035_v62 = vcombine.low %v334_v50, %v342_v51  ;;  %v8050_v63 = vcombine.high %v349_v56, %v357_v58  ;;  %v454_v50 = vld [vmem:[%s13316_s1 + $0x6f8] sm:$0xff]  ;;  %v469_v56 = vld [vmem:[%s13316_s1 + $0x770] sm:$0xff] }
 0x18f   : > { %3879 = vmatprep.subr.bf16.mxu0 %v7938_v0  ;;  %3961 = vmatprep.subr.bf16.mxu1 %v7940_v1  ;;  %v8052_v0 = vcombine.high %v350_v59, %v358_v60  ;;  %v365_v1 = vld [vmem:[%s13316_s1 + $0x430] sm:$0xff]  ;;  %v462_v58 = vld [vmem:[%s13316_s1 + $0x738] sm:$0xff] }
 0x190   : > { %v8065_v14 = vcombine.low %v365_v1, %v373_v2 }
 0x191   : > { %3789 = vmatmul.mubr.bf16.vlgmr.msra.gmra.mrb[8].mxu0 %v10449_v23  ;;  %3871 = vmatmul.mubr.bf16.vlgmr.msra.gmra.mrb[8].mxu1 %v10449_v23 }
 0x192   : > { %3880 = vmatpush1.bf16.msra.mxu0 %v7937_v6  ;;  %3962 = vmatpush1.bf16.msra.mxu1 %v7939_v7  ;;  %v8051_v6 = vcombine.low %v350_v59, %v358_v60  ;;  %v8066_v7 = vcombine.high %v365_v1, %v373_v2  ;;  %v470_v59 = vld [vmem:[%s13316_s1 + $0x778] sm:$0xff]  ;;  %v485_v1 = vld [vmem:[%s13316_s1 + $0x7f0] sm:$0xff] }
 0x193   : > { %3881 = vmatprep.subr.bf16.mxu0 %v7954_v8  ;;  %3963 = vmatprep.subr.bf16.mxu1 %v7956_v9  ;;  %v8068_v8 = vcombine.high %v366_v3, %v374_v4  ;;  %v381_v9 = vld [vmem:[%s13316_s1 + $0x4b0] sm:$0xff]  ;;  %v478_v2 = vld [vmem:[%s13316_s1 + $0x7b8] sm:$0xff] }
 0x194   : > { %3911 = vmatprep.mubr.bf16.mxu0 %v10116_v57  ;;  %3993 = vmatprep.mubr.bf16.mxu1 %v10116_v57  ;;  %v302_v57 = vld [vmem:[%s13316_s1 + $0x238] sm:$0xff]  ;;  %v8081_v22 = vcombine.low %v381_v9, %v389_v10 }
 0x195   : > { %v8004_v38 = vcombine.high %v302_v57, %v310_v31  ;;  %v8003_v45 = vcombine.low %v302_v57, %v310_v31  ;;  %v422_v57 = vld [vmem:[%s13316_s1 + $0x5f8] sm:$0xff] }
 0x196   : > { %3882 = vmatpush1.bf16.msra.mxu0 %v7953_v15  ;;  %3964 = vmatpush1.bf16.msra.mxu1 %v7955_v16  ;;  %v8067_v15 = vcombine.low %v366_v3, %v374_v4  ;;  %v8082_v16 = vcombine.high %v381_v9, %v389_v10  ;;  %v486_v3 = vld [vmem:[%s13316_s1 + $0x7f8] sm:$0xff]  ;;  %v501_v9 = vld [vmem:[%s13316_s1 + $0x870] sm:$0xff] }
 0x197   : > { %3883 = vmatprep.subr.bf16.mxu0 %v7970_v17  ;;  %3965 = vmatprep.subr.bf16.mxu1 %v7972_v18  ;;  %v8084_v17 = vcombine.high %v382_v11, %v390_v13  ;;  %v397_v18 = vld [vmem:[%s13316_s1 + $0x530] sm:$0xff]  ;;  %v494_v10 = vld [vmem:[%s13316_s1 + $0x838] sm:$0xff] }
 0x198   : > { %v8097_v31 = vcombine.low %v397_v18, %v405_v19 }
 0x19a   : > { %3884 = vmatpush1.bf16.msra.mxu0 %v7969_v25  ;;  %3966 = vmatpush1.bf16.msra.mxu1 %v7971_v26  ;;  %v8083_v25 = vcombine.low %v382_v11, %v390_v13  ;;  %v8098_v26 = vcombine.high %v397_v18, %v405_v19  ;;  %v502_v11 = vld [vmem:[%s13316_s1 + $0x878] sm:$0xff]  ;;  %v517_v18 = vld [vmem:[%s13316_s1 + $0x8f0] sm:$0xff] }
 0x19b   : > { %3885 = vmatprep.subr.bf16.mxu0 %v7986_v27  ;;  %3967 = vmatprep.subr.bf16.mxu1 %v7988_v28  ;;  %v8100_v27 = vcombine.high %v398_v20, %v406_v21  ;;  %v413_v28 = vld [vmem:[%s13316_s1 + $0x5b0] sm:$0xff]  ;;  %v510_v19 = vld [vmem:[%s13316_s1 + $0x8b8] sm:$0xff] }
 0x19c   : > { %v8113_v43 = vcombine.low %v413_v28, %v421_v29 }
 0x19e   : > { %3886 = vmatpush1.bf16.msra.mxu0 %v7985_v33  ;;  %3968 = vmatpush1.bf16.msra.mxu1 %v7987_v34  ;;  %v8099_v33 = vcombine.low %v398_v20, %v406_v21  ;;  %v8114_v34 = vcombine.high %v413_v28, %v421_v29  ;;  %v518_v20 = vld [vmem:[%s13316_s1 + $0x8f8] sm:$0xff]  ;;  %v533_v28 = vld [vmem:[%s13316_s1 + $0x970] sm:$0xff] }
 0x19f   : > { %3887 = vmatprep.subr.bf16.mxu0 %v8002_v35  ;;  %3969 = vmatprep.subr.bf16.mxu1 %v8004_v38  ;;  %v8116_v35 = vcombine.high %v414_v30, %v422_v57  ;;  %v429_v38 = vld [vmem:[%s13316_s1 + $0x630] sm:$0xff]  ;;  %v526_v29 = vld [vmem:[%s13316_s1 + $0x938] sm:$0xff] }
 0x1a0   : > { %v8129_v51 = vcombine.low %v429_v38, %v437_v39 }
 0x1a2   : > { %3888 = vmatpush1.bf16.msra.mxu0 %v8001_v44  ;;  %3970 = vmatpush1.bf16.msra.mxu1 %v8003_v45  ;;  %v8115_v44 = vcombine.low %v414_v30, %v422_v57  ;;  %v8130_v45 = vcombine.high %v429_v38, %v437_v39  ;;  %v534_v30 = vld [vmem:[%s13316_s1 + $0x978] sm:$0xff]  ;;  %v549_v38 = vld [vmem:[%s13316_s1 + $0x9f0] sm:$0xff] }
 0x1a3   : > { %3889 = vmatprep.subr.bf16.mxu0 %v8018_v46  ;;  %3971 = vmatprep.subr.bf16.mxu1 %v8020_v47  ;;  %v8132_v46 = vcombine.high %v430_v41, %v438_v42  ;;  %v445_v47 = vld [vmem:[%s13316_s1 + $0x6b0] sm:$0xff]  ;;  %v550_v39 = vld [vmem:[%s13316_s1 + $0x9f8] sm:$0xff] }
 0x1a4   : > { %v8145_v60 = vcombine.low %v445_v47, %v453_v48 }
 0x1a6   : > { %3890 = vmatpush1.bf16.msra.mxu0 %v8017_v52  ;;  %3972 = vmatpush1.bf16.msra.mxu1 %v8019_v53  ;;  %v8131_v52 = vcombine.low %v430_v41, %v438_v42  ;;  %v8146_v53 = vcombine.high %v445_v47, %v453_v48  ;;  %v8227_v42 = vcombine.low %v526_v29, %v534_v30  ;;  %v566_v47 = vld [vmem:[%s13316_s1 + $0xa78] sm:$0xff] }
 0x1a7   : > { %3891 = vmatprep.subr.bf16.mxu0 %v8034_v54  ;;  %3973 = vmatprep.subr.bf16.mxu1 %v8036_v55  ;;  %v8148_v54 = vcombine.high %v446_v49, %v454_v50  ;;  %v461_v55 = vld [vmem:[%s13316_s1 + $0x730] sm:$0xff] }
 0x1a8   : > { %v8161_v4 = vcombine.low %v461_v55, %v469_v56 }
 0x1aa   : > { %3892 = vmatpush1.bf16.msra.mxu0 %v8033_v61  ;;  %3974 = vmatpush1.bf16.msra.mxu1 %v8035_v62  ;;  %v8147_v61 = vcombine.low %v446_v49, %v454_v50  ;;  %v8162_v62 = vcombine.high %v461_v55, %v469_v56  ;;  %v582_v55 = vld [vmem:[%s13316_s1 + $0xaf8] sm:$0xff] }
 0x1ab   : > { %3893 = vmatprep.subr.bf16.mxu0 %v8050_v63  ;;  %3975 = vmatprep.subr.bf16.mxu1 %v8052_v0  ;;  %v8164_v63 = vcombine.high %v462_v58, %v470_v59  ;;  %v477_v0 = vld [vmem:[%s13316_s1 + $0x7b0] sm:$0xff] }
 0x1ac   : > { %v8177_v13 = vcombine.low %v477_v0, %v485_v1 }
 0x1ae   : > { %3894 = vmatpush1.bf16.msra.mxu0 %v8049_v5  ;;  %3976 = vmatpush1.bf16.msra.mxu1 %v8051_v6  ;;  %v8163_v5 = vcombine.low %v462_v58, %v470_v59  ;;  %v8178_v6 = vcombine.high %v477_v0, %v485_v1  ;;  %v598_v0 = vld [vmem:[%s13316_s1 + $0xb78] sm:$0xff] }
 0x1af   : > { %3895 = vmatprep.subr.bf16.mxu0 %v8066_v7  ;;  %3977 = vmatprep.subr.bf16.mxu1 %v8068_v8  ;;  %v8180_v7 = vcombine.high %v478_v2, %v486_v3  ;;  %v493_v8 = vld [vmem:[%s13316_s1 + $0x830] sm:$0xff] }
 0x1b0   : > { %v8193_v21 = vcombine.low %v493_v8, %v501_v9 }
 0x1b2   : > { %3896 = vmatpush1.bf16.msra.mxu0 %v8065_v14  ;;  %3978 = vmatpush1.bf16.msra.mxu1 %v8067_v15  ;;  %v8179_v14 = vcombine.low %v478_v2, %v486_v3  ;;  %v8194_v15 = vcombine.high %v493_v8, %v501_v9 }
 0x1b3   : > { %3897 = vmatprep.subr.bf16.mxu0 %v8082_v16  ;;  %3979 = vmatprep.subr.bf16.mxu1 %v8084_v17  ;;  %v8196_v16 = vcombine.high %v494_v10, %v502_v11  ;;  %v509_v17 = vld [vmem:[%s13316_s1 + $0x8b0] sm:$0xff] }
 0x1b4   : > { %v8209_v57 = vcombine.low %v509_v17, %v517_v18 }
 0x1b6   : > { %3898 = vmatpush1.bf16.msra.mxu0 %v8081_v22  ;;  %3980 = vmatpush1.bf16.msra.mxu1 %v8083_v25  ;;  %v8195_v22 = vcombine.low %v494_v10, %v502_v11  ;;  %v8210_v25 = vcombine.high %v509_v17, %v517_v18  ;;  %v606_v10 = vld [vmem:[%s13316_s1 + $0xbb8] sm:$0xff] }
 0x1b7   : > { %3899 = vmatprep.subr.bf16.mxu0 %v8098_v26  ;;  %3981 = vmatprep.subr.bf16.mxu1 %v8100_v27  ;;  %v8212_v26 = vcombine.high %v510_v19, %v518_v20  ;;  %v525_v27 = vld [vmem:[%s13316_s1 + $0x930] sm:$0xff]  ;;  %v614_v11 = vld [vmem:[%s13316_s1 + $0xbf8] sm:$0xff] }
 0x1b8   : > { %v8225_v41 = vcombine.low %v525_v27, %v533_v28 }
 0x1ba   : > { %3900 = vmatpush1.bf16.msra.mxu0 %v8097_v31  ;;  %3982 = vmatpush1.bf16.msra.mxu1 %v8099_v33  ;;  %v8211_v31 = vcombine.low %v510_v19, %v518_v20  ;;  %v8226_v33 = vcombine.high %v525_v27, %v533_v28  ;;  %v630_v27 = vld [vmem:[%s13316_s1 + $0xc78] sm:$0xff] }
 0x1bb   : > { %3901 = vmatprep.subr.bf16.mxu0 %v8114_v34  ;;  %3983 = vmatprep.subr.bf16.mxu1 %v8116_v35  ;;  %v8228_v34 = vcombine.high %v526_v29, %v534_v30  ;;  %v541_v35 = vld [vmem:[%s13316_s1 + $0x9b0] sm:$0xff]  ;;  %v8307_v29 = vcombine.low %v606_v10, %v614_v11 }
 0x1bc   : > { %v8241_v48 = vcombine.low %v541_v35, %v549_v38 }
 0x1be   : > { %3902 = vmatpush1.bf16.msra.mxu0 %v8113_v43  ;;  %3984 = vmatpush1.bf16.msra.mxu1 %v8115_v44  ;;  %v8242_v43 = vcombine.high %v541_v35, %v549_v38  ;;  %v646_v35 = vld [vmem:[%s13316_s1 + $0xcf8] sm:$0xff] }
 0x1bf   : > { %3903 = vmatprep.subr.bf16.mxu0 %v8130_v45  ;;  %3985 = vmatprep.subr.bf16.mxu1 %v8132_v46  ;;  %v557_v45 = vld [vmem:[%s13316_s1 + $0xa30] sm:$0xff] }
 0x1c0   : > { %v565_v46 = vld [vmem:[%s13316_s1 + $0xa70] sm:$0xff] }
 0x1c1   : > { %v8258_v50 = vcombine.high %v557_v45, %v565_v46  ;;  %v8257_v56 = vcombine.low %v557_v45, %v565_v46  ;;  %v662_v45 = vld [vmem:[%s13316_s1 + $0xd78] sm:$0xff] }
 0x1c2   : > { %3904 = vmatpush1.bf16.msra.mxu0 %v8129_v51  ;;  %3986 = vmatpush1.bf16.msra.mxu1 %v8131_v52  ;;  %v573_v52 = vld [vmem:[%s13316_s1 + $0xab0] sm:$0xff] }
 0x1c3   : > { %3905 = vmatprep.subr.bf16.mxu0 %v8146_v53  ;;  %3987 = vmatprep.subr.bf16.mxu1 %v8148_v54  ;;  %v581_v53 = vld [vmem:[%s13316_s1 + $0xaf0] sm:$0xff]  ;;  %v574_v54 = vld [vmem:[%s13316_s1 + $0xab8] sm:$0xff] }
 0x1c4   : > { %v8274_v59 = vcombine.high %v573_v52, %v581_v53  ;;  %v8273_v1 = vcombine.low %v573_v52, %v581_v53  ;;  %v8275_v2 = vcombine.low %v574_v54, %v582_v55  ;;  %v678_v52 = vld [vmem:[%s13316_s1 + $0xdf8] sm:$0xff] }
 0x1c6   : > { %3906 = vmatpush1.bf16.msra.mxu0 %v8145_v60  ;;  %3988 = vmatpush1.bf16.msra.mxu1 %v8147_v61  ;;  %v8276_v60 = vcombine.high %v574_v54, %v582_v55  ;;  %v589_v61 = vld [vmem:[%s13316_s1 + $0xb30] sm:$0xff] }
 0x1c7   : > { %3907 = vmatprep.subr.bf16.mxu0 %v8162_v62  ;;  %3989 = vmatprep.subr.bf16.mxu1 %v8164_v63  ;;  %v597_v62 = vld [vmem:[%s13316_s1 + $0xb70] sm:$0xff]  ;;  %v590_v63 = vld [vmem:[%s13316_s1 + $0xb38] sm:$0xff] }
 0x1c8   : > { %v8290_v3 = vcombine.high %v589_v61, %v597_v62  ;;  %v8291_v18 = vcombine.low %v590_v63, %v598_v0 }
 0x1ca   : > { %3908 = vmatpush1.bf16.msra.mxu0 %v8161_v4  ;;  %3990 = vmatpush1.bf16.msra.mxu1 %v8163_v5  ;;  %v8292_v5 = vcombine.high %v590_v63, %v598_v0 }
 0x1cb   : > { %3909 = vmatprep.subr.bf16.mxu0 %v8178_v6  ;;  %3991 = vmatprep.subr.bf16.mxu1 %v8180_v7  ;;  %v605_v6 = vld [vmem:[%s13316_s1 + $0xbb0] sm:$0xff] }
 0x1cc   : > { %v613_v7 = vld [vmem:[%s13316_s1 + $0xbf0] sm:$0xff] }
 0x1cd   : > { %v8306_v19 = vcombine.high %v605_v6, %v613_v7  ;;  %v8305_v28 = vcombine.low %v605_v6, %v613_v7  ;;  %v702_v7 = vld [vmem:[%s13316_s1 + $0xeb8] sm:$0xff] }
 0x1ce   : > { %3910 = vmatpush1.bf16.msra.mxu0 %v8177_v13  ;;  %3992 = vmatpush1.bf16.msra.mxu1 %v8179_v14 }
 0x1cf   : > { %3920 = vmatprep.subr.bf16.mxu0 %v8194_v15  ;;  %4002 = vmatprep.subr.bf16.mxu1 %v8196_v16  ;;  %v8289_v15 = vcombine.low %v589_v61, %v597_v62  ;;  %v686_v61 = vld [vmem:[%s13316_s1 + $0xe38] sm:$0xff] }
 0x1d0   : > { %v694_v62 = vld [vmem:[%s13316_s1 + $0xe78] sm:$0xff] }
 0x1d1   : > { %3912 = vmatmul.mubr.bf16.vlgmr.msra.gmra.mrb[12].mxu0 %v10241_v12  ;;  %3994 = vmatmul.mubr.bf16.vlgmr.msra.gmra.mrb[12].mxu1 %v10241_v12  ;;  %v542_v12 = vld [vmem:[%s13316_s1 + $0x9b8] sm:$0xff] }
 0x1d2   : > { %3921 = vmatpush1.bf16.msra.mxu0 %v8193_v21  ;;  %4003 = vmatpush1.bf16.msra.mxu1 %v8195_v22  ;;  %v8244_v44 = vcombine.high %v542_v12, %v550_v39  ;;  %v8243_v49 = vcombine.low %v542_v12, %v550_v39  ;;  %v8308_v21 = vcombine.high %v606_v10, %v614_v11  ;;  %v621_v22 = vld [vmem:[%s13316_s1 + $0xc30] sm:$0xff]  ;;  %v710_v10 = vld [vmem:[%s13316_s1 + $0xef8] sm:$0xff] }
 0x1d3   : > { %3922 = vmatprep.subr.bf16.mxu0 %v8210_v25  ;;  %4004 = vmatprep.subr.bf16.mxu1 %v8212_v26  ;;  %v629_v25 = vld [vmem:[%s13316_s1 + $0xc70] sm:$0xff]  ;;  %v622_v26 = vld [vmem:[%s13316_s1 + $0xc38] sm:$0xff] }
 0x1d4   : > { %3952 = vmatprep.mubr.bf16.mxu0 %v10262_v24  ;;  %4034 = vmatprep.mubr.bf16.mxu1 %v10262_v24  ;;  %v558_v24 = vld [vmem:[%s13316_s1 + $0xa38] sm:$0xff]  ;;  %v8322_v30 = vcombine.high %v621_v22, %v629_v25  ;;  %v8321_v38 = vcombine.low %v621_v22, %v629_v25  ;;  %v8323_v12 = vcombine.low %v622_v26, %v630_v27  ;;  %v11615_v22 = vld [vmem:[%s13317_s2] sm:$0xff] }
 0x1d5   : > { %v8260_v51 = vcombine.high %v558_v24, %v566_v47  ;;  %v8259_v58 = vcombine.low %v558_v24, %v566_v47 }
 0x1d6   : > { %3923 = vmatpush1.bf16.msra.mxu0 %v8209_v57  ;;  %4005 = vmatpush1.bf16.msra.mxu1 %v8211_v31  ;;  %v8324_v57 = vcombine.high %v622_v26, %v630_v27  ;;  %v637_v31 = vld [vmem:[%s13316_s1 + $0xcb0] sm:$0xff]  ;;  %v8403_v26 = vcombine.low %v702_v7, %v710_v10 }
 0x1d7   : > { %3924 = vmatprep.subr.bf16.mxu0 %v8226_v33  ;;  %4006 = vmatprep.subr.bf16.mxu1 %v8228_v34  ;;  %v645_v33 = vld [vmem:[%s13316_s1 + $0xcf0] sm:$0xff]  ;;  %v638_v34 = vld [vmem:[%s13316_s1 + $0xcb8] sm:$0xff] }
 0x1d8   : > { %v8338_v39 = vcombine.high %v637_v31, %v645_v33  ;;  %v8337_v46 = vcombine.low %v637_v31, %v645_v33  ;;  %v8339_v24 = vcombine.low %v638_v34, %v646_v35  ;;  %v734_v31 = vld [vmem:[%s13316_s1 + $0xfb8] sm:$0xff] }
 0x1d9   : > { %v742_v33 = vld [vmem:[%s13316_s1 + $0xff8] sm:$0xff] }
 0x1da   : > { %3925 = vmatpush1.bf16.msra.mxu0 %v8225_v41  ;;  %4007 = vmatpush1.bf16.msra.mxu1 %v8227_v42  ;;  %v8340_v41 = vcombine.high %v638_v34, %v646_v35  ;;  %v653_v42 = vld [vmem:[%s13316_s1 + $0xd30] sm:$0xff] }
 0x1db   : > { %3926 = vmatprep.subr.bf16.mxu0 %v8242_v43  ;;  %4008 = vmatprep.subr.bf16.mxu1 %v8244_v44  ;;  %v661_v43 = vld [vmem:[%s13316_s1 + $0xd70] sm:$0xff]  ;;  %v654_v44 = vld [vmem:[%s13316_s1 + $0xd38] sm:$0xff] }
 0x1dc   : > { %v8354_v47 = vcombine.high %v653_v42, %v661_v43  ;;  %v8353_v53 = vcombine.low %v653_v42, %v661_v43  ;;  %v8355_v54 = vcombine.low %v654_v44, %v662_v45  ;;  %v8435_v42 = vcombine.low %v734_v31, %v742_v33  ;;  %v9105_v43 = vld [vmem:[%s13318_s3 + $0x4] ss:$16 sps:$4 sm:$0xff]  }
 0x1de   : > { %3927 = vmatpush1.bf16.msra.mxu0 %v8241_v48  ;;  %4009 = vmatpush1.bf16.msra.mxu1 %v8243_v49  ;;  %v8356_v48 = vcombine.high %v654_v44, %v662_v45  ;;  %v669_v49 = vld [vmem:[%s13316_s1 + $0xdb0] sm:$0xff]  ;;  %v9108_v44 = vld [vmem:[%s13318_s3 + $0xc] ss:$16 sps:$4 sm:$0xff]  }
 0x1df   : > { %3928 = vmatprep.subr.bf16.mxu0 %v8258_v50  ;;  %4010 = vmatprep.subr.bf16.mxu1 %v8260_v51  ;;  %v677_v50 = vld [vmem:[%s13316_s1 + $0xdf0] sm:$0xff]  ;;  %v670_v51 = vld [vmem:[%s13316_s1 + $0xdb8] sm:$0xff] }
 0x1e0   : > { %v8370_v55 = vcombine.high %v669_v49, %v677_v50  ;;  %v8369_v63 = vcombine.low %v669_v49, %v677_v50  ;;  %v8371_v0 = vcombine.low %v670_v51, %v678_v52  ;;  %v9109_v49 = vld [vmem:[%s13318_s3 + $0x20] ss:$16 sps:$4 sm:$0xff]   ;;  %v9112_v50 = vld [vmem:[%s13318_s3 + $0x28] ss:$16 sps:$4 sm:$0xff]  }
 0x1e2   : > { %3929 = vmatpush1.bf16.msra.mxu0 %v8257_v56  ;;  %4011 = vmatpush1.bf16.msra.mxu1 %v8259_v58  ;;  %v8372_v56 = vcombine.high %v670_v51, %v678_v52  ;;  %v685_v58 = vld [vmem:[%s13316_s1 + $0xe30] sm:$0xff] }
 0x1e3   : > { %3930 = vmatprep.subr.bf16.mxu0 %v8274_v59  ;;  %4012 = vmatprep.subr.bf16.mxu1 %v8276_v60  ;;  %v693_v59 = vld [vmem:[%s13316_s1 + $0xe70] sm:$0xff]  ;;  %v747_v60 = vlaneseq }
 0x1e4   : > { %v11503_v4 = vpop.f32.mrb[4].mxu0  ;;  %v11511_v8 = vpop.f32.mrb[4].mxu1  ;;  %v8385_v11 = vcombine.low %v685_v58, %v693_v59  ;;  %v9117_v51 = vld [vmem:[%s13318_s3 + $0x44] ss:$16 sps:$4 sm:$0xff]   ;;  %v9115_v52 = vld [vmem:[%s13318_s3 + $0x40] ss:$16 sps:$4 sm:$0xff]  }
 0x1e5   : > { %v11513_v9 = vpop.f32.mrb[5].mxu0  ;;  %v11521_v13 = vpop.f32.mrb[5].mxu1  ;;  %v11589_v6 = vshrl.u32 %v747_v60, 7  ;;  %v9132_v60 = vld [vmem:[%s13318_s3 + $0x8c] ss:$16 sps:$4 sm:$0xff]  }
 0x1e6   : > { %v3630_v14 = vpop.f32.mrb[6].mxu0  ;;  %3931 = vmatpush1.bf16.msra.mxu0 %v8273_v1  ;;  %v3712_v16 = vpop.f32.mrb[6].mxu1  ;;  %4013 = vmatpush1.bf16.msra.mxu1 %v8275_v2  ;;  %v8386_v1 = vcombine.high %v685_v58, %v693_v59  ;;  %v8388_v2 = vcombine.high %v686_v61, %v694_v62  ;;  %v9124_v58 = vld [vmem:[%s13318_s3 + $0x68] ss:$16 sps:$4 sm:$0xff]   ;;  %v9129_v59 = vld [vmem:[%s13318_s3 + $0x84] ss:$16 sps:$4 sm:$0xff]  }
 0x1e7   : > { %v3631_v17 = vpop.f32.mrb[7].mxu0  ;;  %3932 = vmatprep.subr.bf16.mxu0 %v8290_v3  ;;  %v3713_v20 = vpop.f32.mrb[7].mxu1  ;;  %4014 = vmatprep.subr.bf16.mxu1 %v8292_v5  ;;  %v701_v3 = vld [vmem:[%s13316_s1 + $0xeb0] sm:$0xff]  ;;  %v8387_v14 = vcombine.low %v686_v61, %v694_v62  ;;  %v8404_v16 = vcombine.high %v702_v7, %v710_v10  ;;  %v9130_v62 = vld [vmem:[%s13318_s3 + $0x88] ss:$16 sps:$4 sm:$0xff]  }
 0x1e8   : > { %v709_v5 = vld [vmem:[%s13316_s1 + $0xef0] sm:$0xff]  ;;  %v718_v20 = vld [vmem:[%s13316_s1 + $0xf38] sm:$0xff] }
 0x1e9   : > { %v717_v17 = vld [vmem:[%s13316_s1 + $0xf30] sm:$0xff]  ;;  %v8401_v25 = vcombine.low %v701_v3, %v709_v5  ;;  %v9142_v10 = vld [vmem:[%s13318_s3 + $0xc8] ss:$16 sps:$4 sm:$0xff]  }
 0x1ea   : > { %3933 = vmatpush1.bf16.msra.mxu0 %v8289_v15  ;;  %4015 = vmatpush1.bf16.msra.mxu1 %v8291_v18  ;;  %v8402_v15 = vcombine.high %v701_v3, %v709_v5  ;;  %v725_v18 = vld [vmem:[%s13316_s1 + $0xf70] sm:$0xff]  ;;  %v9144_v5 = vld [vmem:[%s13318_s3 + $0xcc] ss:$16 sps:$4 sm:$0xff]  }
 0x1eb   : > { %3934 = vmatprep.subr.bf16.mxu0 %v8306_v19  ;;  %4016 = vmatprep.subr.bf16.mxu1 %v8308_v21  ;;  %v11604_v19 = vsub.s32 1, %v11589_v6  ;;  %v726_v21 = vld [vmem:[%s13316_s1 + $0xf78] sm:$0xff]  ;;  %v8418_v27 = vcombine.high %v717_v17, %v725_v18  ;;  %v8417_v34 = vcombine.low %v717_v17, %v725_v18  ;;  %v9127_v61 = vld [vmem:[%s13318_s3 + $0x80] ss:$16 sps:$4 sm:$0xff]   ;;  %v9141_v3 = vld [vmem:[%s13318_s3 + $0xc4] ss:$16 sps:$4 sm:$0xff]  }
 0x1ec   : > { %v8419_v35 = vcombine.low %v718_v20, %v726_v21  ;;  %v9139_v7 = vld [vmem:[%s13318_s3 + $0xc0] ss:$16 sps:$4 sm:$0xff]   ;;  %v9153_v17 = vld [vmem:[%s13318_s3 + $0x104] ss:$16 sps:$4 sm:$0xff]   ;;  %v9156_v18 = vld [vmem:[%s13318_s3 + $0x10c] ss:$16 sps:$4 sm:$0xff]  }
 0x1ee   : > { %3935 = vmatpush1.bf16.msra.mxu0 %v8305_v28  ;;  %4017 = vmatpush1.bf16.msra.mxu1 %v8307_v29  ;;  %v8420_v28 = vcombine.high %v718_v20, %v726_v21  ;;  %v733_v29 = vld [vmem:[%s13316_s1 + $0xfb0] sm:$0xff]  ;;  %v9154_v21 = vld [vmem:[%s13318_s3 + $0x108] ss:$16 sps:$4 sm:$0xff]  }
 0x1ef   : > { %3936 = vmatprep.subr.bf16.mxu0 %v8322_v30  ;;  %4018 = vmatprep.subr.bf16.mxu1 %v8324_v57  ;;  %v741_v30 = vld [vmem:[%s13316_s1 + $0xff0] sm:$0xff]  ;;  %v754_v57 = vrot.slane %v11615_v22, %v11604_v19 }
 0x1f0   : > { %v9151_v20 = vld [vmem:[%s13318_s3 + $0x100] ss:$16 sps:$4 sm:$0xff]  }
 0x1f2   : > { %3937 = vmatpush1.bf16.msra.mxu0 %v8321_v38  ;;  %4019 = vmatpush1.bf16.msra.mxu1 %v8323_v12  ;;  %v8434_v38 = vcombine.high %v733_v29, %v741_v30  ;;  %v8436_v12 = vcombine.high %v734_v31, %v742_v33  ;;  %v9166_v31 = vld [vmem:[%s13318_s3 + $0x148] ss:$16 sps:$4 sm:$0xff]   ;;  %v9171_v33 = vld [vmem:[%s13318_s3 + $0x164] ss:$16 sps:$4 sm:$0xff]  }
 0x1f3   : > { %3938 = vmatprep.subr.bf16.mxu0 %v8338_v39  ;;  %4020 = vmatprep.subr.bf16.mxu1 %v8340_v41  ;;  %v8957_v39 = vadd.f32 %v11113_v37, %v754_v57  ;;  %v8433_v41 = vcombine.low %v733_v29, %v741_v30  ;;  %v9103_v37 = vld [vmem:[%s13318_s3] ss:$16 sps:$4 sm:$0xff]   ;;  %v9165_v29 = vld [vmem:[%s13318_s3 + $0x144] ss:$16 sps:$4 sm:$0xff]   ;;  %v9168_v30 = vld [vmem:[%s13318_s3 + $0x14c] ss:$16 sps:$4 sm:$0xff]  }
 0x1f4   : > { %v9163_v57 = vld [vmem:[%s13318_s3 + $0x140] ss:$16 sps:$4 sm:$0xff]  }
 0x1f5   : > { %v4044_v45 = vmax.f32 %v8957_v39, 0.0  ;;  %v9180_v39 = vld [vmem:[%s13318_s3 + $0x18c] ss:$16 sps:$4 sm:$0xff]  }
 0x1f6   : > { %3939 = vmatpush1.bf16.msra.mxu0 %v8337_v46  ;;  %4021 = vmatpush1.bf16.msra.mxu1 %v8339_v24  ;;  %v9106_v46 = vld [vmem:[%s13318_s3 + $0x8] ss:$16 sps:$4 sm:$0xff]   ;;  %v9111_v24 = vld [vmem:[%s13318_s3 + $0x24] ss:$16 sps:$4 sm:$0xff]  }
 0x1f7   : > { %3940 = vmatprep.subr.bf16.mxu0 %v8354_v47  ;;  %4022 = vmatprep.subr.bf16.mxu1 %v8356_v48  ;;  %v4060_v47 = vpack.c.bf16 %v4044_v45, %v4044_v45  ;;  %v9114_v48 = vld [vmem:[%s13318_s3 + $0x2c] ss:$16 sps:$4 sm:$0xff]  }
 0x1f8   : > { %v9186_v45 = vld [vmem:[%s13318_s3 + $0x1ac] ss:$16 sps:$4 sm:$0xff]  }
 0x1fa   : > { %3941 = vmatpush1.bf16.msra.mxu0 %v8353_v53  ;;  %4023 = vmatpush1.bf16.msra.mxu1 %v8355_v54  ;;  %v9118_v53 = vld [vmem:[%s13318_s3 + $0x48] ss:$16 sps:$4 sm:$0xff]   ;;  %v9123_v54 = vld [vmem:[%s13318_s3 + $0x64] ss:$16 sps:$4 sm:$0xff]  }
 0x1fb   : > { %3942 = vmatprep.subr.bf16.mxu0 %v8370_v55  ;;  %4024 = vmatprep.subr.bf16.mxu1 %v8372_v56  ;;  %v9126_v55 = vld [vmem:[%s13318_s3 + $0x6c] ss:$16 sps:$4 sm:$0xff]   ;;  %v9121_v56 = vld [vmem:[%s13318_s3 + $0x60] ss:$16 sps:$4 sm:$0xff]  }
 0x1fe   : > { %3943 = vmatpush1.bf16.msra.mxu0 %v8369_v63  ;;  %4025 = vmatpush1.bf16.msra.mxu1 %v8371_v0  ;;  %v9135_v63 = vld [vmem:[%s13318_s3 + $0xa4] ss:$16 sps:$4 sm:$0xff]   ;;  %v9138_v0 = vld [vmem:[%s13318_s3 + $0xac] ss:$16 sps:$4 sm:$0xff]  }
 0x1ff   : > { %3944 = vmatprep.subr.bf16.mxu0 %v8386_v1  ;;  %4026 = vmatprep.subr.bf16.mxu1 %v8388_v2  ;;  %v9133_v1 = vld [vmem:[%s13318_s3 + $0xa0] ss:$16 sps:$4 sm:$0xff]   ;;  %v9136_v2 = vld [vmem:[%s13318_s3 + $0xa8] ss:$16 sps:$4 sm:$0xff]  }
 0x202   : > { %3945 = vmatpush1.bf16.msra.mxu0 %v8385_v11  ;;  %4027 = vmatpush1.bf16.msra.mxu1 %v8387_v14  ;;  %v9147_v11 = vld [vmem:[%s13318_s3 + $0xe4] ss:$16 sps:$4 sm:$0xff]   ;;  %v9150_v14 = vld [vmem:[%s13318_s3 + $0xec] ss:$16 sps:$4 sm:$0xff]  }
 0x203   : > { %3946 = vmatprep.subr.bf16.mxu0 %v8402_v15  ;;  %4028 = vmatprep.subr.bf16.mxu1 %v8404_v16  ;;  %v9145_v15 = vld [vmem:[%s13318_s3 + $0xe0] ss:$16 sps:$4 sm:$0xff]   ;;  %v9148_v16 = vld [vmem:[%s13318_s3 + $0xe8] ss:$16 sps:$4 sm:$0xff]  }
 0x206   : > { %3947 = vmatpush1.bf16.msra.mxu0 %v8401_v25  ;;  %4029 = vmatpush1.bf16.msra.mxu1 %v8403_v26  ;;  %v9159_v25 = vld [vmem:[%s13318_s3 + $0x124] ss:$16 sps:$4 sm:$0xff]   ;;  %v9162_v26 = vld [vmem:[%s13318_s3 + $0x12c] ss:$16 sps:$4 sm:$0xff]  }
 0x207   : > { %3948 = vmatprep.subr.bf16.mxu0 %v8418_v27  ;;  %4030 = vmatprep.subr.bf16.mxu1 %v8420_v28  ;;  %v9157_v27 = vld [vmem:[%s13318_s3 + $0x120] ss:$16 sps:$4 sm:$0xff]   ;;  %v9160_v28 = vld [vmem:[%s13318_s3 + $0x128] ss:$16 sps:$4 sm:$0xff]  }
 0x20a   : > { %3949 = vmatpush1.bf16.msra.mxu0 %v8417_v34  ;;  %4031 = vmatpush1.bf16.msra.mxu1 %v8419_v35  ;;  %v9174_v34 = vld [vmem:[%s13318_s3 + $0x16c] ss:$16 sps:$4 sm:$0xff]   ;;  %v9169_v35 = vld [vmem:[%s13318_s3 + $0x160] ss:$16 sps:$4 sm:$0xff]  }
 0x20b   : > { %3950 = vmatprep.subr.bf16.mxu0 %v8434_v38  ;;  %4032 = vmatprep.subr.bf16.mxu1 %v8436_v12  ;;  %v9172_v38 = vld [vmem:[%s13318_s3 + $0x168] ss:$16 sps:$4 sm:$0xff]   ;;  %v9177_v12 = vld [vmem:[%s13318_s3 + $0x184] ss:$16 sps:$4 sm:$0xff]  }
 0x20e   : > { %3951 = vmatpush1.bf16.msra.mxu0 %v8433_v41  ;;  %4033 = vmatpush1.bf16.msra.mxu1 %v8435_v42  ;;  %v9175_v41 = vld [vmem:[%s13318_s3 + $0x180] ss:$16 sps:$4 sm:$0xff]   ;;  %v11788_v42 = vsub.s32 0, %v11589_v6 }
 0x20f   : > { %7169 = vmatprep.subr.bf16.mxu0 %v9105_v43  ;;  %7497 = vmatprep.subr.bf16.mxu1 %v9108_v44  ;;  %v9178_v43 = vld [vmem:[%s13318_s3 + $0x188] ss:$16 sps:$4 sm:$0xff]   ;;  %v9183_v44 = vld [vmem:[%s13318_s3 + $0x1a4] ss:$16 sps:$4 sm:$0xff]  }
 0x211   : > { %3953 = vmatmul.mubr.bf16.vlgmr.msra.gmra.mrb[12].mxu0 %v10449_v23  ;;  %4035 = vmatmul.mubr.bf16.vlgmr.msra.gmra.mrb[12].mxu1 %v10449_v23  ;;  %v9120_v23 = vld [vmem:[%s13318_s3 + $0x4c] ss:$16 sps:$4 sm:$0xff]  }
 0x212   : > { %7170 = vmatpush1.bf16.msra.mxu0 %v9103_v37  ;;  %7201 = vmatprep.mubr.bf16.mxu0 %v4060_v47  ;;  %v11800_v37 = vsub.s32 3, %v11589_v6 }
 0x213   : > { %7498 = vmatpush1.bf16.msra.mxu1 %v9106_v46  ;;  %7529 = vmatprep.mubr.bf16.mxu1 %v4060_v47  ;;  %v9181_v46 = vld [vmem:[%s13318_s3 + $0x1a0] ss:$16 sps:$4 sm:$0xff]   ;;  %v9184_v47 = vld [vmem:[%s13318_s3 + $0x1a8] ss:$16 sps:$4 sm:$0xff]  }
 0x214   : > { %7171 = vmatprep.subr.bf16.mxu0 %v9111_v24  ;;  %7499 = vmatprep.subr.bf16.mxu1 %v9114_v48  ;;  %v750_v24 = vrot.slane %v11615_v22, %v11788_v42  ;;  %v9189_v48 = vld [vmem:[%s13318_s3 + $0x1c4] ss:$16 sps:$4 sm:$0xff]  }
 0x216   : > { %7172 = vmatpush1.bf16.msra.mxu0 %v9109_v49  ;;  %v9192_v49 = vld [vmem:[%s13318_s3 + $0x1cc] ss:$16 sps:$4 sm:$0xff]  }
 0x217   : > { %7500 = vmatpush1.bf16.msra.mxu1 %v9112_v50  ;;  %7173 = vmatprep.subr.bf16.mxu0 %v9117_v51  ;;  %v762_v50 = vrot.slane %v11615_v22, %v11800_v37  ;;  %v9187_v51 = vld [vmem:[%s13318_s3 + $0x1c0] ss:$16 sps:$4 sm:$0xff]  }
 0x218   : > { %7501 = vmatprep.subr.bf16.mxu1 %v9120_v23  ;;  %v8956_v23 = vadd.f32 %v11103_v32, %v750_v24  ;;  %v9193_v32 = vld [vmem:[%s13318_s3 + $0x1e0] ss:$16 sps:$4 sm:$0xff]   ;;  %v9246_v24 = vld [vmem:[%s13318_s3 + $0x2ec] ss:$16 sps:$4 sm:$0xff]  }
 0x21a   : > { %7174 = vmatpush1.bf16.msra.mxu0 %v9115_v52  ;;  %v9190_v52 = vld [vmem:[%s13318_s3 + $0x1c8] ss:$16 sps:$4 sm:$0xff]  }
 0x21b   : > { %7502 = vmatpush1.bf16.msra.mxu1 %v9118_v53  ;;  %7175 = vmatprep.subr.bf16.mxu0 %v9123_v54  ;;  %v9195_v53 = vld [vmem:[%s13318_s3 + $0x1e4] ss:$16 sps:$4 sm:$0xff]   ;;  %v9198_v54 = vld [vmem:[%s13318_s3 + $0x1ec] ss:$16 sps:$4 sm:$0xff]  }
 0x21c   : > { %7503 = vmatprep.subr.bf16.mxu1 %v9126_v55  ;;  %v8959_v55 = vadd.f32 %v11121_v40, %v762_v50  ;;  %v9204_v40 = vld [vmem:[%s13318_s3 + $0x20c] ss:$16 sps:$4 sm:$0xff]  }
 0x21d   : > { %v9252_v50 = vld [vmem:[%s13318_s3 + $0x30c] ss:$16 sps:$4 sm:$0xff]  }
 0x21e   : > { %7176 = vmatpush1.bf16.msra.mxu0 %v9121_v56  ;;  %v4043_v56 = vmax.f32 %v8956_v23, 0.0  ;;  %v9250_v23 = vld [vmem:[%s13318_s3 + $0x308] ss:$16 sps:$4 sm:$0xff]  }
 0x21f   : > { %7504 = vmatpush1.bf16.msra.mxu1 %v9124_v58  ;;  %7177 = vmatprep.subr.bf16.mxu0 %v9129_v59  ;;  %v9196_v58 = vld [vmem:[%s13318_s3 + $0x1e8] ss:$16 sps:$4 sm:$0xff]   ;;  %v9201_v59 = vld [vmem:[%s13318_s3 + $0x204] ss:$16 sps:$4 sm:$0xff]  }
 0x220   : > { %7505 = vmatprep.subr.bf16.mxu1 %v9132_v60  ;;  %v4046_v60 = vmax.f32 %v8959_v55, 0.0  ;;  %v9256_v55 = vld [vmem:[%s13318_s3 + $0x328] ss:$16 sps:$4 sm:$0xff]  }
 0x222   : > { %7178 = vmatpush1.bf16.msra.mxu0 %v9127_v61  ;;  %v9199_v61 = vld [vmem:[%s13318_s3 + $0x200] ss:$16 sps:$4 sm:$0xff]  }
 0x223   : > { %7506 = vmatpush1.bf16.msra.mxu1 %v9130_v62  ;;  %7179 = vmatprep.subr.bf16.mxu0 %v9135_v63  ;;  %v4059_v62 = vpack.c.bf16 %v4043_v56, %v4043_v56  ;;  %v9202_v63 = vld [vmem:[%s13318_s3 + $0x208] ss:$16 sps:$4 sm:$0xff]   ;;  %v9264_v56 = vld [vmem:[%s13318_s3 + $0x34c] ss:$16 sps:$4 sm:$0xff]  }
 0x224   : > { %7507 = vmatprep.subr.bf16.mxu1 %v9138_v0  ;;  %v9207_v0 = vld [vmem:[%s13318_s3 + $0x224] ss:$16 sps:$4 sm:$0xff]  }
 0x226   : > { %7180 = vmatpush1.bf16.msra.mxu0 %v9133_v1  ;;  %v4062_v1 = vpack.c.bf16 %v4046_v60, %v4046_v60  ;;  %v9270_v60 = vld [vmem:[%s13318_s3 + $0x36c] ss:$16 sps:$4 sm:$0xff]  }
 0x227   : > { %7508 = vmatpush1.bf16.msra.mxu1 %v9136_v2  ;;  %7181 = vmatprep.subr.bf16.mxu0 %v9141_v3  ;;  %v9210_v2 = vld [vmem:[%s13318_s3 + $0x22c] ss:$16 sps:$4 sm:$0xff]   ;;  %v9205_v3 = vld [vmem:[%s13318_s3 + $0x220] ss:$16 sps:$4 sm:$0xff]  }
 0x228   : > { %7509 = vmatprep.subr.bf16.mxu1 %v9144_v5  ;;  %v9208_v5 = vld [vmem:[%s13318_s3 + $0x228] ss:$16 sps:$4 sm:$0xff]  }
 0x22a   : > { %7182 = vmatpush1.bf16.msra.mxu0 %v9139_v7  ;;  %v9213_v7 = vld [vmem:[%s13318_s3 + $0x244] ss:$16 sps:$4 sm:$0xff]  }
 0x22b   : > { %7510 = vmatpush1.bf16.msra.mxu1 %v9142_v10  ;;  %7183 = vmatprep.subr.bf16.mxu0 %v9147_v11  ;;  %v9216_v10 = vld [vmem:[%s13318_s3 + $0x24c] ss:$16 sps:$4 sm:$0xff]   ;;  %v9211_v11 = vld [vmem:[%s13318_s3 + $0x240] ss:$16 sps:$4 sm:$0xff]  }
 0x22c   : > { %7511 = vmatprep.subr.bf16.mxu1 %v9150_v14  ;;  %v9214_v14 = vld [vmem:[%s13318_s3 + $0x248] ss:$16 sps:$4 sm:$0xff]  }
 0x22e   : > { %7184 = vmatpush1.bf16.msra.mxu0 %v9145_v15  ;;  %v9219_v15 = vld [vmem:[%s13318_s3 + $0x264] ss:$16 sps:$4 sm:$0xff]  }
 0x22f   : > { %7512 = vmatpush1.bf16.msra.mxu1 %v9148_v16  ;;  %7185 = vmatprep.subr.bf16.mxu0 %v9153_v17  ;;  %v9222_v16 = vld [vmem:[%s13318_s3 + $0x26c] ss:$16 sps:$4 sm:$0xff]   ;;  %v9217_v17 = vld [vmem:[%s13318_s3 + $0x260] ss:$16 sps:$4 sm:$0xff]  }
 0x230   : > { %7513 = vmatprep.subr.bf16.mxu1 %v9156_v18  ;;  %v9220_v18 = vld [vmem:[%s13318_s3 + $0x268] ss:$16 sps:$4 sm:$0xff]  }
 0x232   : > { %7186 = vmatpush1.bf16.msra.mxu0 %v9151_v20  ;;  %v9225_v20 = vld [vmem:[%s13318_s3 + $0x284] ss:$16 sps:$4 sm:$0xff]  }
 0x233   : > { %7514 = vmatpush1.bf16.msra.mxu1 %v9154_v21  ;;  %7187 = vmatprep.subr.bf16.mxu0 %v9159_v25  ;;  %v9228_v21 = vld [vmem:[%s13318_s3 + $0x28c] ss:$16 sps:$4 sm:$0xff]   ;;  %v9223_v25 = vld [vmem:[%s13318_s3 + $0x280] ss:$16 sps:$4 sm:$0xff]  }
 0x234   : > { %7515 = vmatprep.subr.bf16.mxu1 %v9162_v26  ;;  %v9226_v26 = vld [vmem:[%s13318_s3 + $0x288] ss:$16 sps:$4 sm:$0xff]  }
 0x236   : > { %7188 = vmatpush1.bf16.msra.mxu0 %v9157_v27  ;;  %v9231_v27 = vld [vmem:[%s13318_s3 + $0x2a4] ss:$16 sps:$4 sm:$0xff]  }
 0x237   : > { %7516 = vmatpush1.bf16.msra.mxu1 %v9160_v28  ;;  %7189 = vmatprep.subr.bf16.mxu0 %v9165_v29  ;;  %v9234_v28 = vld [vmem:[%s13318_s3 + $0x2ac] ss:$16 sps:$4 sm:$0xff]   ;;  %v9229_v29 = vld [vmem:[%s13318_s3 + $0x2a0] ss:$16 sps:$4 sm:$0xff]  }
 0x238   : > { %7517 = vmatprep.subr.bf16.mxu1 %v9168_v30  ;;  %v9232_v30 = vld [vmem:[%s13318_s3 + $0x2a8] ss:$16 sps:$4 sm:$0xff]  }
 0x23a   : > { %7190 = vmatpush1.bf16.msra.mxu0 %v9163_v57  ;;  %v9237_v57 = vld [vmem:[%s13318_s3 + $0x2c4] ss:$16 sps:$4 sm:$0xff]  }
 0x23b   : > { %7518 = vmatpush1.bf16.msra.mxu1 %v9166_v31  ;;  %7191 = vmatprep.subr.bf16.mxu0 %v9171_v33  ;;  %v9240_v33 = vld [vmem:[%s13318_s3 + $0x2cc] ss:$16 sps:$4 sm:$0xff]  }
 0x23c   : > { %7519 = vmatprep.subr.bf16.mxu1 %v9174_v34 }
 0x23e   : > { %7192 = vmatpush1.bf16.msra.mxu0 %v9169_v35 }
 0x23f   : > { %7520 = vmatpush1.bf16.msra.mxu1 %v9172_v38  ;;  %7193 = vmatprep.subr.bf16.mxu0 %v9177_v12 }
 0x240   : > { %7521 = vmatprep.subr.bf16.mxu1 %v9180_v39  ;;  %v9235_v39 = vld [vmem:[%s13318_s3 + $0x2c0] ss:$16 sps:$4 sm:$0xff]  }
 0x242   : > { %7194 = vmatpush1.bf16.msra.mxu0 %v9175_v41 }
 0x243   : > { %7522 = vmatpush1.bf16.msra.mxu1 %v9178_v43  ;;  %7195 = vmatprep.subr.bf16.mxu0 %v9183_v44  ;;  %v9238_v44 = vld [vmem:[%s13318_s3 + $0x2c8] ss:$16 sps:$4 sm:$0xff]  }
 0x244   : > { %7523 = vmatprep.subr.bf16.mxu1 %v9186_v45  ;;  %v9243_v45 = vld [vmem:[%s13318_s3 + $0x2e4] ss:$16 sps:$4 sm:$0xff]  }
 0x246   : > { %7196 = vmatpush1.bf16.msra.mxu0 %v9181_v46 }
 0x247   : > { %7524 = vmatpush1.bf16.msra.mxu1 %v9184_v47  ;;  %7197 = vmatprep.subr.bf16.mxu0 %v9189_v48  ;;  %v9241_v47 = vld [vmem:[%s13318_s3 + $0x2e0] ss:$16 sps:$4 sm:$0xff]   ;;  %v9244_v48 = vld [vmem:[%s13318_s3 + $0x2e8] ss:$16 sps:$4 sm:$0xff]  }
 0x248   : > { %7525 = vmatprep.subr.bf16.mxu1 %v9192_v49  ;;  %v9249_v49 = vld [vmem:[%s13318_s3 + $0x304] ss:$16 sps:$4 sm:$0xff]  }
 0x24a   : > { %7198 = vmatpush1.bf16.msra.mxu0 %v9187_v51  ;;  %v9247_v51 = vld [vmem:[%s13318_s3 + $0x300] ss:$16 sps:$4 sm:$0xff]  }
 0x24b   : > { %7526 = vmatpush1.bf16.msra.mxu1 %v9190_v52  ;;  %7199 = vmatprep.subr.bf16.mxu0 %v9195_v53  ;;  %v9255_v52 = vld [vmem:[%s13318_s3 + $0x324] ss:$16 sps:$4 sm:$0xff]   ;;  %v9258_v53 = vld [vmem:[%s13318_s3 + $0x32c] ss:$16 sps:$4 sm:$0xff]  }
 0x24c   : > { %7527 = vmatprep.subr.bf16.mxu1 %v9198_v54  ;;  %v9253_v54 = vld [vmem:[%s13318_s3 + $0x320] ss:$16 sps:$4 sm:$0xff]  }
 0x24e   : > { %7200 = vmatpush1.bf16.msra.mxu0 %v9193_v32  ;;  %v9261_v32 = vld [vmem:[%s13318_s3 + $0x344] ss:$16 sps:$4 sm:$0xff]  }
 0x24f   : > { %7528 = vmatpush1.bf16.msra.mxu1 %v9196_v58  ;;  %7210 = vmatprep.subr.bf16.mxu0 %v9201_v59  ;;  %v9259_v58 = vld [vmem:[%s13318_s3 + $0x340] ss:$16 sps:$4 sm:$0xff]   ;;  %v9262_v59 = vld [vmem:[%s13318_s3 + $0x348] ss:$16 sps:$4 sm:$0xff]  }
 0x250   : > { %7538 = vmatprep.subr.bf16.mxu1 %v9204_v40  ;;  %v9267_v40 = vld [vmem:[%s13318_s3 + $0x364] ss:$16 sps:$4 sm:$0xff]  }
 0x251   : > { %7202 = vmatmul.mubr.bf16.vlgmr.msra.gmra.mrb[16].mxu0 %v4059_v62 }
 0x252   : > { %7530 = vmatmul.mubr.bf16.vlgmr.msra.gmra.mrb[16].mxu1 %v4059_v62  ;;  %7211 = vmatpush1.bf16.msra.mxu0 %v9199_v61  ;;  %v9265_v61 = vld [vmem:[%s13318_s3 + $0x360] ss:$16 sps:$4 sm:$0xff]   ;;  %v9268_v62 = vld [vmem:[%s13318_s3 + $0x368] ss:$16 sps:$4 sm:$0xff]  }
 0x253   : > { %7242 = vmatprep.mubr.bf16.mxu0 %v4062_v1  ;;  %7539 = vmatpush1.bf16.msra.mxu1 %v9202_v63  ;;  %v9273_v63 = vld [vmem:[%s13318_s3 + $0x384] ss:$16 sps:$4 sm:$0xff]  }
 0x254   : > { %7570 = vmatprep.mubr.bf16.mxu1 %v4062_v1  ;;  %7212 = vmatprep.subr.bf16.mxu0 %v9207_v0  ;;  %v9276_v0 = vld [vmem:[%s13318_s3 + $0x38c] ss:$16 sps:$4 sm:$0xff]   ;;  %v9271_v1 = vld [vmem:[%s13318_s3 + $0x380] ss:$16 sps:$4 sm:$0xff]  }
 0x255   : > { %7540 = vmatprep.subr.bf16.mxu1 %v9210_v2  ;;  %v12000_v2 = vsub.s32 2, %v11589_v6 }
 0x256   : > { %7213 = vmatpush1.bf16.msra.mxu0 %v9205_v3  ;;  %v9274_v3 = vld [vmem:[%s13318_s3 + $0x388] ss:$16 sps:$4 sm:$0xff]  }
 0x257   : > { %7541 = vmatpush1.bf16.msra.mxu1 %v9208_v5  ;;  %7214 = vmatprep.subr.bf16.mxu0 %v9213_v7  ;;  %v9279_v5 = vld [vmem:[%s13318_s3 + $0x3a4] ss:$16 sps:$4 sm:$0xff]   ;;  %v9282_v7 = vld [vmem:[%s13318_s3 + $0x3ac] ss:$16 sps:$4 sm:$0xff]  }
 0x258   : > { %7542 = vmatprep.subr.bf16.mxu1 %v9216_v10  ;;  %v769_v10 = vsub.s32 5, %v11589_v6 }
 0x25a   : > { %7215 = vmatpush1.bf16.msra.mxu0 %v9211_v11  ;;  %v9277_v11 = vld [vmem:[%s13318_s3 + $0x3a0] ss:$16 sps:$4 sm:$0xff]  }
 0x25b   : > { %7543 = vmatpush1.bf16.msra.mxu1 %v9214_v14  ;;  %7216 = vmatprep.subr.bf16.mxu0 %v9219_v15  ;;  %v758_v14 = vrot.slane %v11615_v22, %v12000_v2  ;;  %v9280_v15 = vld [vmem:[%s13318_s3 + $0x3a8] ss:$16 sps:$4 sm:$0xff]  }
 0x25c   : > { %7544 = vmatprep.subr.bf16.mxu1 %v9222_v16  ;;  %v9285_v16 = vld [vmem:[%s13318_s3 + $0x3c4] ss:$16 sps:$4 sm:$0xff]  }
 0x25e   : > { %7217 = vmatpush1.bf16.msra.mxu0 %v9217_v17  ;;  %v9288_v17 = vld [vmem:[%s13318_s3 + $0x3cc] ss:$16 sps:$4 sm:$0xff]  }
 0x25f   : > { %7545 = vmatpush1.bf16.msra.mxu1 %v9220_v18  ;;  %7218 = vmatprep.subr.bf16.mxu0 %v9225_v20  ;;  %v770_v18 = vrot.slane %v11615_v22, %v769_v10  ;;  %v9283_v20 = vld [vmem:[%s13318_s3 + $0x3c0] ss:$16 sps:$4 sm:$0xff]  }
 0x260   : > { %7546 = vmatprep.subr.bf16.mxu1 %v9228_v21  ;;  %v8958_v21 = vadd.f32 %v11111_v36, %v758_v14  ;;  %v9289_v36 = vld [vmem:[%s13318_s3 + $0x3e0] ss:$16 sps:$4 sm:$0xff]   ;;  %v9348_v14 = vld [vmem:[%s13318_s3 + $0x50c] ss:$16 sps:$4 sm:$0xff]  }
 0x262   : > { %7219 = vmatpush1.bf16.msra.mxu0 %v9223_v25  ;;  %v9286_v25 = vld [vmem:[%s13318_s3 + $0x3c8] ss:$16 sps:$4 sm:$0xff]  }
 0x263   : > { %7547 = vmatpush1.bf16.msra.mxu1 %v9226_v26  ;;  %7220 = vmatprep.subr.bf16.mxu0 %v9231_v27  ;;  %v9291_v26 = vld [vmem:[%s13318_s3 + $0x3e4] ss:$16 sps:$4 sm:$0xff]   ;;  %v9294_v27 = vld [vmem:[%s13318_s3 + $0x3ec] ss:$16 sps:$4 sm:$0xff]  }
 0x264   : > { %v11913_v31 = vpop.f32.mrb[8].mxu0  ;;  %7548 = vmatprep.subr.bf16.mxu1 %v9234_v28  ;;  %v11918_v34 = vpop.f32.mrb[8].mxu1  ;;  %v8961_v28 = vadd.f32 %v11513_v9, %v770_v18  ;;  %v9300_v9 = vld [vmem:[%s13318_s3 + $0x40c] ss:$16 sps:$4 sm:$0xff]  }
 0x265   : > { %v11920_v35 = vpop.f32.mrb[9].mxu0  ;;  %v11922_v38 = vpop.f32.mrb[9].mxu1  ;;  %v9354_v18 = vld [vmem:[%s13318_s3 + $0x52c] ss:$16 sps:$4 sm:$0xff]  }
 0x266   : > { %v3794_v12 = vpop.f32.mrb[10].mxu0  ;;  %7221 = vmatpush1.bf16.msra.mxu0 %v9229_v29  ;;  %v3876_v41 = vpop.f32.mrb[10].mxu1  ;;  %v4045_v29 = vmax.f32 %v8958_v21, 0.0  ;;  %v9352_v21 = vld [vmem:[%s13318_s3 + $0x528] ss:$16 sps:$4 sm:$0xff]  }
 0x267   : > { %7549 = vmatpush1.bf16.msra.mxu1 %v9232_v30  ;;  %v3795_v43 = vpop.f32.mrb[11].mxu0  ;;  %7222 = vmatprep.subr.bf16.mxu0 %v9237_v57  ;;  %v3877_v46 = vpop.f32.mrb[11].mxu1  ;;  %v9292_v30 = vld [vmem:[%s13318_s3 + $0x3e8] ss:$16 sps:$4 sm:$0xff]   ;;  %v9297_v57 = vld [vmem:[%s13318_s3 + $0x404] ss:$16 sps:$4 sm:$0xff]  }
 0x268   : > { %7550 = vmatprep.subr.bf16.mxu1 %v9240_v33  ;;  %v4048_v33 = vmax.f32 %v8961_v28, 0.0  ;;  %v9295_v12 = vld [vmem:[%s13318_s3 + $0x400] ss:$16 sps:$4 sm:$0xff]   ;;  %v9298_v41 = vld [vmem:[%s13318_s3 + $0x408] ss:$16 sps:$4 sm:$0xff]  }
 0x269   : > { %v9303_v43 = vld [vmem:[%s13318_s3 + $0x424] ss:$16 sps:$4 sm:$0xff]   ;;  %v9301_v46 = vld [vmem:[%s13318_s3 + $0x420] ss:$16 sps:$4 sm:$0xff]   ;;  %v9358_v28 = vld [vmem:[%s13318_s3 + $0x548] ss:$16 sps:$4 sm:$0xff]  }
 0x26a   : > { %7223 = vmatpush1.bf16.msra.mxu0 %v9235_v39  ;;  %v4061_v39 = vpack.c.bf16 %v4045_v29, %v4045_v29  ;;  %v9366_v29 = vld [vmem:[%s13318_s3 + $0x56c] ss:$16 sps:$4 sm:$0xff]  }
 0x26b   : > { %7551 = vmatpush1.bf16.msra.mxu1 %v9238_v44  ;;  %7224 = vmatprep.subr.bf16.mxu0 %v9243_v45  ;;  %v4064_v44 = vpack.c.bf16 %v4048_v33, %v4048_v33  ;;  %v9306_v45 = vld [vmem:[%s13318_s3 + $0x42c] ss:$16 sps:$4 sm:$0xff]  }
 0x26c   : > { %7552 = vmatprep.subr.bf16.mxu1 %v9246_v24  ;;  %v9304_v24 = vld [vmem:[%s13318_s3 + $0x428] ss:$16 sps:$4 sm:$0xff]   ;;  %v9372_v33 = vld [vmem:[%s13318_s3 + $0x58c] ss:$16 sps:$4 sm:$0xff]  }
 0x26e   : > { %7225 = vmatpush1.bf16.msra.mxu0 %v9241_v47  ;;  %v9309_v47 = vld [vmem:[%s13318_s3 + $0x444] ss:$16 sps:$4 sm:$0xff]  }
 0x26f   : > { %7553 = vmatpush1.bf16.msra.mxu1 %v9244_v48  ;;  %7226 = vmatprep.subr.bf16.mxu0 %v9249_v49  ;;  %v9312_v48 = vld [vmem:[%s13318_s3 + $0x44c] ss:$16 sps:$4 sm:$0xff]   ;;  %v9307_v49 = vld [vmem:[%s13318_s3 + $0x440] ss:$16 sps:$4 sm:$0xff]  }
 0x270   : > { %7554 = vmatprep.subr.bf16.mxu1 %v9252_v50  ;;  %v9310_v50 = vld [vmem:[%s13318_s3 + $0x448] ss:$16 sps:$4 sm:$0xff]  }
 0x272   : > { %7227 = vmatpush1.bf16.msra.mxu0 %v9247_v51  ;;  %v9315_v51 = vld [vmem:[%s13318_s3 + $0x464] ss:$16 sps:$4 sm:$0xff]  }
 0x273   : > { %7555 = vmatpush1.bf16.msra.mxu1 %v9250_v23  ;;  %7228 = vmatprep.subr.bf16.mxu0 %v9255_v52  ;;  %v9318_v23 = vld [vmem:[%s13318_s3 + $0x46c] ss:$16 sps:$4 sm:$0xff]   ;;  %v9313_v52 = vld [vmem:[%s13318_s3 + $0x460] ss:$16 sps:$4 sm:$0xff]  }
 0x274   : > { %7556 = vmatprep.subr.bf16.mxu1 %v9258_v53  ;;  %v9316_v53 = vld [vmem:[%s13318_s3 + $0x468] ss:$16 sps:$4 sm:$0xff]  }
 0x276   : > { %7229 = vmatpush1.bf16.msra.mxu0 %v9253_v54  ;;  %v9321_v54 = vld [vmem:[%s13318_s3 + $0x484] ss:$16 sps:$4 sm:$0xff]  }
 0x277   : > { %7557 = vmatpush1.bf16.msra.mxu1 %v9256_v55  ;;  %7230 = vmatprep.subr.bf16.mxu0 %v9261_v32  ;;  %v9324_v55 = vld [vmem:[%s13318_s3 + $0x48c] ss:$16 sps:$4 sm:$0xff]   ;;  %v9319_v32 = vld [vmem:[%s13318_s3 + $0x480] ss:$16 sps:$4 sm:$0xff]  }
 0x278   : > { %7558 = vmatprep.subr.bf16.mxu1 %v9264_v56  ;;  %v9322_v56 = vld [vmem:[%s13318_s3 + $0x488] ss:$16 sps:$4 sm:$0xff]  }
 0x27a   : > { %7231 = vmatpush1.bf16.msra.mxu0 %v9259_v58  ;;  %v9327_v58 = vld [vmem:[%s13318_s3 + $0x4a4] ss:$16 sps:$4 sm:$0xff]  }
 0x27b   : > { %7559 = vmatpush1.bf16.msra.mxu1 %v9262_v59  ;;  %7232 = vmatprep.subr.bf16.mxu0 %v9267_v40  ;;  %v9330_v59 = vld [vmem:[%s13318_s3 + $0x4ac] ss:$16 sps:$4 sm:$0xff]   ;;  %v9325_v40 = vld [vmem:[%s13318_s3 + $0x4a0] ss:$16 sps:$4 sm:$0xff]  }
 0x27c   : > { %7560 = vmatprep.subr.bf16.mxu1 %v9270_v60  ;;  %v9328_v60 = vld [vmem:[%s13318_s3 + $0x4a8] ss:$16 sps:$4 sm:$0xff]  }
 0x27e   : > { %7233 = vmatpush1.bf16.msra.mxu0 %v9265_v61  ;;  %v9333_v61 = vld [vmem:[%s13318_s3 + $0x4c4] ss:$16 sps:$4 sm:$0xff]  }
 0x27f   : > { %7561 = vmatpush1.bf16.msra.mxu1 %v9268_v62  ;;  %7234 = vmatprep.subr.bf16.mxu0 %v9273_v63  ;;  %v9336_v62 = vld [vmem:[%s13318_s3 + $0x4cc] ss:$16 sps:$4 sm:$0xff]   ;;  %v9331_v63 = vld [vmem:[%s13318_s3 + $0x4c0] ss:$16 sps:$4 sm:$0xff]  }
 0x280   : > { %7562 = vmatprep.subr.bf16.mxu1 %v9276_v0  ;;  %v9334_v0 = vld [vmem:[%s13318_s3 + $0x4c8] ss:$16 sps:$4 sm:$0xff]  }
 0x282   : > { %7235 = vmatpush1.bf16.msra.mxu0 %v9271_v1  ;;  %v9339_v1 = vld [vmem:[%s13318_s3 + $0x4e4] ss:$16 sps:$4 sm:$0xff]  }
 0x283   : > { %7563 = vmatpush1.bf16.msra.mxu1 %v9274_v3  ;;  %7236 = vmatprep.subr.bf16.mxu0 %v9279_v5  ;;  %v9342_v3 = vld [vmem:[%s13318_s3 + $0x4ec] ss:$16 sps:$4 sm:$0xff]   ;;  %v9337_v5 = vld [vmem:[%s13318_s3 + $0x4e0] ss:$16 sps:$4 sm:$0xff]  }
 0x284   : > { %7564 = vmatprep.subr.bf16.mxu1 %v9282_v7  ;;  %v9340_v7 = vld [vmem:[%s13318_s3 + $0x4e8] ss:$16 sps:$4 sm:$0xff]  }
 0x286   : > { %7237 = vmatpush1.bf16.msra.mxu0 %v9277_v11  ;;  %v9345_v11 = vld [vmem:[%s13318_s3 + $0x504] ss:$16 sps:$4 sm:$0xff]  }
 0x287   : > { %7565 = vmatpush1.bf16.msra.mxu1 %v9280_v15  ;;  %7238 = vmatprep.subr.bf16.mxu0 %v9285_v16  ;;  %v9343_v15 = vld [vmem:[%s13318_s3 + $0x500] ss:$16 sps:$4 sm:$0xff]   ;;  %v9346_v16 = vld [vmem:[%s13318_s3 + $0x508] ss:$16 sps:$4 sm:$0xff]  }
 0x288   : > { %7566 = vmatprep.subr.bf16.mxu1 %v9288_v17  ;;  %v9351_v17 = vld [vmem:[%s13318_s3 + $0x524] ss:$16 sps:$4 sm:$0xff]  }
 0x28a   : > { %7239 = vmatpush1.bf16.msra.mxu0 %v9283_v20  ;;  %v9349_v20 = vld [vmem:[%s13318_s3 + $0x520] ss:$16 sps:$4 sm:$0xff]  }
 0x28b   : > { %7567 = vmatpush1.bf16.msra.mxu1 %v9286_v25  ;;  %7240 = vmatprep.subr.bf16.mxu0 %v9291_v26  ;;  %v9357_v25 = vld [vmem:[%s13318_s3 + $0x544] ss:$16 sps:$4 sm:$0xff]   ;;  %v9360_v26 = vld [vmem:[%s13318_s3 + $0x54c] ss:$16 sps:$4 sm:$0xff]  }
 0x28c   : > { %7568 = vmatprep.subr.bf16.mxu1 %v9294_v27  ;;  %v9355_v27 = vld [vmem:[%s13318_s3 + $0x540] ss:$16 sps:$4 sm:$0xff]  }
 0x28e   : > { %7241 = vmatpush1.bf16.msra.mxu0 %v9289_v36  ;;  %v9363_v36 = vld [vmem:[%s13318_s3 + $0x564] ss:$16 sps:$4 sm:$0xff]  }
 0x28f   : > { %7569 = vmatpush1.bf16.msra.mxu1 %v9292_v30  ;;  %7251 = vmatprep.subr.bf16.mxu0 %v9297_v57  ;;  %v9361_v30 = vld [vmem:[%s13318_s3 + $0x560] ss:$16 sps:$4 sm:$0xff]   ;;  %v9364_v57 = vld [vmem:[%s13318_s3 + $0x568] ss:$16 sps:$4 sm:$0xff]  }
 0x290   : > { %7579 = vmatprep.subr.bf16.mxu1 %v9300_v9  ;;  %v9369_v9 = vld [vmem:[%s13318_s3 + $0x584] ss:$16 sps:$4 sm:$0xff]  }
 0x291   : > { %7243 = vmatmul.mubr.bf16.vlgmr.msra.gmra.mrb[16].mxu0 %v4061_v39 }
 0x292   : > { %7571 = vmatmul.mubr.bf16.vlgmr.msra.gmra.mrb[16].mxu1 %v4061_v39  ;;  %7252 = vmatpush1.bf16.msra.mxu0 %v9295_v12  ;;  %v9367_v12 = vld [vmem:[%s13318_s3 + $0x580] ss:$16 sps:$4 sm:$0xff]   ;;  %v765_v39 = vsub.s32 4, %v11589_v6 }
 0x293   : > { %7283 = vmatprep.mubr.bf16.mxu0 %v4064_v44  ;;  %7580 = vmatpush1.bf16.msra.mxu1 %v9298_v41  ;;  %v9370_v41 = vld [vmem:[%s13318_s3 + $0x588] ss:$16 sps:$4 sm:$0xff]  }
 0x294   : > { %7611 = vmatprep.mubr.bf16.mxu1 %v4064_v44  ;;  %7253 = vmatprep.subr.bf16.mxu0 %v9303_v43  ;;  %v9375_v43 = vld [vmem:[%s13318_s3 + $0x5a4] ss:$16 sps:$4 sm:$0xff]   ;;  %v9378_v44 = vld [vmem:[%s13318_s3 + $0x5ac] ss:$16 sps:$4 sm:$0xff]  }
 0x295   : > { %7581 = vmatprep.subr.bf16.mxu1 %v9306_v45  ;;  %v777_v45 = vsub.s32 7, %v11589_v6 }
 0x296   : > { %7254 = vmatpush1.bf16.msra.mxu0 %v9301_v46  ;;  %v9373_v46 = vld [vmem:[%s13318_s3 + $0x5a0] ss:$16 sps:$4 sm:$0xff]  }
 0x297   : > { %7582 = vmatpush1.bf16.msra.mxu1 %v9304_v24  ;;  %7255 = vmatprep.subr.bf16.mxu0 %v9309_v47  ;;  %v766_v24 = vrot.slane %v11615_v22, %v765_v39  ;;  %v9376_v47 = vld [vmem:[%s13318_s3 + $0x5a8] ss:$16 sps:$4 sm:$0xff]  }
 0x298   : > { %7583 = vmatprep.subr.bf16.mxu1 %v9312_v48  ;;  %v9381_v48 = vld [vmem:[%s13318_s3 + $0x5c4] ss:$16 sps:$4 sm:$0xff]  }
 0x29a   : > { %7256 = vmatpush1.bf16.msra.mxu0 %v9307_v49  ;;  %v9384_v49 = vld [vmem:[%s13318_s3 + $0x5cc] ss:$16 sps:$4 sm:$0xff]  }
 0x29b   : > { %7584 = vmatpush1.bf16.msra.mxu1 %v9310_v50  ;;  %7257 = vmatprep.subr.bf16.mxu0 %v9315_v51  ;;  %v778_v50 = vrot.slane %v11615_v22, %v777_v45  ;;  %v9379_v51 = vld [vmem:[%s13318_s3 + $0x5c0] ss:$16 sps:$4 sm:$0xff]   ;;  %v9390_v22 = vld [vmem:[%s13318_s3 + $0x5ec] ss:$16 sps:$4 sm:$0xff]  }
 0x29c   : > { %7585 = vmatprep.subr.bf16.mxu1 %v9318_v23  ;;  %v8960_v23 = vadd.f32 %v11503_v4, %v766_v24  ;;  %v9385_v4 = vld [vmem:[%s13318_s3 + $0x5e0] ss:$16 sps:$4 sm:$0xff]   ;;  %v9430_v24 = vld [vmem:[%s13318_s3 + $0x6c8] ss:$16 sps:$4 sm:$0xff]  }
 0x29e   : > { %7258 = vmatpush1.bf16.msra.mxu0 %v9313_v52  ;;  %v9382_v52 = vld [vmem:[%s13318_s3 + $0x5c8] ss:$16 sps:$4 sm:$0xff]  }
 0x29f   : > { %7586 = vmatpush1.bf16.msra.mxu1 %v9316_v53  ;;  %7259 = vmatprep.subr.bf16.mxu0 %v9321_v54  ;;  %v9387_v53 = vld [vmem:[%s13318_s3 + $0x5e4] ss:$16 sps:$4 sm:$0xff]   ;;  %v8963_v54 = vadd.f32 %v11521_v13, %v778_v50  ;;  %v9396_v13 = vld [vmem:[%s13318_s3 + $0x60c] ss:$16 sps:$4 sm:$0xff]   ;;  %v9433_v50 = vld [vmem:[%s13318_s3 + $0x6e0] ss:$16 sps:$4 sm:$0xff]  }
 0x2a0   : > { %7587 = vmatprep.subr.bf16.mxu1 %v9324_v55  ;;  %v4047_v55 = vmax.f32 %v8960_v23, 0.0  ;;  %v9441_v23 = vld [vmem:[%s13318_s3 + $0x704] ss:$16 sps:$4 sm:$0xff]  }
 0x2a2   : > { %7260 = vmatpush1.bf16.msra.mxu0 %v9319_v32  ;;  %v9388_v32 = vld [vmem:[%s13318_s3 + $0x5e8] ss:$16 sps:$4 sm:$0xff]  }
 0x2a3   : > { %7588 = vmatpush1.bf16.msra.mxu1 %v9322_v56  ;;  %7261 = vmatprep.subr.bf16.mxu0 %v9327_v58  ;;  %v9393_v56 = vld [vmem:[%s13318_s3 + $0x604] ss:$16 sps:$4 sm:$0xff]   ;;  %v4050_v58 = vmax.f32 %v8963_v54, 0.0 }
 0x2a4   : > { %7589 = vmatprep.subr.bf16.mxu1 %v9330_v59  ;;  %v9391_v59 = vld [vmem:[%s13318_s3 + $0x600] ss:$16 sps:$4 sm:$0xff]   ;;  %v9447_v54 = vld [vmem:[%s13318_s3 + $0x724] ss:$16 sps:$4 sm:$0xff]  }
 0x2a6   : > { %7262 = vmatpush1.bf16.msra.mxu0 %v9325_v40  ;;  %v4063_v40 = vpack.c.bf16 %v4047_v55, %v4047_v55  ;;  %v9445_v55 = vld [vmem:[%s13318_s3 + $0x720] ss:$16 sps:$4 sm:$0xff]  }
 0x2a7   : > { %7590 = vmatpush1.bf16.msra.mxu1 %v9328_v60  ;;  %7263 = vmatprep.subr.bf16.mxu0 %v9333_v61  ;;  %v9394_v60 = vld [vmem:[%s13318_s3 + $0x608] ss:$16 sps:$4 sm:$0xff]   ;;  %v9399_v61 = vld [vmem:[%s13318_s3 + $0x624] ss:$16 sps:$4 sm:$0xff]  }
 0x2a8   : > { %7591 = vmatprep.subr.bf16.mxu1 %v9336_v62  ;;  %v4066_v62 = vpack.c.bf16 %v4050_v58, %v4050_v58  ;;  %v9451_v58 = vld [vmem:[%s13318_s3 + $0x740] ss:$16 sps:$4 sm:$0xff]  }
 0x2aa   : > { %7264 = vmatpush1.bf16.msra.mxu0 %v9331_v63  ;;  %v9402_v63 = vld [vmem:[%s13318_s3 + $0x62c] ss:$16 sps:$4 sm:$0xff]  }
 0x2ab   : > { %7592 = vmatpush1.bf16.msra.mxu1 %v9334_v0  ;;  %7265 = vmatprep.subr.bf16.mxu0 %v9339_v1  ;;  %v9397_v0 = vld [vmem:[%s13318_s3 + $0x620] ss:$16 sps:$4 sm:$0xff]   ;;  %v9400_v1 = vld [vmem:[%s13318_s3 + $0x628] ss:$16 sps:$4 sm:$0xff]  }
 0x2ac   : > { %7593 = vmatprep.subr.bf16.mxu1 %v9342_v3  ;;  %v9405_v3 = vld [vmem:[%s13318_s3 + $0x644] ss:$16 sps:$4 sm:$0xff]  }
 0x2ae   : > { %7266 = vmatpush1.bf16.msra.mxu0 %v9337_v5  ;;  %v9408_v5 = vld [vmem:[%s13318_s3 + $0x64c] ss:$16 sps:$4 sm:$0xff]  }
 0x2af   : > { %7594 = vmatpush1.bf16.msra.mxu1 %v9340_v7  ;;  %7267 = vmatprep.subr.bf16.mxu0 %v9345_v11  ;;  %v9403_v7 = vld [vmem:[%s13318_s3 + $0x640] ss:$16 sps:$4 sm:$0xff]   ;;  %v9406_v11 = vld [vmem:[%s13318_s3 + $0x648] ss:$16 sps:$4 sm:$0xff]  }
 0x2b0   : > { %7595 = vmatprep.subr.bf16.mxu1 %v9348_v14  ;;  %v9411_v14 = vld [vmem:[%s13318_s3 + $0x664] ss:$16 sps:$4 sm:$0xff]  }
 0x2b2   : > { %7268 = vmatpush1.bf16.msra.mxu0 %v9343_v15  ;;  %v9414_v15 = vld [vmem:[%s13318_s3 + $0x66c] ss:$16 sps:$4 sm:$0xff]  }
 0x2b3   : > { %7596 = vmatpush1.bf16.msra.mxu1 %v9346_v16  ;;  %7269 = vmatprep.subr.bf16.mxu0 %v9351_v17  ;;  %v9409_v16 = vld [vmem:[%s13318_s3 + $0x660] ss:$16 sps:$4 sm:$0xff]   ;;  %v9412_v17 = vld [vmem:[%s13318_s3 + $0x668] ss:$16 sps:$4 sm:$0xff]  }
 0x2b4   : > { %7597 = vmatprep.subr.bf16.mxu1 %v9354_v18  ;;  %v9417_v18 = vld [vmem:[%s13318_s3 + $0x684] ss:$16 sps:$4 sm:$0xff]  }
 0x2b6   : > { %7270 = vmatpush1.bf16.msra.mxu0 %v9349_v20  ;;  %v9420_v20 = vld [vmem:[%s13318_s3 + $0x68c] ss:$16 sps:$4 sm:$0xff]  }
 0x2b7   : > { %7598 = vmatpush1.bf16.msra.mxu1 %v9352_v21  ;;  %7271 = vmatprep.subr.bf16.mxu0 %v9357_v25  ;;  %v9415_v21 = vld [vmem:[%s13318_s3 + $0x680] ss:$16 sps:$4 sm:$0xff]   ;;  %v9418_v25 = vld [vmem:[%s13318_s3 + $0x688] ss:$16 sps:$4 sm:$0xff]  }
 0x2b8   : > { %7599 = vmatprep.subr.bf16.mxu1 %v9360_v26  ;;  %v9423_v26 = vld [vmem:[%s13318_s3 + $0x6a4] ss:$16 sps:$4 sm:$0xff]  }
 0x2ba   : > { %7272 = vmatpush1.bf16.msra.mxu0 %v9355_v27  ;;  %v9426_v27 = vld [vmem:[%s13318_s3 + $0x6ac] ss:$16 sps:$4 sm:$0xff]  }
 0x2bb   : > { %7600 = vmatpush1.bf16.msra.mxu1 %v9358_v28  ;;  %7273 = vmatprep.subr.bf16.mxu0 %v9363_v36  ;;  %v9421_v28 = vld [vmem:[%s13318_s3 + $0x6a0] ss:$16 sps:$4 sm:$0xff]   ;;  %v9424_v36 = vld [vmem:[%s13318_s3 + $0x6a8] ss:$16 sps:$4 sm:$0xff]  }
 0x2bc   : > { %7601 = vmatprep.subr.bf16.mxu1 %v9366_v29  ;;  %v9429_v29 = vld [vmem:[%s13318_s3 + $0x6c4] ss:$16 sps:$4 sm:$0xff]  }
 0x2be   : > { %7274 = vmatpush1.bf16.msra.mxu0 %v9361_v30 }
 0x2bf   : > { %7602 = vmatpush1.bf16.msra.mxu1 %v9364_v57  ;;  %7275 = vmatprep.subr.bf16.mxu0 %v9369_v9  ;;  %v9432_v57 = vld [vmem:[%s13318_s3 + $0x6cc] ss:$16 sps:$4 sm:$0xff]  }
 0x2c0   : > { %7603 = vmatprep.subr.bf16.mxu1 %v9372_v33 }
 0x2c2   : > { %7276 = vmatpush1.bf16.msra.mxu0 %v9367_v12 }
 0x2c3   : > { %7604 = vmatpush1.bf16.msra.mxu1 %v9370_v41  ;;  %7277 = vmatprep.subr.bf16.mxu0 %v9375_v43  ;;  %v9427_v43 = vld [vmem:[%s13318_s3 + $0x6c0] ss:$16 sps:$4 sm:$0xff]  }
 0x2c4   : > { %7605 = vmatprep.subr.bf16.mxu1 %v9378_v44 }
 0x2c6   : > { %7278 = vmatpush1.bf16.msra.mxu0 %v9373_v46 }
 0x2c7   : > { %7606 = vmatpush1.bf16.msra.mxu1 %v9376_v47  ;;  %7279 = vmatprep.subr.bf16.mxu0 %v9381_v48  ;;  %v9435_v47 = vld [vmem:[%s13318_s3 + $0x6e4] ss:$16 sps:$4 sm:$0xff]  }
 0x2c8   : > { %7607 = vmatprep.subr.bf16.mxu1 %v9384_v49  ;;  %v9438_v49 = vld [vmem:[%s13318_s3 + $0x6ec] ss:$16 sps:$4 sm:$0xff]  }
 0x2ca   : > { %7280 = vmatpush1.bf16.msra.mxu0 %v9379_v51  ;;  %v9436_v51 = vld [vmem:[%s13318_s3 + $0x6e8] ss:$16 sps:$4 sm:$0xff]  }
 0x2cb   : > { %7608 = vmatpush1.bf16.msra.mxu1 %v9382_v52  ;;  %7281 = vmatprep.subr.bf16.mxu0 %v9387_v53  ;;  %v9444_v52 = vld [vmem:[%s13318_s3 + $0x70c] ss:$16 sps:$4 sm:$0xff]   ;;  %v9439_v53 = vld [vmem:[%s13318_s3 + $0x700] ss:$16 sps:$4 sm:$0xff]  }
 0x2cc   : > { %7609 = vmatprep.subr.bf16.mxu1 %v9390_v22  ;;  %v9442_v22 = vld [vmem:[%s13318_s3 + $0x708] ss:$16 sps:$4 sm:$0xff]  }
 0x2ce   : > { %7282 = vmatpush1.bf16.msra.mxu0 %v9385_v4  ;;  %v9450_v4 = vld [vmem:[%s13318_s3 + $0x72c] ss:$16 sps:$4 sm:$0xff]  }
 0x2cf   : > { %7610 = vmatpush1.bf16.msra.mxu1 %v9388_v32  ;;  %7292 = vmatprep.subr.bf16.mxu0 %v9393_v56  ;;  %v9448_v32 = vld [vmem:[%s13318_s3 + $0x728] ss:$16 sps:$4 sm:$0xff]   ;;  %v9453_v56 = vld [vmem:[%s13318_s3 + $0x744] ss:$16 sps:$4 sm:$0xff]  }
 0x2d0   : > { %7620 = vmatprep.subr.bf16.mxu1 %v9396_v13  ;;  %v9456_v13 = vld [vmem:[%s13318_s3 + $0x74c] ss:$16 sps:$4 sm:$0xff]  }
 0x2d1   : > { %7284 = vmatmul.mubr.bf16.vlgmr.msra.gmra.mrb[16].mxu0 %v4063_v40 }
 0x2d2   : > { %7612 = vmatmul.mubr.bf16.vlgmr.msra.gmra.mrb[16].mxu1 %v4063_v40  ;;  %7293 = vmatpush1.bf16.msra.mxu0 %v9391_v59  ;;  %v9454_v59 = vld [vmem:[%s13318_s3 + $0x748] ss:$16 sps:$4 sm:$0xff]   ;;  %v9459_v40 = vld [vmem:[%s13318_s3 + $0x764] ss:$16 sps:$4 sm:$0xff]  }
 0x2d3   : > { %7324 = vmatprep.mubr.bf16.mxu0 %v4066_v62  ;;  %7621 = vmatpush1.bf16.msra.mxu1 %v9394_v60  ;;  %v9462_v60 = vld [vmem:[%s13318_s3 + $0x76c] ss:$16 sps:$4 sm:$0xff]  }
 0x2d4   : > { %7652 = vmatprep.mubr.bf16.mxu1 %v4066_v62  ;;  %7294 = vmatprep.subr.bf16.mxu0 %v9399_v61  ;;  %v9457_v61 = vld [vmem:[%s13318_s3 + $0x760] ss:$16 sps:$4 sm:$0xff]   ;;  %v9460_v62 = vld [vmem:[%s13318_s3 + $0x768] ss:$16 sps:$4 sm:$0xff]  }
 0x2d5   : > { %7622 = vmatprep.subr.bf16.mxu1 %v9402_v63  ;;  %v9465_v63 = vld [vmem:[%s13318_s3 + $0x784] ss:$16 sps:$4 sm:$0xff]  }
 0x2d6   : > { %7295 = vmatpush1.bf16.msra.mxu0 %v9397_v0  ;;  %v9468_v0 = vld [vmem:[%s13318_s3 + $0x78c] ss:$16 sps:$4 sm:$0xff]  }
 0x2d7   : > { %7623 = vmatpush1.bf16.msra.mxu1 %v9400_v1  ;;  %7296 = vmatprep.subr.bf16.mxu0 %v9405_v3  ;;  %v9463_v1 = vld [vmem:[%s13318_s3 + $0x780] ss:$16 sps:$4 sm:$0xff]   ;;  %v773_v3 = vsub.s32 6, %v11589_v6 }
 0x2d8   : > { %7624 = vmatprep.subr.bf16.mxu1 %v9408_v5  ;;  %v9466_v5 = vld [vmem:[%s13318_s3 + $0x788] ss:$16 sps:$4 sm:$0xff]   ;;  %v9859_v6 = vld [vmem:[%s13318_s3 + $0xfc0] ss:$16 sps:$4 sm:$0xff]  }
 0x2da   : > { %7297 = vmatpush1.bf16.msra.mxu0 %v9403_v7  ;;  %v9471_v7 = vld [vmem:[%s13318_s3 + $0x7a4] ss:$16 sps:$4 sm:$0xff]  }
 0x2db   : > { %7625 = vmatpush1.bf16.msra.mxu1 %v9406_v11  ;;  %7298 = vmatprep.subr.bf16.mxu0 %v9411_v14  ;;  %v9474_v11 = vld [vmem:[%s13318_s3 + $0x7ac] ss:$16 sps:$4 sm:$0xff]  }
 0x2dc   : > { %7626 = vmatprep.subr.bf16.mxu1 %v9414_v15  ;;  %v12425_v14 = vld [vmem:[%s13317_s2 + $0x8] sm:$0xff]  ;;  %v9469_v15 = vld [vmem:[%s13318_s3 + $0x7a0] ss:$16 sps:$4 sm:$0xff]  }
 0x2de   : > { %7299 = vmatpush1.bf16.msra.mxu0 %v9409_v16  ;;  %v9873_v16 = vld [vmem:[%s13317_s2] sm:$0xff] }
 0x2df   : > { %7627 = vmatpush1.bf16.msra.mxu1 %v9412_v17  ;;  %7300 = vmatprep.subr.bf16.mxu0 %v9417_v18  ;;  %v774_v17 = vrot.slane %v9873_v16, %v773_v3  ;;  %v9472_v18 = vld [vmem:[%s13318_s3 + $0x7a8] ss:$16 sps:$4 sm:$0xff]   ;;  %v9534_v16 = vld [vmem:[%s13318_s3 + $0x8ec] ss:$16 sps:$4 sm:$0xff]  }
 0x2e0   : > { %7628 = vmatprep.subr.bf16.mxu1 %v9420_v20  ;;  %v9477_v20 = vld [vmem:[%s13318_s3 + $0x7c4] ss:$16 sps:$4 sm:$0xff]  }
 0x2e2   : > { %7301 = vmatpush1.bf16.msra.mxu0 %v9415_v21  ;;  %v9480_v21 = vld [vmem:[%s13318_s3 + $0x7cc] ss:$16 sps:$4 sm:$0xff]  }
 0x2e3   : > { %7629 = vmatpush1.bf16.msra.mxu1 %v9418_v25  ;;  %7302 = vmatprep.subr.bf16.mxu0 %v9423_v26  ;;  %v786_v25 = vrot.slane %v12425_v14, %v11604_v19  ;;  %v9475_v26 = vld [vmem:[%s13318_s3 + $0x7c0] ss:$16 sps:$4 sm:$0xff]  }
 0x2e4   : > { %v12326_v30 = vpop.f32.mrb[12].mxu0  ;;  %7630 = vmatprep.subr.bf16.mxu1 %v9426_v27  ;;  %v12331_v9 = vpop.f32.mrb[12].mxu1  ;;  %v8962_v27 = vadd.f32 %v11511_v8, %v774_v17  ;;  %v9481_v8 = vld [vmem:[%s13318_s3 + $0x7e0] ss:$16 sps:$4 sm:$0xff]  }
 0x2e5   : > { %v12333_v33 = vpop.f32.mrb[13].mxu0  ;;  %v12335_v12 = vpop.f32.mrb[13].mxu1  ;;  %v9529_v17 = vld [vmem:[%s13318_s3 + $0x8e0] ss:$16 sps:$4 sm:$0xff]  }
 0x2e6   : > { %v3958_v41 = vpop.f32.mrb[14].mxu0  ;;  %7303 = vmatpush1.bf16.msra.mxu0 %v9421_v28  ;;  %v4040_v44 = vpop.f32.mrb[14].mxu1  ;;  %v9478_v28 = vld [vmem:[%s13318_s3 + $0x7c8] ss:$16 sps:$4 sm:$0xff]  }
 0x2e7   : > { %7631 = vmatpush1.bf16.msra.mxu1 %v9424_v36  ;;  %v3959_v46 = vpop.f32.mrb[15].mxu0  ;;  %7304 = vmatprep.subr.bf16.mxu0 %v9429_v29  ;;  %v4041_v48 = vpop.f32.mrb[15].mxu1  ;;  %v9483_v36 = vld [vmem:[%s13318_s3 + $0x7e4] ss:$16 sps:$4 sm:$0xff]   ;;  %v9486_v29 = vld [vmem:[%s13318_s3 + $0x7ec] ss:$16 sps:$4 sm:$0xff]  }
 0x2e8   : > { %7632 = vmatprep.subr.bf16.mxu1 %v9432_v57  ;;  %v8965_v57 = vadd.f32 %v11920_v35, %v786_v25  ;;  %v4049_v41 = vmax.f32 %v8962_v27, 0.0  ;;  %v9489_v44 = vld [vmem:[%s13318_s3 + $0x804] ss:$16 sps:$4 sm:$0xff]   ;;  %v9492_v35 = vld [vmem:[%s13318_s3 + $0x80c] ss:$16 sps:$4 sm:$0xff]  }
 0x2e9   : > { %v9490_v48 = vld [vmem:[%s13318_s3 + $0x808] ss:$16 sps:$4 sm:$0xff]   ;;  %v9535_v25 = vld [vmem:[%s13318_s3 + $0x900] ss:$16 sps:$4 sm:$0xff]   ;;  %v9543_v27 = vld [vmem:[%s13318_s3 + $0x924] ss:$16 sps:$4 sm:$0xff]  }
 0x2ea   : > { %7305 = vmatpush1.bf16.msra.mxu0 %v9427_v43  ;;  %v9484_v43 = vld [vmem:[%s13318_s3 + $0x7e8] ss:$16 sps:$4 sm:$0xff]   ;;  %v4052_v46 = vmax.f32 %v8965_v57, 0.0  ;;  %v9549_v57 = vld [vmem:[%s13318_s3 + $0x944] ss:$16 sps:$4 sm:$0xff]  }
 0x2eb   : > { %7633 = vmatpush1.bf16.msra.mxu1 %v9430_v24  ;;  %7306 = vmatprep.subr.bf16.mxu0 %v9435_v47  ;;  %v9487_v24 = vld [vmem:[%s13318_s3 + $0x800] ss:$16 sps:$4 sm:$0xff]   ;;  %v4065_v47 = vpack.c.bf16 %v4049_v41, %v4049_v41 }
 0x2ec   : > { %7634 = vmatprep.subr.bf16.mxu1 %v9438_v49  ;;  %v9495_v49 = vld [vmem:[%s13318_s3 + $0x824] ss:$16 sps:$4 sm:$0xff]   ;;  %v9547_v41 = vld [vmem:[%s13318_s3 + $0x940] ss:$16 sps:$4 sm:$0xff]  }
 0x2ee   : > { %7307 = vmatpush1.bf16.msra.mxu0 %v9433_v50  ;;  %v4068_v50 = vpack.c.bf16 %v4052_v46, %v4052_v46  ;;  %v9553_v46 = vld [vmem:[%s13318_s3 + $0x960] ss:$16 sps:$4 sm:$0xff]  }
 0x2ef   : > { %7635 = vmatpush1.bf16.msra.mxu1 %v9436_v51  ;;  %7308 = vmatprep.subr.bf16.mxu0 %v9441_v23  ;;  %v9498_v51 = vld [vmem:[%s13318_s3 + $0x82c] ss:$16 sps:$4 sm:$0xff]   ;;  %v9493_v23 = vld [vmem:[%s13318_s3 + $0x820] ss:$16 sps:$4 sm:$0xff]  }
 0x2f0   : > { %7636 = vmatprep.subr.bf16.mxu1 %v9444_v52  ;;  %v9496_v52 = vld [vmem:[%s13318_s3 + $0x828] ss:$16 sps:$4 sm:$0xff]  }
 0x2f2   : > { %7309 = vmatpush1.bf16.msra.mxu0 %v9439_v53  ;;  %v9501_v53 = vld [vmem:[%s13318_s3 + $0x844] ss:$16 sps:$4 sm:$0xff]  }
 0x2f3   : > { %7637 = vmatpush1.bf16.msra.mxu1 %v9442_v22  ;;  %7310 = vmatprep.subr.bf16.mxu0 %v9447_v54  ;;  %v9504_v22 = vld [vmem:[%s13318_s3 + $0x84c] ss:$16 sps:$4 sm:$0xff]   ;;  %v9499_v54 = vld [vmem:[%s13318_s3 + $0x840] ss:$16 sps:$4 sm:$0xff]  }
 0x2f4   : > { %7638 = vmatprep.subr.bf16.mxu1 %v9450_v4  ;;  %v9502_v4 = vld [vmem:[%s13318_s3 + $0x848] ss:$16 sps:$4 sm:$0xff]  }
 0x2f6   : > { %7311 = vmatpush1.bf16.msra.mxu0 %v9445_v55  ;;  %v9507_v55 = vld [vmem:[%s13318_s3 + $0x864] ss:$16 sps:$4 sm:$0xff]  }
 0x2f7   : > { %7639 = vmatpush1.bf16.msra.mxu1 %v9448_v32  ;;  %7312 = vmatprep.subr.bf16.mxu0 %v9453_v56  ;;  %v9510_v32 = vld [vmem:[%s13318_s3 + $0x86c] ss:$16 sps:$4 sm:$0xff]   ;;  %v9505_v56 = vld [vmem:[%s13318_s3 + $0x860] ss:$16 sps:$4 sm:$0xff]  }
 0x2f8   : > { %7640 = vmatprep.subr.bf16.mxu1 %v9456_v13  ;;  %v9508_v13 = vld [vmem:[%s13318_s3 + $0x868] ss:$16 sps:$4 sm:$0xff]  }
 0x2fa   : > { %7313 = vmatpush1.bf16.msra.mxu0 %v9451_v58  ;;  %v9513_v58 = vld [vmem:[%s13318_s3 + $0x884] ss:$16 sps:$4 sm:$0xff]  }
 0x2fb   : > { %7641 = vmatpush1.bf16.msra.mxu1 %v9454_v59  ;;  %7314 = vmatprep.subr.bf16.mxu0 %v9459_v40  ;;  %v9516_v59 = vld [vmem:[%s13318_s3 + $0x88c] ss:$16 sps:$4 sm:$0xff]   ;;  %v9511_v40 = vld [vmem:[%s13318_s3 + $0x880] ss:$16 sps:$4 sm:$0xff]  }
 0x2fc   : > { %7642 = vmatprep.subr.bf16.mxu1 %v9462_v60  ;;  %v9514_v60 = vld [vmem:[%s13318_s3 + $0x888] ss:$16 sps:$4 sm:$0xff]  }
 0x2fe   : > { %7315 = vmatpush1.bf16.msra.mxu0 %v9457_v61  ;;  %v9519_v61 = vld [vmem:[%s13318_s3 + $0x8a4] ss:$16 sps:$4 sm:$0xff]  }
 0x2ff   : > { %7643 = vmatpush1.bf16.msra.mxu1 %v9460_v62  ;;  %7316 = vmatprep.subr.bf16.mxu0 %v9465_v63  ;;  %v9522_v62 = vld [vmem:[%s13318_s3 + $0x8ac] ss:$16 sps:$4 sm:$0xff]   ;;  %v9517_v63 = vld [vmem:[%s13318_s3 + $0x8a0] ss:$16 sps:$4 sm:$0xff]  }
 0x300   : > { %7644 = vmatprep.subr.bf16.mxu1 %v9468_v0  ;;  %v9520_v0 = vld [vmem:[%s13318_s3 + $0x8a8] ss:$16 sps:$4 sm:$0xff]  }
 0x302   : > { %7317 = vmatpush1.bf16.msra.mxu0 %v9463_v1  ;;  %v9525_v1 = vld [vmem:[%s13318_s3 + $0x8c4] ss:$16 sps:$4 sm:$0xff]  }
 0x303   : > { %7645 = vmatpush1.bf16.msra.mxu1 %v9466_v5  ;;  %7318 = vmatprep.subr.bf16.mxu0 %v9471_v7  ;;  %v9528_v5 = vld [vmem:[%s13318_s3 + $0x8cc] ss:$16 sps:$4 sm:$0xff]   ;;  %v9523_v7 = vld [vmem:[%s13318_s3 + $0x8c0] ss:$16 sps:$4 sm:$0xff]  }
 0x304   : > { %7646 = vmatprep.subr.bf16.mxu1 %v9474_v11  ;;  %v9526_v11 = vld [vmem:[%s13318_s3 + $0x8c8] ss:$16 sps:$4 sm:$0xff]  }
 0x306   : > { %7319 = vmatpush1.bf16.msra.mxu0 %v9469_v15  ;;  %v9531_v15 = vld [vmem:[%s13318_s3 + $0x8e4] ss:$16 sps:$4 sm:$0xff]  }
 0x307   : > { %7647 = vmatpush1.bf16.msra.mxu1 %v9472_v18  ;;  %7320 = vmatprep.subr.bf16.mxu0 %v9477_v20  ;;  %v9532_v18 = vld [vmem:[%s13318_s3 + $0x8e8] ss:$16 sps:$4 sm:$0xff]   ;;  %v9537_v20 = vld [vmem:[%s13318_s3 + $0x904] ss:$16 sps:$4 sm:$0xff]  }
 0x308   : > { %7648 = vmatprep.subr.bf16.mxu1 %v9480_v21  ;;  %v9540_v21 = vld [vmem:[%s13318_s3 + $0x90c] ss:$16 sps:$4 sm:$0xff]  }
 0x30a   : > { %7321 = vmatpush1.bf16.msra.mxu0 %v9475_v26  ;;  %v9538_v26 = vld [vmem:[%s13318_s3 + $0x908] ss:$16 sps:$4 sm:$0xff]  }
 0x30b   : > { %7649 = vmatpush1.bf16.msra.mxu1 %v9478_v28  ;;  %7322 = vmatprep.subr.bf16.mxu0 %v9483_v36  ;;  %v9546_v28 = vld [vmem:[%s13318_s3 + $0x92c] ss:$16 sps:$4 sm:$0xff]   ;;  %v9541_v36 = vld [vmem:[%s13318_s3 + $0x920] ss:$16 sps:$4 sm:$0xff]  }
 0x30c   : > { %7650 = vmatprep.subr.bf16.mxu1 %v9486_v29  ;;  %v9544_v29 = vld [vmem:[%s13318_s3 + $0x928] ss:$16 sps:$4 sm:$0xff]  }
 0x30e   : > { %7323 = vmatpush1.bf16.msra.mxu0 %v9481_v8  ;;  %v9552_v8 = vld [vmem:[%s13318_s3 + $0x94c] ss:$16 sps:$4 sm:$0xff]  }
 0x30f   : > { %7651 = vmatpush1.bf16.msra.mxu1 %v9484_v43  ;;  %7333 = vmatprep.subr.bf16.mxu0 %v9489_v44  ;;  %v9550_v43 = vld [vmem:[%s13318_s3 + $0x948] ss:$16 sps:$4 sm:$0xff]   ;;  %v9555_v44 = vld [vmem:[%s13318_s3 + $0x964] ss:$16 sps:$4 sm:$0xff]  }
 0x310   : > { %7661 = vmatprep.subr.bf16.mxu1 %v9492_v35  ;;  %v9558_v35 = vld [vmem:[%s13318_s3 + $0x96c] ss:$16 sps:$4 sm:$0xff]  }
 0x311   : > { %7325 = vmatmul.mubr.bf16.vlgmr.msra.gmra.mrb[16].mxu0 %v4065_v47 }
 0x312   : > { %7653 = vmatmul.mubr.bf16.vlgmr.msra.gmra.mrb[16].mxu1 %v4065_v47  ;;  %7334 = vmatpush1.bf16.msra.mxu0 %v9487_v24  ;;  %v9556_v24 = vld [vmem:[%s13318_s3 + $0x968] ss:$16 sps:$4 sm:$0xff]   ;;  %v9561_v47 = vld [vmem:[%s13318_s3 + $0x984] ss:$16 sps:$4 sm:$0xff]  }
 0x313   : > { %7365 = vmatprep.mubr.bf16.mxu0 %v4068_v50  ;;  %7662 = vmatpush1.bf16.msra.mxu1 %v9490_v48  ;;  %v9564_v48 = vld [vmem:[%s13318_s3 + $0x98c] ss:$16 sps:$4 sm:$0xff]  }
 0x314   : > { %7693 = vmatprep.mubr.bf16.mxu1 %v4068_v50  ;;  %7335 = vmatprep.subr.bf16.mxu0 %v9495_v49  ;;  %v9559_v49 = vld [vmem:[%s13318_s3 + $0x980] ss:$16 sps:$4 sm:$0xff]   ;;  %v9562_v50 = vld [vmem:[%s13318_s3 + $0x988] ss:$16 sps:$4 sm:$0xff]  }
 0x315   : > { %7663 = vmatprep.subr.bf16.mxu1 %v9498_v51  ;;  %v9567_v51 = vld [vmem:[%s13318_s3 + $0x9a4] ss:$16 sps:$4 sm:$0xff]  }
 0x316   : > { %7336 = vmatpush1.bf16.msra.mxu0 %v9493_v23  ;;  %v9570_v23 = vld [vmem:[%s13318_s3 + $0x9ac] ss:$16 sps:$4 sm:$0xff]  }
 0x317   : > { %7664 = vmatpush1.bf16.msra.mxu1 %v9496_v52  ;;  %7337 = vmatprep.subr.bf16.mxu0 %v9501_v53  ;;  %v9565_v52 = vld [vmem:[%s13318_s3 + $0x9a0] ss:$16 sps:$4 sm:$0xff]   ;;  %v782_v53 = vrot.slane %v12425_v14, %v11788_v42 }
 0x318   : > { %7665 = vmatprep.subr.bf16.mxu1 %v9504_v22  ;;  %v9568_v22 = vld [vmem:[%s13318_s3 + $0x9a8] ss:$16 sps:$4 sm:$0xff]  }
 0x31a   : > { %7338 = vmatpush1.bf16.msra.mxu0 %v9499_v54  ;;  %v9573_v54 = vld [vmem:[%s13318_s3 + $0x9c4] ss:$16 sps:$4 sm:$0xff]  }
 0x31b   : > { %7666 = vmatpush1.bf16.msra.mxu1 %v9502_v4  ;;  %7339 = vmatprep.subr.bf16.mxu0 %v9507_v55  ;;  %v9576_v4 = vld [vmem:[%s13318_s3 + $0x9cc] ss:$16 sps:$4 sm:$0xff]   ;;  %v794_v55 = vrot.slane %v12425_v14, %v11800_v37 }
 0x31c   : > { %7667 = vmatprep.subr.bf16.mxu1 %v9510_v32  ;;  %v9571_v32 = vld [vmem:[%s13318_s3 + $0x9c0] ss:$16 sps:$4 sm:$0xff]  }
 0x31e   : > { %7340 = vmatpush1.bf16.msra.mxu0 %v9505_v56  ;;  %v8964_v56 = vadd.f32 %v11913_v31, %v782_v53  ;;  %v9577_v31 = vld [vmem:[%s13318_s3 + $0x9e0] ss:$16 sps:$4 sm:$0xff]   ;;  %v9633_v53 = vld [vmem:[%s13318_s3 + $0xb04] ss:$16 sps:$4 sm:$0xff]  }
 0x31f   : > { %7668 = vmatpush1.bf16.msra.mxu1 %v9508_v13  ;;  %7341 = vmatprep.subr.bf16.mxu0 %v9513_v58  ;;  %v9574_v13 = vld [vmem:[%s13318_s3 + $0x9c8] ss:$16 sps:$4 sm:$0xff]   ;;  %v9579_v58 = vld [vmem:[%s13318_s3 + $0x9e4] ss:$16 sps:$4 sm:$0xff]  }
 0x320   : > { %7669 = vmatprep.subr.bf16.mxu1 %v9516_v59  ;;  %v9582_v59 = vld [vmem:[%s13318_s3 + $0x9ec] ss:$16 sps:$4 sm:$0xff]  }
 0x322   : > { %7342 = vmatpush1.bf16.msra.mxu0 %v9511_v40  ;;  %v8967_v40 = vadd.f32 %v11922_v38, %v794_v55  ;;  %v9588_v38 = vld [vmem:[%s13318_s3 + $0xa0c] ss:$16 sps:$4 sm:$0xff]   ;;  %v9639_v55 = vld [vmem:[%s13318_s3 + $0xb24] ss:$16 sps:$4 sm:$0xff]  }
 0x323   : > { %7670 = vmatpush1.bf16.msra.mxu1 %v9514_v60  ;;  %7343 = vmatprep.subr.bf16.mxu0 %v9519_v61  ;;  %v4051_v60 = vmax.f32 %v8964_v56, 0.0  ;;  %v9580_v61 = vld [vmem:[%s13318_s3 + $0x9e8] ss:$16 sps:$4 sm:$0xff]   ;;  %v9637_v56 = vld [vmem:[%s13318_s3 + $0xb20] ss:$16 sps:$4 sm:$0xff]  }
 0x324   : > { %7671 = vmatprep.subr.bf16.mxu1 %v9522_v62  ;;  %v9585_v62 = vld [vmem:[%s13318_s3 + $0xa04] ss:$16 sps:$4 sm:$0xff]  }
 0x326   : > { %7344 = vmatpush1.bf16.msra.mxu0 %v9517_v63  ;;  %v4054_v63 = vmax.f32 %v8967_v40, 0.0  ;;  %v9643_v40 = vld [vmem:[%s13318_s3 + $0xb40] ss:$16 sps:$4 sm:$0xff]  }
 0x327   : > { %7672 = vmatpush1.bf16.msra.mxu1 %v9520_v0  ;;  %7345 = vmatprep.subr.bf16.mxu0 %v9525_v1  ;;  %v9583_v0 = vld [vmem:[%s13318_s3 + $0xa00] ss:$16 sps:$4 sm:$0xff]   ;;  %v4067_v1 = vpack.c.bf16 %v4051_v60, %v4051_v60  ;;  %v9651_v60 = vld [vmem:[%s13318_s3 + $0xb64] ss:$16 sps:$4 sm:$0xff]  }
 0x328   : > { %7673 = vmatprep.subr.bf16.mxu1 %v9528_v5  ;;  %v9586_v5 = vld [vmem:[%s13318_s3 + $0xa08] ss:$16 sps:$4 sm:$0xff]  }
 0x32a   : > { %7346 = vmatpush1.bf16.msra.mxu0 %v9523_v7  ;;  %v9591_v7 = vld [vmem:[%s13318_s3 + $0xa24] ss:$16 sps:$4 sm:$0xff]  }
 0x32b   : > { %7674 = vmatpush1.bf16.msra.mxu1 %v9526_v11  ;;  %7347 = vmatprep.subr.bf16.mxu0 %v9531_v15  ;;  %v4070_v11 = vpack.c.bf16 %v4054_v63, %v4054_v63  ;;  %v9594_v15 = vld [vmem:[%s13318_s3 + $0xa2c] ss:$16 sps:$4 sm:$0xff]   ;;  %v9657_v63 = vld [vmem:[%s13318_s3 + $0xb84] ss:$16 sps:$4 sm:$0xff]  }
 0x32c   : > { %7675 = vmatprep.subr.bf16.mxu1 %v9534_v16  ;;  %v9589_v16 = vld [vmem:[%s13318_s3 + $0xa20] ss:$16 sps:$4 sm:$0xff]  }
 0x32e   : > { %7348 = vmatpush1.bf16.msra.mxu0 %v9529_v17  ;;  %v9592_v17 = vld [vmem:[%s13318_s3 + $0xa28] ss:$16 sps:$4 sm:$0xff]  }
 0x32f   : > { %7676 = vmatpush1.bf16.msra.mxu1 %v9532_v18  ;;  %7349 = vmatprep.subr.bf16.mxu0 %v9537_v20  ;;  %v9597_v18 = vld [vmem:[%s13318_s3 + $0xa44] ss:$16 sps:$4 sm:$0xff]   ;;  %v9600_v20 = vld [vmem:[%s13318_s3 + $0xa4c] ss:$16 sps:$4 sm:$0xff]  }
 0x330   : > { %7677 = vmatprep.subr.bf16.mxu1 %v9540_v21  ;;  %v9595_v21 = vld [vmem:[%s13318_s3 + $0xa40] ss:$16 sps:$4 sm:$0xff]  }
 0x332   : > { %7350 = vmatpush1.bf16.msra.mxu0 %v9535_v25  ;;  %v9598_v25 = vld [vmem:[%s13318_s3 + $0xa48] ss:$16 sps:$4 sm:$0xff]  }
 0x333   : > { %7678 = vmatpush1.bf16.msra.mxu1 %v9538_v26  ;;  %7351 = vmatprep.subr.bf16.mxu0 %v9543_v27  ;;  %v9603_v26 = vld [vmem:[%s13318_s3 + $0xa64] ss:$16 sps:$4 sm:$0xff]   ;;  %v9606_v27 = vld [vmem:[%s13318_s3 + $0xa6c] ss:$16 sps:$4 sm:$0xff]  }
 0x334   : > { %7679 = vmatprep.subr.bf16.mxu1 %v9546_v28  ;;  %v9601_v28 = vld [vmem:[%s13318_s3 + $0xa60] ss:$16 sps:$4 sm:$0xff]  }
 0x336   : > { %7352 = vmatpush1.bf16.msra.mxu0 %v9541_v36  ;;  %v9604_v36 = vld [vmem:[%s13318_s3 + $0xa68] ss:$16 sps:$4 sm:$0xff]  }
 0x337   : > { %7680 = vmatpush1.bf16.msra.mxu1 %v9544_v29  ;;  %7353 = vmatprep.subr.bf16.mxu0 %v9549_v57  ;;  %v9609_v29 = vld [vmem:[%s13318_s3 + $0xa84] ss:$16 sps:$4 sm:$0xff]   ;;  %v9612_v57 = vld [vmem:[%s13318_s3 + $0xa8c] ss:$16 sps:$4 sm:$0xff]  }
 0x338   : > { %7681 = vmatprep.subr.bf16.mxu1 %v9552_v8  ;;  %v9607_v8 = vld [vmem:[%s13318_s3 + $0xa80] ss:$16 sps:$4 sm:$0xff]  }
 0x33a   : > { %7354 = vmatpush1.bf16.msra.mxu0 %v9547_v41  ;;  %v9610_v41 = vld [vmem:[%s13318_s3 + $0xa88] ss:$16 sps:$4 sm:$0xff]  }
 0x33b   : > { %7682 = vmatpush1.bf16.msra.mxu1 %v9550_v43  ;;  %7355 = vmatprep.subr.bf16.mxu0 %v9555_v44  ;;  %v9615_v43 = vld [vmem:[%s13318_s3 + $0xaa4] ss:$16 sps:$4 sm:$0xff]   ;;  %v9618_v44 = vld [vmem:[%s13318_s3 + $0xaac] ss:$16 sps:$4 sm:$0xff]  }
 0x33c   : > { %7683 = vmatprep.subr.bf16.mxu1 %v9558_v35  ;;  %v9613_v35 = vld [vmem:[%s13318_s3 + $0xaa0] ss:$16 sps:$4 sm:$0xff]  }
 0x33e   : > { %7356 = vmatpush1.bf16.msra.mxu0 %v9553_v46  ;;  %v9616_v46 = vld [vmem:[%s13318_s3 + $0xaa8] ss:$16 sps:$4 sm:$0xff]  }
 0x33f   : > { %7684 = vmatpush1.bf16.msra.mxu1 %v9556_v24  ;;  %7357 = vmatprep.subr.bf16.mxu0 %v9561_v47  ;;  %v9621_v24 = vld [vmem:[%s13318_s3 + $0xac4] ss:$16 sps:$4 sm:$0xff]   ;;  %v9624_v47 = vld [vmem:[%s13318_s3 + $0xacc] ss:$16 sps:$4 sm:$0xff]  }
 0x340   : > { %7685 = vmatprep.subr.bf16.mxu1 %v9564_v48  ;;  %v9619_v48 = vld [vmem:[%s13318_s3 + $0xac0] ss:$16 sps:$4 sm:$0xff]  }
 0x342   : > { %7358 = vmatpush1.bf16.msra.mxu0 %v9559_v49  ;;  %v9622_v49 = vld [vmem:[%s13318_s3 + $0xac8] ss:$16 sps:$4 sm:$0xff]  }
 0x343   : > { %7686 = vmatpush1.bf16.msra.mxu1 %v9562_v50  ;;  %7359 = vmatprep.subr.bf16.mxu0 %v9567_v51  ;;  %v9627_v50 = vld [vmem:[%s13318_s3 + $0xae4] ss:$16 sps:$4 sm:$0xff]   ;;  %v9630_v51 = vld [vmem:[%s13318_s3 + $0xaec] ss:$16 sps:$4 sm:$0xff]  }
 0x344   : > { %7687 = vmatprep.subr.bf16.mxu1 %v9570_v23  ;;  %v9625_v23 = vld [vmem:[%s13318_s3 + $0xae0] ss:$16 sps:$4 sm:$0xff]  }
 0x346   : > { %7360 = vmatpush1.bf16.msra.mxu0 %v9565_v52  ;;  %v9628_v52 = vld [vmem:[%s13318_s3 + $0xae8] ss:$16 sps:$4 sm:$0xff]  }
 0x347   : > { %7688 = vmatpush1.bf16.msra.mxu1 %v9568_v22  ;;  %7361 = vmatprep.subr.bf16.mxu0 %v9573_v54  ;;  %v9636_v22 = vld [vmem:[%s13318_s3 + $0xb0c] ss:$16 sps:$4 sm:$0xff]   ;;  %v9631_v54 = vld [vmem:[%s13318_s3 + $0xb00] ss:$16 sps:$4 sm:$0xff]  }
 0x348   : > { %7689 = vmatprep.subr.bf16.mxu1 %v9576_v4  ;;  %v9634_v4 = vld [vmem:[%s13318_s3 + $0xb08] ss:$16 sps:$4 sm:$0xff]  }
 0x34a   : > { %7362 = vmatpush1.bf16.msra.mxu0 %v9571_v32  ;;  %v9642_v32 = vld [vmem:[%s13318_s3 + $0xb2c] ss:$16 sps:$4 sm:$0xff]  }
 0x34b   : > { %7690 = vmatpush1.bf16.msra.mxu1 %v9574_v13  ;;  %7363 = vmatprep.subr.bf16.mxu0 %v9579_v58  ;;  %v9640_v13 = vld [vmem:[%s13318_s3 + $0xb28] ss:$16 sps:$4 sm:$0xff]   ;;  %v9645_v58 = vld [vmem:[%s13318_s3 + $0xb44] ss:$16 sps:$4 sm:$0xff]  }
 0x34c   : > { %7691 = vmatprep.subr.bf16.mxu1 %v9582_v59  ;;  %v9648_v59 = vld [vmem:[%s13318_s3 + $0xb4c] ss:$16 sps:$4 sm:$0xff]  }
 0x34e   : > { %7364 = vmatpush1.bf16.msra.mxu0 %v9577_v31  ;;  %v9646_v31 = vld [vmem:[%s13318_s3 + $0xb48] ss:$16 sps:$4 sm:$0xff]  }
 0x34f   : > { %7692 = vmatpush1.bf16.msra.mxu1 %v9580_v61  ;;  %7374 = vmatprep.subr.bf16.mxu0 %v9585_v62  ;;  %v9654_v61 = vld [vmem:[%s13318_s3 + $0xb6c] ss:$16 sps:$4 sm:$0xff]   ;;  %v9649_v62 = vld [vmem:[%s13318_s3 + $0xb60] ss:$16 sps:$4 sm:$0xff]  }
 0x350   : > { %7702 = vmatprep.subr.bf16.mxu1 %v9588_v38  ;;  %v9652_v38 = vld [vmem:[%s13318_s3 + $0xb68] ss:$16 sps:$4 sm:$0xff]  }
 0x351   : > { %7366 = vmatmul.mubr.bf16.vlgmr.msra.gmra.mrb[16].mxu0 %v4067_v1 }
 0x352   : > { %7694 = vmatmul.mubr.bf16.vlgmr.msra.gmra.mrb[16].mxu1 %v4067_v1  ;;  %7375 = vmatpush1.bf16.msra.mxu0 %v9583_v0  ;;  %v9660_v0 = vld [vmem:[%s13318_s3 + $0xb8c] ss:$16 sps:$4 sm:$0xff]   ;;  %v9655_v1 = vld [vmem:[%s13318_s3 + $0xb80] ss:$16 sps:$4 sm:$0xff]  }
 0x353   : > { %7406 = vmatprep.mubr.bf16.mxu0 %v4070_v11  ;;  %7703 = vmatpush1.bf16.msra.mxu1 %v9586_v5  ;;  %v9658_v5 = vld [vmem:[%s13318_s3 + $0xb88] ss:$16 sps:$4 sm:$0xff]  }
 0x354   : > { %7734 = vmatprep.mubr.bf16.mxu1 %v4070_v11  ;;  %7376 = vmatprep.subr.bf16.mxu0 %v9591_v7  ;;  %v9663_v7 = vld [vmem:[%s13318_s3 + $0xba4] ss:$16 sps:$4 sm:$0xff]   ;;  %v9666_v11 = vld [vmem:[%s13318_s3 + $0xbac] ss:$16 sps:$4 sm:$0xff]  }
 0x355   : > { %7704 = vmatprep.subr.bf16.mxu1 %v9594_v15  ;;  %v9661_v15 = vld [vmem:[%s13318_s3 + $0xba0] ss:$16 sps:$4 sm:$0xff]  }
 0x356   : > { %7377 = vmatpush1.bf16.msra.mxu0 %v9589_v16  ;;  %v790_v16 = vrot.slane %v12425_v14, %v12000_v2 }
 0x357   : > { %7705 = vmatpush1.bf16.msra.mxu1 %v9592_v17  ;;  %7378 = vmatprep.subr.bf16.mxu0 %v9597_v18  ;;  %v9664_v17 = vld [vmem:[%s13318_s3 + $0xba8] ss:$16 sps:$4 sm:$0xff]   ;;  %v9669_v18 = vld [vmem:[%s13318_s3 + $0xbc4] ss:$16 sps:$4 sm:$0xff]  }
 0x358   : > { %7706 = vmatprep.subr.bf16.mxu1 %v9600_v20  ;;  %v9672_v20 = vld [vmem:[%s13318_s3 + $0xbcc] ss:$16 sps:$4 sm:$0xff]  }
 0x35a   : > { %7379 = vmatpush1.bf16.msra.mxu0 %v9595_v21  ;;  %v802_v21 = vrot.slane %v12425_v14, %v769_v10  ;;  %v9678_v10 = vld [vmem:[%s13318_s3 + $0xbec] ss:$16 sps:$4 sm:$0xff]  }
 0x35b   : > { %7707 = vmatpush1.bf16.msra.mxu1 %v9598_v25  ;;  %7380 = vmatprep.subr.bf16.mxu0 %v9603_v26  ;;  %v9667_v25 = vld [vmem:[%s13318_s3 + $0xbc0] ss:$16 sps:$4 sm:$0xff]   ;;  %v8966_v26 = vadd.f32 %v11918_v34, %v790_v16  ;;  %v9730_v16 = vld [vmem:[%s13318_s3 + $0xd08] ss:$16 sps:$4 sm:$0xff]  }
 0x35c   : > { %7708 = vmatprep.subr.bf16.mxu1 %v9606_v27  ;;  %v9670_v27 = vld [vmem:[%s13318_s3 + $0xbc8] ss:$16 sps:$4 sm:$0xff]   ;;  %v9673_v34 = vld [vmem:[%s13318_s3 + $0xbe0] ss:$16 sps:$4 sm:$0xff]  }
 0x35e   : > { %7381 = vmatpush1.bf16.msra.mxu0 %v9601_v28  ;;  %v9675_v28 = vld [vmem:[%s13318_s3 + $0xbe4] ss:$16 sps:$4 sm:$0xff]  }
 0x35f   : > { %7709 = vmatpush1.bf16.msra.mxu1 %v9604_v36  ;;  %7382 = vmatprep.subr.bf16.mxu0 %v9609_v29  ;;  %v8969_v36 = vadd.f32 %v12333_v33, %v802_v21  ;;  %v4053_v29 = vmax.f32 %v8966_v26, 0.0  ;;  %v9684_v33 = vld [vmem:[%s13318_s3 + $0xc0c] ss:$16 sps:$4 sm:$0xff]   ;;  %v9736_v21 = vld [vmem:[%s13318_s3 + $0xd28] ss:$16 sps:$4 sm:$0xff]  }
 0x360   : > { %7710 = vmatprep.subr.bf16.mxu1 %v9612_v57  ;;  %v9676_v57 = vld [vmem:[%s13318_s3 + $0xbe8] ss:$16 sps:$4 sm:$0xff]   ;;  %v9744_v26 = vld [vmem:[%s13318_s3 + $0xd4c] ss:$16 sps:$4 sm:$0xff]  }
 0x362   : > { %7383 = vmatpush1.bf16.msra.mxu0 %v9607_v8  ;;  %v9681_v8 = vld [vmem:[%s13318_s3 + $0xc04] ss:$16 sps:$4 sm:$0xff]  }
 0x363   : > { %7711 = vmatpush1.bf16.msra.mxu1 %v9610_v41  ;;  %7384 = vmatprep.subr.bf16.mxu0 %v9615_v43  ;;  %v4056_v41 = vmax.f32 %v8969_v36, 0.0  ;;  %v9679_v43 = vld [vmem:[%s13318_s3 + $0xc00] ss:$16 sps:$4 sm:$0xff]   ;;  %v9750_v36 = vld [vmem:[%s13318_s3 + $0xd6c] ss:$16 sps:$4 sm:$0xff]  }
 0x364   : > { %7712 = vmatprep.subr.bf16.mxu1 %v9618_v44  ;;  %v4069_v44 = vpack.c.bf16 %v4053_v29, %v4053_v29  ;;  %v9748_v29 = vld [vmem:[%s13318_s3 + $0xd68] ss:$16 sps:$4 sm:$0xff]  }
 0x366   : > { %7385 = vmatpush1.bf16.msra.mxu0 %v9613_v35  ;;  %v9682_v35 = vld [vmem:[%s13318_s3 + $0xc08] ss:$16 sps:$4 sm:$0xff]  }
 0x367   : > { %7713 = vmatpush1.bf16.msra.mxu1 %v9616_v46  ;;  %7386 = vmatprep.subr.bf16.mxu0 %v9621_v24  ;;  %v9687_v46 = vld [vmem:[%s13318_s3 + $0xc24] ss:$16 sps:$4 sm:$0xff]   ;;  %v4072_v24 = vpack.c.bf16 %v4056_v41, %v4056_v41  ;;  %v9754_v41 = vld [vmem:[%s13318_s3 + $0xd88] ss:$16 sps:$4 sm:$0xff]  }
 0x368   : > { %7714 = vmatprep.subr.bf16.mxu1 %v9624_v47  ;;  %v9690_v47 = vld [vmem:[%s13318_s3 + $0xc2c] ss:$16 sps:$4 sm:$0xff]  }
 0x36a   : > { %7387 = vmatpush1.bf16.msra.mxu0 %v9619_v48  ;;  %v9685_v48 = vld [vmem:[%s13318_s3 + $0xc20] ss:$16 sps:$4 sm:$0xff]  }
 0x36b   : > { %7715 = vmatpush1.bf16.msra.mxu1 %v9622_v49  ;;  %7388 = vmatprep.subr.bf16.mxu0 %v9627_v50  ;;  %v9688_v49 = vld [vmem:[%s13318_s3 + $0xc28] ss:$16 sps:$4 sm:$0xff]   ;;  %v9693_v50 = vld [vmem:[%s13318_s3 + $0xc44] ss:$16 sps:$4 sm:$0xff]  }
 0x36c   : > { %7716 = vmatprep.subr.bf16.mxu1 %v9630_v51  ;;  %v9696_v51 = vld [vmem:[%s13318_s3 + $0xc4c] ss:$16 sps:$4 sm:$0xff]  }
 0x36e   : > { %7389 = vmatpush1.bf16.msra.mxu0 %v9625_v23  ;;  %v9691_v23 = vld [vmem:[%s13318_s3 + $0xc40] ss:$16 sps:$4 sm:$0xff]  }
 0x36f   : > { %7717 = vmatpush1.bf16.msra.mxu1 %v9628_v52  ;;  %7390 = vmatprep.subr.bf16.mxu0 %v9633_v53  ;;  %v9694_v52 = vld [vmem:[%s13318_s3 + $0xc48] ss:$16 sps:$4 sm:$0xff]   ;;  %v9699_v53 = vld [vmem:[%s13318_s3 + $0xc64] ss:$16 sps:$4 sm:$0xff]  }
 0x370   : > { %7718 = vmatprep.subr.bf16.mxu1 %v9636_v22  ;;  %v9702_v22 = vld [vmem:[%s13318_s3 + $0xc6c] ss:$16 sps:$4 sm:$0xff]  }
 0x372   : > { %7391 = vmatpush1.bf16.msra.mxu0 %v9631_v54  ;;  %v9697_v54 = vld [vmem:[%s13318_s3 + $0xc60] ss:$16 sps:$4 sm:$0xff]  }
 0x373   : > { %7719 = vmatpush1.bf16.msra.mxu1 %v9634_v4  ;;  %7392 = vmatprep.subr.bf16.mxu0 %v9639_v55  ;;  %v9700_v4 = vld [vmem:[%s13318_s3 + $0xc68] ss:$16 sps:$4 sm:$0xff]   ;;  %v9705_v55 = vld [vmem:[%s13318_s3 + $0xc84] ss:$16 sps:$4 sm:$0xff]  }
 0x374   : > { %7720 = vmatprep.subr.bf16.mxu1 %v9642_v32  ;;  %v9708_v32 = vld [vmem:[%s13318_s3 + $0xc8c] ss:$16 sps:$4 sm:$0xff]  }
 0x376   : > { %7393 = vmatpush1.bf16.msra.mxu0 %v9637_v56  ;;  %v9703_v56 = vld [vmem:[%s13318_s3 + $0xc80] ss:$16 sps:$4 sm:$0xff]  }
 0x377   : > { %7721 = vmatpush1.bf16.msra.mxu1 %v9640_v13  ;;  %7394 = vmatprep.subr.bf16.mxu0 %v9645_v58  ;;  %v9706_v13 = vld [vmem:[%s13318_s3 + $0xc88] ss:$16 sps:$4 sm:$0xff]   ;;  %v9711_v58 = vld [vmem:[%s13318_s3 + $0xca4] ss:$16 sps:$4 sm:$0xff]  }
 0x378   : > { %7722 = vmatprep.subr.bf16.mxu1 %v9648_v59  ;;  %v9714_v59 = vld [vmem:[%s13318_s3 + $0xcac] ss:$16 sps:$4 sm:$0xff]  }
 0x37a   : > { %7395 = vmatpush1.bf16.msra.mxu0 %v9643_v40  ;;  %v9709_v40 = vld [vmem:[%s13318_s3 + $0xca0] ss:$16 sps:$4 sm:$0xff]  }
 0x37b   : > { %7723 = vmatpush1.bf16.msra.mxu1 %v9646_v31  ;;  %7396 = vmatprep.subr.bf16.mxu0 %v9651_v60  ;;  %v9712_v31 = vld [vmem:[%s13318_s3 + $0xca8] ss:$16 sps:$4 sm:$0xff]   ;;  %v9717_v60 = vld [vmem:[%s13318_s3 + $0xcc4] ss:$16 sps:$4 sm:$0xff]  }
 0x37c   : > { %7724 = vmatprep.subr.bf16.mxu1 %v9654_v61  ;;  %v9720_v61 = vld [vmem:[%s13318_s3 + $0xccc] ss:$16 sps:$4 sm:$0xff]  }
 0x37e   : > { %7397 = vmatpush1.bf16.msra.mxu0 %v9649_v62  ;;  %v9715_v62 = vld [vmem:[%s13318_s3 + $0xcc0] ss:$16 sps:$4 sm:$0xff]  }
 0x37f   : > { %7725 = vmatpush1.bf16.msra.mxu1 %v9652_v38  ;;  %7398 = vmatprep.subr.bf16.mxu0 %v9657_v63  ;;  %v9718_v38 = vld [vmem:[%s13318_s3 + $0xcc8] ss:$16 sps:$4 sm:$0xff]   ;;  %v9723_v63 = vld [vmem:[%s13318_s3 + $0xce4] ss:$16 sps:$4 sm:$0xff]  }
 0x380   : > { %7726 = vmatprep.subr.bf16.mxu1 %v9660_v0  ;;  %v9726_v0 = vld [vmem:[%s13318_s3 + $0xcec] ss:$16 sps:$4 sm:$0xff]  }
 0x382   : > { %7399 = vmatpush1.bf16.msra.mxu0 %v9655_v1  ;;  %v9721_v1 = vld [vmem:[%s13318_s3 + $0xce0] ss:$16 sps:$4 sm:$0xff]  }
 0x383   : > { %7727 = vmatpush1.bf16.msra.mxu1 %v9658_v5  ;;  %7400 = vmatprep.subr.bf16.mxu0 %v9663_v7  ;;  %v9724_v5 = vld [vmem:[%s13318_s3 + $0xce8] ss:$16 sps:$4 sm:$0xff]   ;;  %v9729_v7 = vld [vmem:[%s13318_s3 + $0xd04] ss:$16 sps:$4 sm:$0xff]  }
 0x384   : > { %7728 = vmatprep.subr.bf16.mxu1 %v9666_v11  ;;  %v9732_v11 = vld [vmem:[%s13318_s3 + $0xd0c] ss:$16 sps:$4 sm:$0xff]  }
 0x386   : > { %7401 = vmatpush1.bf16.msra.mxu0 %v9661_v15  ;;  %v9727_v15 = vld [vmem:[%s13318_s3 + $0xd00] ss:$16 sps:$4 sm:$0xff]  }
 0x387   : > { %7729 = vmatpush1.bf16.msra.mxu1 %v9664_v17  ;;  %7402 = vmatprep.subr.bf16.mxu0 %v9669_v18  ;;  %v9735_v17 = vld [vmem:[%s13318_s3 + $0xd24] ss:$16 sps:$4 sm:$0xff]   ;;  %v9738_v18 = vld [vmem:[%s13318_s3 + $0xd2c] ss:$16 sps:$4 sm:$0xff]  }
 0x388   : > { %7730 = vmatprep.subr.bf16.mxu1 %v9672_v20  ;;  %v9733_v20 = vld [vmem:[%s13318_s3 + $0xd20] ss:$16 sps:$4 sm:$0xff]  }
 0x38a   : > { %7403 = vmatpush1.bf16.msra.mxu0 %v9667_v25  ;;  %v9741_v25 = vld [vmem:[%s13318_s3 + $0xd44] ss:$16 sps:$4 sm:$0xff]  }
 0x38b   : > { %7731 = vmatpush1.bf16.msra.mxu1 %v9670_v27  ;;  %7404 = vmatprep.subr.bf16.mxu0 %v9675_v28  ;;  %v9739_v27 = vld [vmem:[%s13318_s3 + $0xd40] ss:$16 sps:$4 sm:$0xff]   ;;  %v9742_v28 = vld [vmem:[%s13318_s3 + $0xd48] ss:$16 sps:$4 sm:$0xff]  }
 0x38c   : > { %7732 = vmatprep.subr.bf16.mxu1 %v9678_v10  ;;  %v9747_v10 = vld [vmem:[%s13318_s3 + $0xd64] ss:$16 sps:$4 sm:$0xff]  }
 0x38e   : > { %7405 = vmatpush1.bf16.msra.mxu0 %v9673_v34  ;;  %v9745_v34 = vld [vmem:[%s13318_s3 + $0xd60] ss:$16 sps:$4 sm:$0xff]  }
 0x38f   : > { %7733 = vmatpush1.bf16.msra.mxu1 %v9676_v57  ;;  %7415 = vmatprep.subr.bf16.mxu0 %v9681_v8  ;;  %v9753_v57 = vld [vmem:[%s13318_s3 + $0xd84] ss:$16 sps:$4 sm:$0xff]   ;;  %v9756_v8 = vld [vmem:[%s13318_s3 + $0xd8c] ss:$16 sps:$4 sm:$0xff]  }
 0x390   : > { %7743 = vmatprep.subr.bf16.mxu1 %v9684_v33  ;;  %v9751_v33 = vld [vmem:[%s13318_s3 + $0xd80] ss:$16 sps:$4 sm:$0xff]  }
 0x391   : > { %7407 = vmatmul.mubr.bf16.vlgmr.msra.gmra.mrb[16].mxu0 %v4069_v44 }
 0x392   : > { %7735 = vmatmul.mubr.bf16.vlgmr.msra.gmra.mrb[16].mxu1 %v4069_v44  ;;  %7416 = vmatpush1.bf16.msra.mxu0 %v9679_v43  ;;  %v9759_v43 = vld [vmem:[%s13318_s3 + $0xda4] ss:$16 sps:$4 sm:$0xff]   ;;  %v9762_v44 = vld [vmem:[%s13318_s3 + $0xdac] ss:$16 sps:$4 sm:$0xff]  }
 0x393   : > { %7447 = vmatprep.mubr.bf16.mxu0 %v4072_v24  ;;  %7744 = vmatpush1.bf16.msra.mxu1 %v9682_v35  ;;  %v9757_v35 = vld [vmem:[%s13318_s3 + $0xda0] ss:$16 sps:$4 sm:$0xff]  }
 0x394   : > { %7775 = vmatprep.mubr.bf16.mxu1 %v4072_v24  ;;  %7417 = vmatprep.subr.bf16.mxu0 %v9687_v46  ;;  %v798_v46 = vrot.slane %v12425_v14, %v765_v39  ;;  %v9760_v24 = vld [vmem:[%s13318_s3 + $0xda8] ss:$16 sps:$4 sm:$0xff]   ;;  %v9763_v39 = vld [vmem:[%s13318_s3 + $0xdc0] ss:$16 sps:$4 sm:$0xff]  }
 0x395   : > { %7745 = vmatprep.subr.bf16.mxu1 %v9690_v47  ;;  %v9765_v47 = vld [vmem:[%s13318_s3 + $0xdc4] ss:$16 sps:$4 sm:$0xff]  }
 0x396   : > { %7418 = vmatpush1.bf16.msra.mxu0 %v9685_v48  ;;  %v9768_v48 = vld [vmem:[%s13318_s3 + $0xdcc] ss:$16 sps:$4 sm:$0xff]  }
 0x397   : > { %7746 = vmatpush1.bf16.msra.mxu1 %v9688_v49  ;;  %7419 = vmatprep.subr.bf16.mxu0 %v9693_v50  ;;  %v810_v49 = vrot.slane %v12425_v14, %v777_v45  ;;  %v8968_v50 = vadd.f32 %v12326_v30, %v798_v46  ;;  %v9774_v45 = vld [vmem:[%s13318_s3 + $0xdec] ss:$16 sps:$4 sm:$0xff]   ;;  %v9769_v30 = vld [vmem:[%s13318_s3 + $0xde0] ss:$16 sps:$4 sm:$0xff]   ;;  %v9837_v46 = vld [vmem:[%s13318_s3 + $0xf44] ss:$16 sps:$4 sm:$0xff]  }
 0x398   : > { %7747 = vmatprep.subr.bf16.mxu1 %v9696_v51  ;;  %v9766_v51 = vld [vmem:[%s13318_s3 + $0xdc8] ss:$16 sps:$4 sm:$0xff]  }
 0x399   : > { %v8971_v14 = vadd.f32 %v12335_v12, %v810_v49  ;;  %v9780_v12 = vld [vmem:[%s13318_s3 + $0xe0c] ss:$16 sps:$4 sm:$0xff]   ;;  %v9843_v49 = vld [vmem:[%s13318_s3 + $0xf64] ss:$16 sps:$4 sm:$0xff]  }
 0x39a   : > { %7420 = vmatpush1.bf16.msra.mxu0 %v9691_v23  ;;  %v9771_v23 = vld [vmem:[%s13318_s3 + $0xde4] ss:$16 sps:$4 sm:$0xff]  }
 0x39b   : > { %7748 = vmatpush1.bf16.msra.mxu1 %v9694_v52  ;;  %7421 = vmatprep.subr.bf16.mxu0 %v9699_v53  ;;  %v4055_v52 = vmax.f32 %v8968_v50, 0.0  ;;  %v9772_v53 = vld [vmem:[%s13318_s3 + $0xde8] ss:$16 sps:$4 sm:$0xff]   ;;  %v9841_v50 = vld [vmem:[%s13318_s3 + $0xf60] ss:$16 sps:$4 sm:$0xff]  }
 0x39c   : > { %7749 = vmatprep.subr.bf16.mxu1 %v9702_v22  ;;  %v9777_v22 = vld [vmem:[%s13318_s3 + $0xe04] ss:$16 sps:$4 sm:$0xff]  }
 0x39e   : > { %7422 = vmatpush1.bf16.msra.mxu0 %v9697_v54  ;;  %v4058_v54 = vmax.f32 %v8971_v14, 0.0  ;;  %v9847_v14 = vld [vmem:[%s13318_s3 + $0xf80] ss:$16 sps:$4 sm:$0xff]  }
 0x39f   : > { %7750 = vmatpush1.bf16.msra.mxu1 %v9700_v4  ;;  %7423 = vmatprep.subr.bf16.mxu0 %v9705_v55  ;;  %v9775_v4 = vld [vmem:[%s13318_s3 + $0xe00] ss:$16 sps:$4 sm:$0xff]   ;;  %v4071_v55 = vpack.c.bf16 %v4055_v52, %v4055_v52  ;;  %v9855_v52 = vld [vmem:[%s13318_s3 + $0xfa4] ss:$16 sps:$4 sm:$0xff]  }
 0x3a0   : > { %7751 = vmatprep.subr.bf16.mxu1 %v9708_v32  ;;  %v9778_v32 = vld [vmem:[%s13318_s3 + $0xe08] ss:$16 sps:$4 sm:$0xff]  }
 0x3a2   : > { %7424 = vmatpush1.bf16.msra.mxu0 %v9703_v56  ;;  %v9783_v56 = vld [vmem:[%s13318_s3 + $0xe24] ss:$16 sps:$4 sm:$0xff]  }
 0x3a3   : > { %7752 = vmatpush1.bf16.msra.mxu1 %v9706_v13  ;;  %7425 = vmatprep.subr.bf16.mxu0 %v9711_v58  ;;  %v4074_v13 = vpack.c.bf16 %v4058_v54, %v4058_v54  ;;  %v9786_v58 = vld [vmem:[%s13318_s3 + $0xe2c] ss:$16 sps:$4 sm:$0xff]  }
 0x3a4   : > { %7753 = vmatprep.subr.bf16.mxu1 %v9714_v59  ;;  %v9781_v59 = vld [vmem:[%s13318_s3 + $0xe20] ss:$16 sps:$4 sm:$0xff]  }
 0x3a6   : > { %7426 = vmatpush1.bf16.msra.mxu0 %v9709_v40  ;;  %v9784_v40 = vld [vmem:[%s13318_s3 + $0xe28] ss:$16 sps:$4 sm:$0xff]  }
 0x3a7   : > { %7754 = vmatpush1.bf16.msra.mxu1 %v9712_v31  ;;  %7427 = vmatprep.subr.bf16.mxu0 %v9717_v60  ;;  %v9789_v31 = vld [vmem:[%s13318_s3 + $0xe44] ss:$16 sps:$4 sm:$0xff]   ;;  %v9792_v60 = vld [vmem:[%s13318_s3 + $0xe4c] ss:$16 sps:$4 sm:$0xff]  }
 0x3a8   : > { %7755 = vmatprep.subr.bf16.mxu1 %v9720_v61  ;;  %v9787_v61 = vld [vmem:[%s13318_s3 + $0xe40] ss:$16 sps:$4 sm:$0xff]  }
 0x3aa   : > { %7428 = vmatpush1.bf16.msra.mxu0 %v9715_v62  ;;  %v9790_v62 = vld [vmem:[%s13318_s3 + $0xe48] ss:$16 sps:$4 sm:$0xff]  }
 0x3ab   : > { %7756 = vmatpush1.bf16.msra.mxu1 %v9718_v38  ;;  %7429 = vmatprep.subr.bf16.mxu0 %v9723_v63  ;;  %v9795_v38 = vld [vmem:[%s13318_s3 + $0xe64] ss:$16 sps:$4 sm:$0xff]   ;;  %v9798_v63 = vld [vmem:[%s13318_s3 + $0xe6c] ss:$16 sps:$4 sm:$0xff]  }
 0x3ac   : > { %7757 = vmatprep.subr.bf16.mxu1 %v9726_v0  ;;  %v9793_v0 = vld [vmem:[%s13318_s3 + $0xe60] ss:$16 sps:$4 sm:$0xff]  }
 0x3ae   : > { %7430 = vmatpush1.bf16.msra.mxu0 %v9721_v1  ;;  %v9796_v1 = vld [vmem:[%s13318_s3 + $0xe68] ss:$16 sps:$4 sm:$0xff]  }
 0x3af   : > { %7758 = vmatpush1.bf16.msra.mxu1 %v9724_v5  ;;  %7431 = vmatprep.subr.bf16.mxu0 %v9729_v7  ;;  %v9801_v5 = vld [vmem:[%s13318_s3 + $0xe84] ss:$16 sps:$4 sm:$0xff]   ;;  %v9804_v7 = vld [vmem:[%s13318_s3 + $0xe8c] ss:$16 sps:$4 sm:$0xff]  }
 0x3b0   : > { %7759 = vmatprep.subr.bf16.mxu1 %v9732_v11  ;;  %v9799_v11 = vld [vmem:[%s13318_s3 + $0xe80] ss:$16 sps:$4 sm:$0xff]  }
 0x3b2   : > { %7432 = vmatpush1.bf16.msra.mxu0 %v9727_v15  ;;  %v9802_v15 = vld [vmem:[%s13318_s3 + $0xe88] ss:$16 sps:$4 sm:$0xff]  }
 0x3b3   : > { %7760 = vmatpush1.bf16.msra.mxu1 %v9730_v16  ;;  %7433 = vmatprep.subr.bf16.mxu0 %v9735_v17  ;;  %v9807_v16 = vld [vmem:[%s13318_s3 + $0xea4] ss:$16 sps:$4 sm:$0xff]   ;;  %v9810_v17 = vld [vmem:[%s13318_s3 + $0xeac] ss:$16 sps:$4 sm:$0xff]  }
 0x3b4   : > { %7761 = vmatprep.subr.bf16.mxu1 %v9738_v18  ;;  %v9805_v18 = vld [vmem:[%s13318_s3 + $0xea0] ss:$16 sps:$4 sm:$0xff]  }
 0x3b6   : > { %7434 = vmatpush1.bf16.msra.mxu0 %v9733_v20  ;;  %v9808_v20 = vld [vmem:[%s13318_s3 + $0xea8] ss:$16 sps:$4 sm:$0xff]  }
 0x3b7   : > { %7762 = vmatpush1.bf16.msra.mxu1 %v9736_v21  ;;  %7435 = vmatprep.subr.bf16.mxu0 %v9741_v25  ;;  %v9813_v21 = vld [vmem:[%s13318_s3 + $0xec4] ss:$16 sps:$4 sm:$0xff]   ;;  %v9816_v25 = vld [vmem:[%s13318_s3 + $0xecc] ss:$16 sps:$4 sm:$0xff]  }
 0x3b8   : > { %7763 = vmatprep.subr.bf16.mxu1 %v9744_v26  ;;  %v9811_v26 = vld [vmem:[%s13318_s3 + $0xec0] ss:$16 sps:$4 sm:$0xff]  }
 0x3ba   : > { %7436 = vmatpush1.bf16.msra.mxu0 %v9739_v27  ;;  %v9814_v27 = vld [vmem:[%s13318_s3 + $0xec8] ss:$16 sps:$4 sm:$0xff]  }
 0x3bb   : > { %7764 = vmatpush1.bf16.msra.mxu1 %v9742_v28  ;;  %7437 = vmatprep.subr.bf16.mxu0 %v9747_v10  ;;  %v9819_v28 = vld [vmem:[%s13318_s3 + $0xee4] ss:$16 sps:$4 sm:$0xff]   ;;  %v9822_v10 = vld [vmem:[%s13318_s3 + $0xeec] ss:$16 sps:$4 sm:$0xff]  }
 0x3bc   : > { %7765 = vmatprep.subr.bf16.mxu1 %v9750_v36  ;;  %v9817_v36 = vld [vmem:[%s13318_s3 + $0xee0] ss:$16 sps:$4 sm:$0xff]  }
 0x3be   : > { %7438 = vmatpush1.bf16.msra.mxu0 %v9745_v34  ;;  %v9820_v34 = vld [vmem:[%s13318_s3 + $0xee8] ss:$16 sps:$4 sm:$0xff]  }
 0x3bf   : > { %7766 = vmatpush1.bf16.msra.mxu1 %v9748_v29  ;;  %7439 = vmatprep.subr.bf16.mxu0 %v9753_v57  ;;  %v9825_v29 = vld [vmem:[%s13318_s3 + $0xf04] ss:$16 sps:$4 sm:$0xff]   ;;  %v9828_v57 = vld [vmem:[%s13318_s3 + $0xf0c] ss:$16 sps:$4 sm:$0xff]  }
 0x3c0   : > { %7767 = vmatprep.subr.bf16.mxu1 %v9756_v8  ;;  %v9823_v8 = vld [vmem:[%s13318_s3 + $0xf00] ss:$16 sps:$4 sm:$0xff]  }
 0x3c2   : > { %7440 = vmatpush1.bf16.msra.mxu0 %v9751_v33  ;;  %v9826_v33 = vld [vmem:[%s13318_s3 + $0xf08] ss:$16 sps:$4 sm:$0xff]  }
 0x3c3   : > { %7768 = vmatpush1.bf16.msra.mxu1 %v9754_v41  ;;  %7441 = vmatprep.subr.bf16.mxu0 %v9759_v43  ;;  %v9831_v41 = vld [vmem:[%s13318_s3 + $0xf24] ss:$16 sps:$4 sm:$0xff]   ;;  %v9834_v43 = vld [vmem:[%s13318_s3 + $0xf2c] ss:$16 sps:$4 sm:$0xff]  }
 0x3c4   : > { %7769 = vmatprep.subr.bf16.mxu1 %v9762_v44  ;;  %v9829_v44 = vld [vmem:[%s13318_s3 + $0xf20] ss:$16 sps:$4 sm:$0xff]  }
 0x3c6   : > { %7442 = vmatpush1.bf16.msra.mxu0 %v9757_v35  ;;  %v9832_v35 = vld [vmem:[%s13318_s3 + $0xf28] ss:$16 sps:$4 sm:$0xff]  }
 0x3c7   : > { %7770 = vmatpush1.bf16.msra.mxu1 %v9760_v24  ;;  %7443 = vmatprep.subr.bf16.mxu0 %v9765_v47  ;;  %v9840_v24 = vld [vmem:[%s13318_s3 + $0xf4c] ss:$16 sps:$4 sm:$0xff]   ;;  %v9835_v47 = vld [vmem:[%s13318_s3 + $0xf40] ss:$16 sps:$4 sm:$0xff]  }
 0x3c8   : > { %7771 = vmatprep.subr.bf16.mxu1 %v9768_v48  ;;  %v9838_v48 = vld [vmem:[%s13318_s3 + $0xf48] ss:$16 sps:$4 sm:$0xff]  }
 0x3ca   : > { %7444 = vmatpush1.bf16.msra.mxu0 %v9763_v39  ;;  %v9846_v39 = vld [vmem:[%s13318_s3 + $0xf6c] ss:$16 sps:$4 sm:$0xff]  }
 0x3cb   : > { %7772 = vmatpush1.bf16.msra.mxu1 %v9766_v51  ;;  %7445 = vmatprep.subr.bf16.mxu0 %v9771_v23  ;;  %v9844_v51 = vld [vmem:[%s13318_s3 + $0xf68] ss:$16 sps:$4 sm:$0xff]   ;;  %v9849_v23 = vld [vmem:[%s13318_s3 + $0xf84] ss:$16 sps:$4 sm:$0xff]  }
 0x3cc   : > { %7773 = vmatprep.subr.bf16.mxu1 %v9774_v45  ;;  %v9852_v45 = vld [vmem:[%s13318_s3 + $0xf8c] ss:$16 sps:$4 sm:$0xff]  }
 0x3ce   : > { %7446 = vmatpush1.bf16.msra.mxu0 %v9769_v30  ;;  %v9850_v30 = vld [vmem:[%s13318_s3 + $0xf88] ss:$16 sps:$4 sm:$0xff]  }
 0x3cf   : > { %7774 = vmatpush1.bf16.msra.mxu1 %v9772_v53  ;;  %7456 = vmatprep.subr.bf16.mxu0 %v9777_v22  ;;  %v9858_v53 = vld [vmem:[%s13318_s3 + $0xfac] ss:$16 sps:$4 sm:$0xff]   ;;  %v9853_v22 = vld [vmem:[%s13318_s3 + $0xfa0] ss:$16 sps:$4 sm:$0xff]  }
 0x3d0   : > { %7784 = vmatprep.subr.bf16.mxu1 %v9780_v12  ;;  %v9874_v12 = vld [vmem:[%s13317_s2 + $0x8] sm:$0xff] }
 0x3d1   : > { %7448 = vmatmul.mubr.bf16.vlgmr.msra.gmra.mrb[16].mxu0 %v4071_v55  ;;  %v806_v54 = vrot.slane %v9874_v12, %v773_v3 }
 0x3d2   : > { %7776 = vmatmul.mubr.bf16.vlgmr.msra.gmra.mrb[16].mxu1 %v4071_v55  ;;  %7457 = vmatpush1.bf16.msra.mxu0 %v9775_v4  ;;  %v9856_v4 = vld [vmem:[%s13318_s3 + $0xfa8] ss:$16 sps:$4 sm:$0xff]   ;;  %v9861_v55 = vld [vmem:[%s13318_s3 + $0xfc4] ss:$16 sps:$4 sm:$0xff]  }
 0x3d3   : > { %7488 = vmatprep.mubr.bf16.mxu0 %v4074_v13  ;;  %7785 = vmatpush1.bf16.msra.mxu1 %v9778_v32  ;;  %v9864_v32 = vld [vmem:[%s13318_s3 + $0xfcc] ss:$16 sps:$4 sm:$0xff]   ;;  %v8970_v3 = vadd.f32 %v12331_v9, %v806_v54  ;;  %v9865_v9 = vld [vmem:[%s13318_s3 + $0xfe0] ss:$16 sps:$4 sm:$0xff]  }
 0x3d4   : > { %7816 = vmatprep.mubr.bf16.mxu1 %v4074_v13  ;;  %7458 = vmatprep.subr.bf16.mxu0 %v9783_v56  ;;  %v9862_v56 = vld [vmem:[%s13318_s3 + $0xfc8] ss:$16 sps:$4 sm:$0xff]   ;;  %v9867_v13 = vld [vmem:[%s13318_s3 + $0xfe4] ss:$16 sps:$4 sm:$0xff]  }
 0x3d5   : > { %7786 = vmatprep.subr.bf16.mxu1 %v9786_v58  ;;  %v9870_v58 = vld [vmem:[%s13318_s3 + $0xfec] ss:$16 sps:$4 sm:$0xff]  }
 0x3d6   : > { %7459 = vmatpush1.bf16.msra.mxu0 %v9781_v59  ;;  %v4057_v59 = vmax.f32 %v8970_v3, 0.0 }
 0x3d7   : > { %7787 = vmatpush1.bf16.msra.mxu1 %v9784_v40  ;;  %7460 = vmatprep.subr.bf16.mxu0 %v9789_v31  ;;  %v9868_v40 = vld [vmem:[%s13318_s3 + $0xfe8] ss:$16 sps:$4 sm:$0xff]  }
 0x3d8   : > { %7788 = vmatprep.subr.bf16.mxu1 %v9792_v60  ;;  %v4073_v31 = vpack.c.bf16 %v4057_v59, %v4057_v59  ;;  %v4587_v60 = vld [vmem:[%s13319_s4] sm:$0xf] }
 0x3da   : > { %7461 = vmatpush1.bf16.msra.mxu0 %v9787_v61  ;;  %v4592_v61 = vrot.slane %v4587_v60, %v11788_v42 }
 0x3db   : > { %7789 = vmatpush1.bf16.msra.mxu1 %v9790_v62  ;;  %7462 = vmatprep.subr.bf16.mxu0 %v9795_v38  ;;  %v4600_v62 = vrot.slane %v4587_v60, %v12000_v2  ;;  %v4596_v38 = vrot.slane %v4587_v60, %v11604_v19 }
 0x3dc   : > { %7790 = vmatprep.subr.bf16.mxu1 %v9798_v63 }
 0x3de   : > { %7463 = vmatpush1.bf16.msra.mxu0 %v9793_v0  ;;  %v4604_v0 = vrot.slane %v4587_v60, %v11800_v37 }
 0x3df   : > { %7791 = vmatpush1.bf16.msra.mxu1 %v9796_v1  ;;  %7464 = vmatprep.subr.bf16.mxu0 %v9801_v5 }
 0x3e0   : > { %7792 = vmatprep.subr.bf16.mxu1 %v9804_v7 }
 0x3e2   : > { %7465 = vmatpush1.bf16.msra.mxu0 %v9799_v11 }
 0x3e3   : > { %7793 = vmatpush1.bf16.msra.mxu1 %v9802_v15  ;;  %7466 = vmatprep.subr.bf16.mxu0 %v9807_v16 }
 0x3e4   : > { %7794 = vmatprep.subr.bf16.mxu1 %v9810_v17 }
 0x3e6   : > { %7467 = vmatpush1.bf16.msra.mxu0 %v9805_v18 }
 0x3e7   : > { %7795 = vmatpush1.bf16.msra.mxu1 %v9808_v20  ;;  %7468 = vmatprep.subr.bf16.mxu0 %v9813_v21 }
 0x3e8   : > { %7796 = vmatprep.subr.bf16.mxu1 %v9816_v25 }
 0x3ea   : > { %7469 = vmatpush1.bf16.msra.mxu0 %v9811_v26 }
 0x3eb   : > { %7797 = vmatpush1.bf16.msra.mxu1 %v9814_v27  ;;  %7470 = vmatprep.subr.bf16.mxu0 %v9819_v28 }
 0x3ec   : > { %7798 = vmatprep.subr.bf16.mxu1 %v9822_v10 }
 0x3ee   : > { %7471 = vmatpush1.bf16.msra.mxu0 %v9817_v36 }
 0x3ef   : > { %7799 = vmatpush1.bf16.msra.mxu1 %v9820_v34  ;;  %7472 = vmatprep.subr.bf16.mxu0 %v9825_v29 }
 0x3f0   : > { %7800 = vmatprep.subr.bf16.mxu1 %v9828_v57 }
 0x3f2   : > { %7473 = vmatpush1.bf16.msra.mxu0 %v9823_v8 }
 0x3f3   : > { %7801 = vmatpush1.bf16.msra.mxu1 %v9826_v33  ;;  %7474 = vmatprep.subr.bf16.mxu0 %v9831_v41 }
 0x3f4   : > { %7802 = vmatprep.subr.bf16.mxu1 %v9834_v43 }
 0x3f6   : > { %7475 = vmatpush1.bf16.msra.mxu0 %v9829_v44 }
 0x3f7   : > { %7803 = vmatpush1.bf16.msra.mxu1 %v9832_v35  ;;  %7476 = vmatprep.subr.bf16.mxu0 %v9837_v46 }
 0x3f8   : > { %7804 = vmatprep.subr.bf16.mxu1 %v9840_v24 }
 0x3fa   : > { %7477 = vmatpush1.bf16.msra.mxu0 %v9835_v47 }
 0x3fb   : > { %7805 = vmatpush1.bf16.msra.mxu1 %v9838_v48  ;;  %7478 = vmatprep.subr.bf16.mxu0 %v9843_v49 }
 0x3fc   : > { %7806 = vmatprep.subr.bf16.mxu1 %v9846_v39 }
 0x3fe   : > { %7479 = vmatpush1.bf16.msra.mxu0 %v9841_v50 }
 0x3ff   : > { %7807 = vmatpush1.bf16.msra.mxu1 %v9844_v51  ;;  %7480 = vmatprep.subr.bf16.mxu0 %v9849_v23 }
 0x400   : > { %7808 = vmatprep.subr.bf16.mxu1 %v9852_v45 }
 0x402   : > { %7481 = vmatpush1.bf16.msra.mxu0 %v9847_v14 }
 0x403   : > { %7809 = vmatpush1.bf16.msra.mxu1 %v9850_v30  ;;  %7482 = vmatprep.subr.bf16.mxu0 %v9855_v52 }
 0x404   : > { %7810 = vmatprep.subr.bf16.mxu1 %v9858_v53 }
 0x406   : > { %7483 = vmatpush1.bf16.msra.mxu0 %v9853_v22 }
 0x407   : > { %7811 = vmatpush1.bf16.msra.mxu1 %v9856_v4  ;;  %7484 = vmatprep.subr.bf16.mxu0 %v9861_v55 }
 0x408   : > { %7812 = vmatprep.subr.bf16.mxu1 %v9864_v32 }
 0x40a   : > { %7485 = vmatpush1.bf16.msra.mxu0 %v9859_v6 }
 0x40b   : > { %7813 = vmatpush1.bf16.msra.mxu1 %v9862_v56  ;;  %7486 = vmatprep.subr.bf16.mxu0 %v9867_v13 }
 0x40c   : > { %7814 = vmatprep.subr.bf16.mxu1 %v9870_v58 }
 0x40e   : > { %7487 = vmatpush1.bf16.msra.mxu0 %v9865_v9 }
 0x40f   : > { %7815 = vmatpush1.bf16.msra.mxu1 %v9868_v40 }
 0x411   : > { %7489 = vmatmul.mubr.bf16.vlgmr.msra.gmra.mrb[16].mxu0 %v4073_v31 }
 0x412   : > { %7817 = vmatmul.mubr.bf16.vlgmr.msra.gmra.mrb[16].mxu1 %v4073_v31 }
 0x4e4   : > { %v7490_v63 = vpop.f32.mrb[16].mxu0 }
 0x4e5   : > { %v8972_v1 = vadd.f32 %v7490_v63, %v4592_v61  ;;  %v7818_v5 = vpop.f32.mrb[16].mxu1  ;;  %v7492_v7 = vpop.f32.mrb[17].mxu0 }
 0x4e6   : > { %v8974_v11 = vadd.f32 %v7818_v5, %v4600_v62  ;;  %v8973_v15 = vadd.f32 %v7492_v7, %v4596_v38  ;;  %v7820_v16 = vpop.f32.mrb[17].mxu1  ;;  %v7494_v17 = vpop.f32.mrb[18].mxu0 }
 0x4e7   : > { %v7825_v18 = vmul.f32 %v8972_v1, %v8972_v1  ;;  %v7822_v20 = vpop.f32.mrb[18].mxu1  ;;  %v7495_v21 = vpop.f32.mrb[19].mxu0  ;;  %v8975_v25 = vadd.f32 %v7820_v16, %v4604_v0 }
 0x4e8   : > { %v7826_v42 = vmul.f32 %v8973_v15, %v8973_v15  ;;  %v7823_v2 = vpop.f32.mrb[19].mxu1  ;;  %v7827_v26 = vmul.f32 %v8974_v11, %v8974_v11 }
 0x4e9   : > { %v7828_v27 = vmul.f32 %v8975_v25, %v8975_v25 }
 0x4ea   : > { %v7829_v19 = vadd.f32 %v7826_v42, %v7825_v18 }
 0x4ec   : > { %v7830_v28 = vadd.f32 %v7829_v19, %v7827_v26 }
 0x4ee   : > { %v7831_v37 = vadd.f32 %v7830_v28, %v7828_v27 }
 0x4f0   : > { %7832 = vadd.xlane.f32.xlu0 %v7831_v37 }
 0x57d   : > { %v7833_v10 = vpop.xlane.xlu0 %7832 }
 0x57e   : > { %v7834_v36 = vmax.f32 %v7833_v10, 1e-24 }
 0x580   : > { %9871 = vrsqrt.f32 %v7834_v36 }
 0x58a   : > { %v9872_v34 = vpop.eup %9871 }
 0x58b   : > { %v7836_v29 = vmul.f32 %v9872_v34, %v8972_v1  ;;  %v7837_v57 = vmul.f32 %v9872_v34, %v8973_v15  ;;  %v7838_v8 = vmul.f32 %v9872_v34, %v8974_v11  ;;  %v7839_v33 = vmul.f32 %v9872_v34, %v8975_v25 }
 0x58d   : > { %7840 = vst [vmem:[%s217_s13] sm:$0xff] %v7836_v29  ;;  %7841 = vst [vmem:[%s217_s13 + $0x8] sm:$0xff] %v7837_v57 }
 0x58e   : > { %7842 = vst [vmem:[%s217_s13 + $0x10] sm:$0xff] %v7838_v8  ;;  %7843 = vst [vmem:[%s217_s13 + $0x18] sm:$0xff] %v7839_v33 }
 0x58f   : > { %9888 = shalt.err (!%p9885_p3)
}
 0x590   : > { %s9889_s14 = scalar_lea.hbm %s13273_s8, 512  ;;  %s9893_s17 = scalar_lea.hbm %s13320_s5, 1024 }
 0x591   : > { %p9890_p4 = scmp.ne.s32.totalorder %s13273_s8, %s9889_s14  ;;  %p9894_p9 = scmp.lt.u32.totalorder %s13273_s8, %s13320_s5 }
 0x592   : > { %p9895_p10 = scmp.lt.u32.totalorder %s9893_s17, %s9889_s14  ;;  %p9897_p12 = scmp.lt.u32.totalorder %s9889_s14, %s13273_s8 }
 0x593   : > { %p9891_p7 = pnand %p9890_p4, %p10008_p5 }
 0x594   : > { %p9896_p11 = por %p9895_p10, %p9894_p9 }
 0x595   : > { %p9892_p8 = pneg %p9891_p7 }
 0x596   : > { %p9898_p13 = por %p9897_p12, %p9896_p11 }
 0x598   : > { %p9899_p0 = pnand %p9898_p13, %p9892_p8 }
 0x59a   : > { %9902 = shalt.err (!%p9899_p0)
}
 0x59b   : > { %9064 = dma.vmem_to_hbm [thread:$0]  (%p10008_p5), %s13275_s30, 512, %s13273_s8, %s7845_s22  }
 0x59c PF: > { %p9070_p1 = scmp.ge.s32.totalorder %s9937_s21, 2  ;;  %s7871_s26 = sand.u32 1, %s9925_s18  }
 0x59d   : > { %s7872_s13 = scalar_lea.sflag [#allocation3], %s7871_s26 }
 0x59e   : > { %p9067_p2 = pnand %p9070_p1, %p10012_p6 }
 0x5a0   : > { %9920 = dma.done.wait (!%p9067_p2), %s7872_s13, 512  }
 0x5a1   : > { %9922 = vsyncadd (!%p9067_p2), %s7872_s13, 4294966784  ;;  %p15_p3 = scmp.ge.s32.totalorder %s9995_s24, 4   ;;  %s13323_s18 = smov %s9929_s19 }
 0x5a2   : > { %s13324_s19 = smov %s9933_s20  ;;  %s13325_s20 = smov %s10006_s27 }
 0x5a3   : > { %s13326_s21 = smov %s9995_s24  ;;  %17 = sbr.rel (!%p15_p3) target bundleno = 3 (0x3), region = 75 }
 0x5aa   :  { %7877 = vsyncpa [#allocation3], 1 }
 0x5ab   :  { %7879 = vsyncpa [#allocation3 + $0x1], 1 }

</bundles_post_ra>
